<compile_context>
chip_gen: v7x
topology: tpu7x:2x2x1
jax: 0.10.0
libtpu: 0.0.40
codegen_flags: <defaults>
</compile_context>

<pallas_src>
import math
import functools

import jax
import jax.numpy as jnp
from jax.experimental import pallas as pl
from jax.experimental.pallas import tpu as pltpu

# ---- hyper-parameters (module defaults) ----
ARC_S = 30.0
ARC_M = 0.15
GEM_EPS = 1e-6
NORM_EPS = 1e-12  # F.normalize default eps

COS_M = math.cos(ARC_M)
SIN_M = math.sin(ARC_M)
TH = math.cos(math.pi - ARC_M)
MM = math.sin(math.pi - ARC_M) * ARC_M

# NT-style contraction: contract last dim of lhs with last dim of rhs (no transpose of W).
_NT_DIMS = (((1,), (1,)), ((), ()))


def _round_up(x, m):
    return ((x + m - 1) // m) * m


def _vmem_capacity_bytes():
    """Per-TensorCore VMEM capacity (v5e/v6e: 128 MiB, v7x: 64 MiB)."""
    try:
        info = pltpu.get_tpu_info()
        cap = int(getattr(info, "vmem_capacity_bytes", 0) or 0)
        if cap > 0:
            return cap
    except Exception:
        pass
    return 64 << 20  # conservative fallback (v7x per-TC VMEM)


def _chunk_channels(C):
    """Channel chunk for the in-kernel GeM loop (bounds f32 temporaries)."""
    if C <= 128:
        return C
    for cc in (128, 64, 32, 16):
        if C % cc == 0:
            return cc
    return C


def _est_vmem_bytes(tb, tn, C, HW, x_itemsize):
    """Conservative VMEM footprint estimate for a (tb, tn) tiling."""
    lane_hw = _round_up(HW, 128)          # spatial axis is lane-padded in VMEM
    cc = _chunk_channels(C)
    x_in = 2 * tb * C * lane_hw * x_itemsize          # double-buffered input tile
    w_in = 2 * tn * C * x_itemsize                    # double-buffered weight tile
    winv_in = 2 * 8 * _round_up(tn, 128) * 4
    lbl_in = 2 * _round_up(tb, 8) * 128 * 4
    feat_out = 2 * tb * C * 4
    logit_out = 2 * tb * _round_up(tn, 128) * 4
    scratch = tb * C * (4 + x_itemsize)                # pooled (f32) + fn (stream dtype)
    temps = 4 * tb * cc * lane_hw * 4                  # in-kernel f32 chunk temporaries
    return x_in + w_in + winv_in + lbl_in + feat_out + logit_out + scratch + temps


def _pick_tiles(B_pad, NC_pad, C, HW, x_itemsize, budget):
    """Largest (TB, TN) that fits the VMEM budget; prefer >=2 batch grid steps (v7x megacore)."""
    tb_cands = [t for t in (64, 32, 16, 8) if t <= B_pad and B_pad % t == 0]
    if not tb_cands:
        tb_cands = [B_pad]
    tn_cands = [t for t in (2048, 1024, 512, 256, 128) if t <= NC_pad and NC_pad % t == 0]
    if NC_pad <= 2048 and NC_pad not in tn_cands:
        tn_cands.insert(0, NC_pad)
    for need_two in (True, False):
        for tb in tb_cands:
            if need_two and B_pad // tb < 2:
                continue
            for tn in tn_cands:
                if _est_vmem_bytes(tb, tn, C, HW, x_itemsize) <= budget:
                    return tb, tn
    return tb_cands[-1], tn_cands[-1]


def _model101_head_kernel(x_ref, w_ref, winv_ref, p_ref, label_ref,
                          feat_ref, logit_ref, pooled_sc, fn_sc):
    """Grid = (batch tiles, class tiles); class axis inner ('arbitrary').

    x_ref     : (TB, C, HW) bf16 VMEM   layer4 features in native NCHW order (spatial on lanes)
    w_ref     : (TN, C)     bf16 VMEM   ArcFace weight tile (RAW, un-normalized)
    winv_ref  : (1, TN)     f32  VMEM   ARC_S * per-class inverse L2 norms of the weight
    p_ref     : (1,)        f32  SMEM   trainable GeM norm p
    label_ref : (TB, 1)     i32  VMEM   class labels for this batch tile
    feat_ref  : (TB, C)     f32  VMEM   global_feature output tile (written at j == 0)
    logit_ref : (TB, TN)    f32  VMEM   global_logit output tile (class tile j)
    pooled_sc : (TB, C)     f32  VMEM   scratch: GeM pooled (pre 1/p power)
    fn_sc     : (TB, C)     bf16 VMEM   scratch: normalized feature, reused across class tiles
    """
    j = pl.program_id(1)
    p = p_ref[0]

    TB, C, HW = x_ref.shape
    TN = logit_ref.shape[-1]
    CC = _chunk_channels(C)
    n_chunks = C // CC
    inv_hw = 1.0 / HW

    # ---- GeM pooling + feature normalization: once per batch tile (first class tile) ----
    @pl.when(j == 0)
    def _():
        # clamp(eps) -> x^p -> mean over H*W, chunked over channels to bound f32 temporaries.
        def pool_chunks(elem_fn):
            def body(c, carry):
                c0 = pl.multiple_of(c * CC, CC)
                xc = x_ref[:, pl.ds(c0, CC), :].astype(jnp.float32)   # (TB, CC, HW)
                xc = jnp.maximum(xc, GEM_EPS)
                pooled_sc[:, pl.ds(c0, CC)] = jnp.sum(elem_fn(xc), axis=-1) * inv_hw
                return carry
            jax.lax.fori_loop(0, n_chunks, body, 0)

        # tolerant p==3 fast path (pure VPU x*x*x); exp(p*log(x)) fallback for general p.
        is_p3 = jnp.abs(p - 3.0) <= 1e-5

        @pl.when(is_p3)
        def _():
            pool_chunks(lambda v: v * v * v)

        @pl.when(jnp.logical_not(is_p3))
        def _():
            pool_chunks(lambda v: jnp.exp(p * jnp.log(v)))   # x > 0 after clamp

        pooled = pooled_sc[...]                              # (TB, C), > 0
        feat = jnp.exp(jnp.log(pooled) * (1.0 / p))          # pooled ** (1/p)
        feat_ref[...] = feat

        # F.normalize(input): x * rsqrt(max(sum(x^2), eps^2)); carried as bf16 for the MXU.
        inv_f = jax.lax.rsqrt(
            jnp.maximum(jnp.sum(feat * feat, axis=-1, keepdims=True),
                        NORM_EPS * NORM_EPS))
        fn_sc[...] = (feat * inv_f).astype(fn_sc.dtype)

    # ---- ArcMarginProduct for class tile j ----
    # MXU matmul on the RAW bf16 weight tile; per-class (s / ||w||) applied post-matmul.
    raw = jax.lax.dot_general(fn_sc[...], w_ref[...], _NT_DIMS,
                              preferred_element_type=jnp.float32)     # (TB, TN)
    s_cos = raw * winv_ref[...]                                        # = s * cos(theta)

    # Margin only at the label column (if it falls inside this class tile).
    col_ids = j * TN + jax.lax.broadcasted_iota(jnp.int32, s_cos.shape, 1)
    one_hot = (col_ids == label_ref[...]).astype(jnp.float32)         # (TB, TN)

    cos_l = jnp.sum(one_hot * s_cos, axis=-1, keepdims=True) * (1.0 / ARC_S)  # (TB, 1)
    sine = jnp.sqrt(jnp.maximum(1.0 - cos_l * cos_l, 0.0))            # clamp radicand
    phi = cos_l * COS_M - sine * SIN_M
    phi = jnp.where(cos_l > TH, phi, cos_l - MM)                      # easy_margin=False

    logit_ref[...] = s_cos + one_hot * (ARC_S * (phi - cos_l))


@jax.jit
def model101_head(x_nchw, arc_weight, gem_p, label):
    """x_nchw: (B, C, H, W) (bf16 or f32); arc_weight: (NC, C) f32; gem_p: (1,) f32; label: (B,) int."""
    B, C, H, W = x_nchw.shape
    NC = arc_weight.shape[0]
    HW = H * W

    # NCHW -> (B, C, HW): a free reshape (no HBM transpose pass); the kernel reduces the
    # spatial axis directly.  Stream in bf16 to halve the dominant HBM read.
    stream_dtype = jnp.bfloat16
    x = x_nchw.reshape(B, C, HW)
    if x.dtype != stream_dtype:
        # TODO(synk): in the full model the backbone should emit bf16 so this cast fuses with
        #             its producer instead of costing an extra HBM pass.
        x = x.astype(stream_dtype)

    # Pad batch to a multiple of 8 (sublane) and classes to a multiple of 128 (lane-dense
    # logit stores); padded rows/classes are sliced off at the end.
    B_pad = _round_up(B, 8)
    NC_pad = _round_up(max(NC, 128), 128)

    if B_pad != B:
        x = jnp.pad(x, ((0, B_pad - B), (0, 0), (0, 0)))
    label_p = label.astype(jnp.int32)
    if B_pad != B:
        label_p = jnp.pad(label_p, (0, B_pad - B))
    label2d = label_p.reshape(B_pad, 1)

    w = arc_weight
    if NC_pad != NC:
        w = jnp.pad(w, ((0, NC_pad - NC), (0, 0)))
    w_s = w.astype(stream_dtype)
    # Per-class inverse norms computed from the values the kernel actually multiplies,
    # with ARC_S folded in (saves one (TB, TN) pass in the kernel).
    w_f32 = w_s.astype(jnp.float32)
    winv_s = (ARC_S * jax.lax.rsqrt(
        jnp.maximum(jnp.sum(w_f32 * w_f32, axis=-1), NORM_EPS * NORM_EPS))
              ).reshape(1, NC_pad)

    gem_p1 = gem_p.reshape((1,)).astype(jnp.float32)

    # Per-generation tiling: v7x has 64 MiB VMEM/TC, v5e/v6e have 128 MiB.
    cap = _vmem_capacity_bytes()
    x_itemsize = jnp.dtype(stream_dtype).itemsize
    TB, TN = _pick_tiles(B_pad, NC_pad, C, HW, x_itemsize, budget=(cap * 3) // 4)
    n_bt = B_pad // TB
    n_ct = NC_pad // TN

    vmem_limit = int(min(max(_est_vmem_bytes(TB, TN, C, HW, x_itemsize) + (8 << 20),
                             32 << 20),
                         (cap * 7) // 8))

    grid_spec = pltpu.PrefetchScalarGridSpec(
        num_scalar_prefetch=0,
        grid=(n_bt, n_ct),
        in_specs=[
            pl.BlockSpec((TB, C, HW), lambda i, j: (i, 0, 0)),       # x: batch-tiled, j-invariant
            pl.BlockSpec((TN, C), lambda i, j: (j, 0)),              # W: streamed class tiles
            pl.BlockSpec((1, TN), lambda i, j: (0, j)),              # s * inv weight norms
            pl.BlockSpec(memory_space=pltpu.MemorySpace.SMEM),       # gem p (scalar)
            pl.BlockSpec((TB, 1), lambda i, j: (i, 0)),              # labels: batch-tiled
        ],
        out_specs=[
            pl.BlockSpec((TB, C), lambda i, j: (i, 0)),              # global_feature
            pl.BlockSpec((TB, TN), lambda i, j: (i, j)),             # global_logit (lane-dense)
        ],
        scratch_shapes=[
            pltpu.VMEM((TB, C), jnp.float32),                        # pooled
            pltpu.VMEM((TB, C), stream_dtype),                       # normalized feature (bf16)
        ],
    )

    feat, logit = pl.pallas_call(
        _model101_head_kernel,
        out_shape=(
            jax.ShapeDtypeStruct((B_pad, C), jnp.float32),
            jax.ShapeDtypeStruct((B_pad, NC_pad), jnp.float32),
        ),
        grid_spec=grid_spec,
        compiler_params=pltpu.CompilerParams(
            dimension_semantics=("parallel", "arbitrary"),  # batch sharded across v7x cores
            vmem_limit_bytes=vmem_limit,
        ),
    )(x, w_s, winv_s, gem_p1, label2d)

    return feat[:B], logit[:B, :NC]


def _reference(x_nchw, arc_weight, gem_p, label):
    """Pure-JAX reference replicating the PyTorch forward semantics (f32)."""
    p = gem_p[0]
    x = jnp.clip(x_nchw.astype(jnp.float32), GEM_EPS, None) ** p
    pooled = jnp.mean(x, axis=(2, 3))            # adaptive_avg_pool2d(output_size=1) + squeeze
    feat = pooled ** (1.0 / p)

    fn = feat / jnp.maximum(jnp.linalg.norm(feat, axis=1, keepdims=True), NORM_EPS)
    wn = arc_weight / jnp.maximum(jnp.linalg.norm(arc_weight, axis=1, keepdims=True), NORM_EPS)
    cosine = fn @ wn.T
    sine = jnp.sqrt(1.0 - cosine ** 2)
    phi = cosine * COS_M - sine * SIN_M
    phi = jnp.where(cosine > TH, phi, cosine - MM)
    one_hot = jax.nn.one_hot(label, arc_weight.shape[0], dtype=jnp.float32)
    logit = (one_hot * phi + (1.0 - one_hot) * cosine) * ARC_S
    return feat, logit


if __name__ == "__main__":
    # Small but module-consistent shapes: layer4 of ResNet-101 emits 2048 channels at 7x7.
    B, C, H, W = 2, 2048, 7, 7
    NUM_CLASS = 128

    key = jax.random.PRNGKey(0)
    k_x, k_w = jax.random.split(key)

    # Backbone layer4 output stand-in (post-ReLU, non-negative).  A TPU backbone emits bf16,
    # so the head streams it directly with no conversion pass.
    x4 = jax.nn.relu(jax.random.normal(k_x, (B, C, H, W), dtype=jnp.float32)
                     ).astype(jnp.bfloat16)

    # ArcMarginProduct weight: xavier_uniform over (out_features, in_features).
    limit = math.sqrt(6.0 / (NUM_CLASS + C))
    arc_weight = jax.random.uniform(k_w, (NUM_CLASS, C), dtype=jnp.float32,
                                    minval=-limit, maxval=limit)

    # GeneralizedMeanPoolingP trainable norm p = 3.0
    gem_p = jnp.ones((1,), dtype=jnp.float32) * 3.0

    # Deterministic labels.
    label = jnp.arange(B, dtype=jnp.int32) % NUM_CLASS

    feat, logit = model101_head(x4, arc_weight, gem_p, label)
    jax.block_until_ready((feat, logit))

    feat_ref, logit_ref = _reference(x4, arc_weight, gem_p, label)
    assert feat.shape == (B, C) and logit.shape == (B, NUM_CLASS)
    # GeM pooling runs in f32 from the same bf16 input as the reference -> tight tolerance.
    assert jnp.allclose(feat, feat_ref, rtol=5e-4, atol=1e-4)
    # Logits are s=30-scaled cosines; the kernel uses bf16 MXU operands (fn, W), so allow
    # ~1.7e-3 relative to the s scale (5e-2 absolute).
    assert jnp.allclose(logit, logit_ref, rtol=1e-3, atol=5e-2)

    print("KERNEL_OK")
</pallas_src>

<mosaic_0001>
module attributes {stable_mosaic.version = 11 : i64} {
  func.func @_model101_head_kernel(%arg0: i32, %arg1: i32, %arg2: memref<8x2048x49xbf16, #tpu.memory_space<vmem>>, %arg3: memref<128x2048xbf16, #tpu.memory_space<vmem>>, %arg4: memref<1x128xf32, #tpu.memory_space<vmem>>, %arg5: memref<1xf32, #tpu.memory_space<smem>>, %arg6: memref<8x1xi32, #tpu.memory_space<vmem>>, %arg7: memref<8x2048xf32, #tpu.memory_space<vmem>>, %arg8: memref<8x128xf32, #tpu.memory_space<vmem>>, %arg9: memref<8x2048xf32, #tpu.memory_space<vmem>>, %arg10: memref<8x2048xbf16, #tpu.memory_space<vmem>>) attributes {dimension_semantics = [#tpu.dimension_semantics<parallel>, #tpu.dimension_semantics<arbitrary>], iteration_bounds = array<i64: 1, 1>, scalar_prefetch = 0 : i64, scratch_operands = 2 : i64, tpu.core_type = #tpu.core_type<tc>, window_params = [{transform_indices = @transform_0, window_bounds = array<i64: 8, 2048, 49>}, {transform_indices = @transform_1, window_bounds = array<i64: 128, 2048>}, {transform_indices = @transform_2, window_bounds = array<i64: 1, 128>}, {transform_indices = @transform_3, window_bounds = array<i64: 1>}, {transform_indices = @transform_4, window_bounds = array<i64: 8, 1>}, {transform_indices = @transform_5, window_bounds = array<i64: 8, 2048>}, {transform_indices = @transform_6, window_bounds = array<i64: 8, 128>}]} {
    %c0 = arith.constant 0 : index
    %0 = memref.load %arg5[%c0] : memref<1xf32, #tpu.memory_space<smem>>
    %c0_i32 = arith.constant 0 : i32
    %1 = arith.cmpi eq, %arg1, %c0_i32 : i32
    %2 = arith.extui %1 : i1 to i32
    %c0_i32_0 = arith.constant 0 : i32
    %3 = arith.cmpi ne, %2, %c0_i32_0 : i32
    scf.if %3 {
      %cst_20 = arith.constant 3.000000e+00 : f32
      %47 = arith.subf %0, %cst_20 : f32
      %48 = math.absf %47 : f32
      %cst_21 = arith.constant 9.99999974E-6 : f32
      %49 = arith.cmpf ole, %48, %cst_21 : f32
      %50 = arith.extui %49 : i1 to i32
      %c0_i32_22 = arith.constant 0 : i32
      %51 = arith.cmpi ne, %50, %c0_i32_22 : i32
      scf.if %51 {
        %c0_i32_33 = arith.constant 0 : i32
        %c16_i32 = arith.constant 16 : i32
        %72 = arith.addi %c0_i32_33, %c16_i32 : i32
        %c1_i32 = arith.constant 1 : i32
        scf.for %arg11 = %c0_i32_33 to %72 step %c1_i32  : i32 {
          %c128_i32_35 = arith.constant 128 : i32
          %73 = arith.muli %arg11, %c128_i32_35 : i32
          %74 = tpu.assume_multiple %73, 128 : i32
          %c0_36 = arith.constant 0 : index
          %75 = arith.index_cast %74 : i32 to index
          %c0_37 = arith.constant 0 : index
          %76 = vector.load %arg2[%c0_36, %75, %c0_37] : memref<8x2048x49xbf16, #tpu.memory_space<vmem>>, vector<8x128x49xbf16>
          %77 = arith.extf %76 : vector<8x128x49xbf16> to vector<8x128x49xf32>
          %cst_38 = arith.constant 9.99999997E-7 : f32
          %78 = vector.broadcast %cst_38 : f32 to vector<8x128x49xf32>
          %79 = arith.maximumf %77, %78 : vector<8x128x49xf32>
          %80 = arith.mulf %79, %79 : vector<8x128x49xf32>
          %81 = arith.mulf %80, %79 : vector<8x128x49xf32>
          %cst_39 = arith.constant dense<0.000000e+00> : vector<8x128xf32>
          %82 = vector.multi_reduction <add>, %81, %cst_39 [2] : vector<8x128x49xf32> to vector<8x128xf32>
          %cst_40 = arith.constant 0.0204081628 : f32
          %83 = vector.broadcast %cst_40 : f32 to vector<8x128xf32>
          %84 = arith.mulf %82, %83 : vector<8x128xf32>
          %c0_41 = arith.constant 0 : index
          %85 = arith.index_cast %74 : i32 to index
          %86 = vector.load %arg9[%c0_41, %85] : memref<8x2048xf32, #tpu.memory_space<vmem>>, vector<8x128xf32>
          tpu.vector_store %arg9[%c0_41, %85], %84 {strides = array<i32>} : memref<8x2048xf32, #tpu.memory_space<vmem>>, vector<8x128xf32>,
        }
        %c16_i32_34 = arith.constant 16 : i32
      } else {
      }
      %true = arith.constant true
      %52 = arith.xori %49, %true : i1
      %53 = arith.extui %52 : i1 to i32
      %c0_i32_23 = arith.constant 0 : i32
      %54 = arith.cmpi ne, %53, %c0_i32_23 : i32
      scf.if %54 {
        %c0_i32_33 = arith.constant 0 : i32
        %c16_i32 = arith.constant 16 : i32
        %72 = arith.addi %c0_i32_33, %c16_i32 : i32
        %c1_i32 = arith.constant 1 : i32
        scf.for %arg11 = %c0_i32_33 to %72 step %c1_i32  : i32 {
          %c128_i32_35 = arith.constant 128 : i32
          %73 = arith.muli %arg11, %c128_i32_35 : i32
          %74 = tpu.assume_multiple %73, 128 : i32
          %c0_36 = arith.constant 0 : index
          %75 = arith.index_cast %74 : i32 to index
          %c0_37 = arith.constant 0 : index
          %76 = vector.load %arg2[%c0_36, %75, %c0_37] : memref<8x2048x49xbf16, #tpu.memory_space<vmem>>, vector<8x128x49xbf16>
          %77 = arith.extf %76 : vector<8x128x49xbf16> to vector<8x128x49xf32>
          %cst_38 = arith.constant 9.99999997E-7 : f32
          %78 = vector.broadcast %cst_38 : f32 to vector<8x128x49xf32>
          %79 = arith.maximumf %77, %78 : vector<8x128x49xf32>
          %80 = math.log %79 : vector<8x128x49xf32>
          %81 = vector.broadcast %0 : f32 to vector<8x128x49xf32>
          %82 = arith.mulf %81, %80 : vector<8x128x49xf32>
          %83 = math.exp %82 : vector<8x128x49xf32>
          %cst_39 = arith.constant dense<0.000000e+00> : vector<8x128xf32>
          %84 = vector.multi_reduction <add>, %83, %cst_39 [2] : vector<8x128x49xf32> to vector<8x128xf32>
          %cst_40 = arith.constant 0.0204081628 : f32
          %85 = vector.broadcast %cst_40 : f32 to vector<8x128xf32>
          %86 = arith.mulf %84, %85 : vector<8x128xf32>
          %c0_41 = arith.constant 0 : index
          %87 = arith.index_cast %74 : i32 to index
          %88 = vector.load %arg9[%c0_41, %87] : memref<8x2048xf32, #tpu.memory_space<vmem>>, vector<8x128xf32>
          tpu.vector_store %arg9[%c0_41, %87], %86 {strides = array<i32>} : memref<8x2048xf32, #tpu.memory_space<vmem>>, vector<8x128xf32>,
        }
        %c16_i32_34 = arith.constant 16 : i32
      } else {
      }
      %c0_24 = arith.constant 0 : index
      %c0_25 = arith.constant 0 : index
      %55 = vector.load %arg9[%c0_24, %c0_25] : memref<8x2048xf32, #tpu.memory_space<vmem>>, vector<8x2048xf32>
      %56 = math.log %55 : vector<8x2048xf32>
      %cst_26 = arith.constant 1.000000e+00 : f32
      %57 = arith.divf %cst_26, %0 : f32
      %58 = vector.broadcast %57 : f32 to vector<8x2048xf32>
      %59 = arith.mulf %56, %58 : vector<8x2048xf32>
      %60 = math.exp %59 : vector<8x2048xf32>
      %c0_27 = arith.constant 0 : index
      %c0_28 = arith.constant 0 : index
      %61 = vector.load %arg7[%c0_27, %c0_28] : memref<8x2048xf32, #tpu.memory_space<vmem>>, vector<8x2048xf32>
      tpu.vector_store %arg7[%c0_27, %c0_28], %60 {strides = array<i32>} : memref<8x2048xf32, #tpu.memory_space<vmem>>, vector<8x2048xf32>,
      %62 = arith.mulf %60, %60 : vector<8x2048xf32>
      %cst_29 = arith.constant dense<0.000000e+00> : vector<8xf32>
      %63 = vector.multi_reduction <add>, %62, %cst_29 [1] : vector<8x2048xf32> to vector<8xf32>
      %64 = vector.shape_cast %63 : vector<8xf32> to vector<8x1xf32>
      %cst_30 = arith.constant 1.000000e-24 : f32
      %65 = vector.broadcast %cst_30 : f32 to vector<8x1xf32>
      %66 = arith.maximumf %64, %65 : vector<8x1xf32>
      %67 = math.rsqrt %66 : vector<8x1xf32>
      %68 = vector.broadcast %67 : vector<8x1xf32> to vector<8x2048xf32>
      %69 = arith.mulf %60, %68 : vector<8x2048xf32>
      %70 = arith.truncf %69 : vector<8x2048xf32> to vector<8x2048xbf16>
      %c0_31 = arith.constant 0 : index
      %c0_32 = arith.constant 0 : index
      %71 = vector.load %arg10[%c0_31, %c0_32] : memref<8x2048xbf16, #tpu.memory_space<vmem>>, vector<8x2048xbf16>
      tpu.vector_store %arg10[%c0_31, %c0_32], %70 {strides = array<i32>} : memref<8x2048xbf16, #tpu.memory_space<vmem>>, vector<8x2048xbf16>,
    } else {
    }
    %c0_1 = arith.constant 0 : index
    %c0_2 = arith.constant 0 : index
    %4 = vector.load %arg10[%c0_1, %c0_2] : memref<8x2048xbf16, #tpu.memory_space<vmem>>, vector<8x2048xbf16>
    %c0_3 = arith.constant 0 : index
    %c0_4 = arith.constant 0 : index
    %5 = vector.load %arg3[%c0_3, %c0_4] : memref<128x2048xbf16, #tpu.memory_space<vmem>>, vector<128x2048xbf16>
    %cst = arith.constant dense<0.000000e+00> : vector<8x128xf32>
    %6 = tpu.matmul %4, %5, %cst {dimension_numbers = #tpu.dot_dimension_numbers<[1], [1], [0], [0], [0, 0, 1, 0], [], []>} : vector<8x2048xbf16>, vector<128x2048xbf16>, vector<8x128xf32> -> vector<8x128xf32>
    %c0_5 = arith.constant 0 : index
    %c0_6 = arith.constant 0 : index
    %7 = vector.load %arg4[%c0_5, %c0_6] : memref<1x128xf32, #tpu.memory_space<vmem>>, vector<1x128xf32>
    %8 = vector.broadcast %7 : vector<1x128xf32> to vector<8x128xf32>
    %9 = arith.mulf %6, %8 : vector<8x128xf32>
    %c128_i32 = arith.constant 128 : i32
    %10 = arith.muli %arg1, %c128_i32 : i32
    %11 = tpu.iota {dimensions = array<i32: 1>} : vector<8x128xi32>
    %12 = vector.broadcast %10 : i32 to vector<8x128xi32>
    %13 = arith.addi %12, %11 : vector<8x128xi32>
    %c0_7 = arith.constant 0 : index
    %c0_8 = arith.constant 0 : index
    %14 = vector.load %arg6[%c0_7, %c0_8] : memref<8x1xi32, #tpu.memory_space<vmem>>, vector<8x1xi32>
    %15 = vector.broadcast %14 : vector<8x1xi32> to vector<8x128xi32>
    %16 = arith.cmpi eq, %13, %15 : vector<8x128xi32>
    %17 = arith.extui %16 : vector<8x128xi1> to vector<8x128xi32>
    %18 = arith.sitofp %17 : vector<8x128xi32> to vector<8x128xf32>
    %19 = arith.mulf %18, %9 : vector<8x128xf32>
    %cst_9 = arith.constant dense<0.000000e+00> : vector<8xf32>
    %20 = vector.multi_reduction <add>, %19, %cst_9 [1] : vector<8x128xf32> to vector<8xf32>
    %21 = vector.shape_cast %20 : vector<8xf32> to vector<8x1xf32>
    %cst_10 = arith.constant 0.0333333351 : f32
    %22 = vector.broadcast %cst_10 : f32 to vector<8x1xf32>
    %23 = arith.mulf %21, %22 : vector<8x1xf32>
    %24 = arith.mulf %23, %23 : vector<8x1xf32>
    %cst_11 = arith.constant 1.000000e+00 : f32
    %25 = vector.broadcast %cst_11 : f32 to vector<8x1xf32>
    %26 = arith.subf %25, %24 : vector<8x1xf32>
    %cst_12 = arith.constant 0.000000e+00 : f32
    %27 = vector.broadcast %cst_12 : f32 to vector<8x1xf32>
    %28 = arith.maximumf %26, %27 : vector<8x1xf32>
    %29 = math.sqrt %28 : vector<8x1xf32>
    %cst_13 = arith.constant 0.98877108 : f32
    %30 = vector.broadcast %cst_13 : f32 to vector<8x1xf32>
    %31 = arith.mulf %23, %30 : vector<8x1xf32>
    %cst_14 = arith.constant 0.149438128 : f32
    %32 = vector.broadcast %cst_14 : f32 to vector<8x1xf32>
    %33 = arith.mulf %29, %32 : vector<8x1xf32>
    %34 = arith.subf %31, %33 : vector<8x1xf32>
    %cst_15 = arith.constant -0.98877108 : f32
    %35 = vector.broadcast %cst_15 : f32 to vector<8x1xf32>
    %36 = arith.cmpf ogt, %23, %35 : vector<8x1xf32>
    %cst_16 = arith.constant 0.0224157199 : f32
    %37 = vector.broadcast %cst_16 : f32 to vector<8x1xf32>
    %38 = arith.subf %23, %37 : vector<8x1xf32>
    %39 = arith.select %36, %34, %38 : vector<8x1xi1>, vector<8x1xf32>
    %40 = arith.subf %39, %23 : vector<8x1xf32>
    %cst_17 = arith.constant 3.000000e+01 : f32
    %41 = vector.broadcast %cst_17 : f32 to vector<8x1xf32>
    %42 = arith.mulf %41, %40 : vector<8x1xf32>
    %43 = vector.broadcast %42 : vector<8x1xf32> to vector<8x128xf32>
    %44 = arith.mulf %18, %43 : vector<8x128xf32>
    %45 = arith.addf %9, %44 : vector<8x128xf32>
    %c0_18 = arith.constant 0 : index
    %c0_19 = arith.constant 0 : index
    %46 = vector.load %arg8[%c0_18, %c0_19] : memref<8x128xf32, #tpu.memory_space<vmem>>, vector<8x128xf32>
    tpu.vector_store %arg8[%c0_18, %c0_19], %45 {strides = array<i32>} : memref<8x128xf32, #tpu.memory_space<vmem>>, vector<8x128xf32>,
    return
  }
  func.func @transform_0(%arg0: i32, %arg1: i32) -> (i32, i32, i32) {
    %c0_i32 = arith.constant 0 : i32
    %c0_i32_0 = arith.constant 0 : i32
    %c0_i32_1 = arith.constant 0 : i32
    return %arg0, %c0_i32, %c0_i32_0 : i32, i32, i32
  }
  func.func @transform_1(%arg0: i32, %arg1: i32) -> (i32, i32) {
    %c0_i32 = arith.constant 0 : i32
    %c0_i32_0 = arith.constant 0 : i32
    return %arg1, %c0_i32 : i32, i32
  }
  func.func @transform_2(%arg0: i32, %arg1: i32) -> (i32, i32) {
    %c0_i32 = arith.constant 0 : i32
    %c0_i32_0 = arith.constant 0 : i32
    return %c0_i32, %arg1 : i32, i32
  }
  func.func @transform_3(%arg0: i32, %arg1: i32) -> i32 {
    %c0_i32 = arith.constant 0 : i32
    %c0_i32_0 = arith.constant 0 : i32
    return %c0_i32 : i32
  }
  func.func @transform_4(%arg0: i32, %arg1: i32) -> (i32, i32) {
    %c0_i32 = arith.constant 0 : i32
    %c0_i32_0 = arith.constant 0 : i32
    return %arg0, %c0_i32 : i32, i32
  }
  func.func @transform_5(%arg0: i32, %arg1: i32) -> (i32, i32) {
    %c0_i32 = arith.constant 0 : i32
    %c0_i32_0 = arith.constant 0 : i32
    return %arg0, %c0_i32 : i32, i32
  }
  func.func @transform_6(%arg0: i32, %arg1: i32) -> (i32, i32) {
    %c0_i32 = arith.constant 0 : i32
    return %arg0, %arg1 : i32, i32
  }
}

</mosaic_0001>

<bundles_post_ra>
// kernel: model101_head.1
= control target key start
LH: loop header
LB: loop body
LE: loop exit
PB: predicated region body
PF: predicated region fallthrough
CT: control target
= control target key end

     0   :  { %s9462_s0 = inlined_call_operand.vmem [shape: bf16[8,2048,49], index: 0, kind: input, shape index: {}]   ;;  %s9463_s1 = inlined_call_operand.vmem [shape: bf16[128,2048], index: 1, kind: input, shape index: {}]   ;;  %s9464_s2 = inlined_call_operand.vmem [shape: f32[1,128], index: 2, kind: input, shape index: {}]   ;;  %s9465_s3 = inlined_call_operand.<no memory space> [shape: f32[1], index: 3, kind: input, shape index: {}]   ;;  %s9466_s4 = inlined_call_operand.vmem [shape: s32[8,1], index: 4, kind: input, shape index: {}]   ;;  %s9467_s5 = inlined_call_operand.vmem [shape: f32[8,2048], index: 5, kind: output, shape index: {0}]   ;;  %s9468_s6 = inlined_call_operand.vmem [shape: f32[8,128], index: 6, kind: output, shape index: {1}]  }
   0x1   :  { %s5837_s23 = sadd.f32 -3.0, %s9465_s3 }
   0x3   :  { %s7345_s24 = sand.u32 2147483647, %s5837_s23 }
   0x4   :  { %p31_p0 = scmp.le.f32.partialorder %s7345_s24, 1e-05 }
   0x5   :  { %s7350_s25 = smov (%p31_p0), 0  }
   0x6   :  { %34 = sbr.rel (!%p31_p0) target bundleno = 429 (0x1ad), region = 29 }
   0xd LB: > { %s5838_s26 = sshll.u32 %s7299_s25, 7  ;;  %vm686_vm0 = vcmask 400384   ;;  %vm1338_vm1 = vcmask 130112   ;;  %vm1345_vm2 = vcmask 195712   ;;  %vm1352_vm3 = vcmask 261312   ;;  %s40_s25 = sadd.s32 1, %s7299_s25   ;;  %s7299_s25 = sphi %s7350_s25, %s40_s25  }
   0xe   : > { %s42_s27 = sshra.s32 %s5838_s26, 3  ;;  %vm1359_vm4 = vcmask 326912   ;;  %vm1366_vm5 = vcmask 392512   ;;  %vm1373_vm6 = vcmask 458112   ;;  %vm1380_vm7 = vcmask 523712   ;;  %s2006_s8 = sshra.s32 %s5838_s26, 7 }
   0xf   : > { %s5839_s28 = sshll.u32 %s42_s27, 2  ;;  %vm1387_vm8 = vcmask 589312   ;;  %vm9469_vm9 = vcmask 654912   ;;  %vm1401_vm10 = vcmask 720512   ;;  %vm1408_vm11 = vcmask 786112   ;;  %s5840_s9 = sshll.u32 %s2006_s8, 3 }
  0x10   : > { %s7361_s7 = scalar_lea.vmem %s9462_s0, %s5839_s28  ;;  %vm1415_vm12 = vcmask 851712   ;;  %vm1422_vm13 = vcmask 917312   ;;  %vm1429_vm14 = vcmask 982912   ;;  %vm1436_vm15 = vcmask 1048512   ;;  %s2009_s10 = scalar_lea.vmem [#allocation2], %s5840_s9 }
  0x11   : > { %v6519_v0 = vld [vmem:[%s7361_s7 + $0x8] sm:$0xff]   ;;  %v6008_v1 = vld [vmem:[%s7361_s7] sm:$0xff]   ;;  %v6520_v2 = vld [vmem:[%s7361_s7 + $0x10] sm:$0xff]   ;;  %p37_p1 = scmp.ge.s32.totalorder %s40_s25, 16  }
  0x12   : > { %v6013_v3 = vunpack.c.l.bf16 %v6519_v0  ;;  %v6009_v4 = vunpack.c.l.bf16 %v6008_v1  ;;  %v6014_v5 = vunpack.c.h.bf16 %v6519_v0  ;;  %v6010_v6 = vunpack.c.h.bf16 %v6008_v1  ;;  %v6521_v7 = vld [vmem:[%s7361_s7 + $0x18] sm:$0xff]   ;;  %v6522_v8 = vld [vmem:[%s7361_s7 + $0x20] sm:$0xff]   ;;  %v6523_v33 = vld [vmem:[%s7361_s7 + $0x28] sm:$0xff]  }
  0x13   : > { %v6018_v9 = vunpack.c.h.bf16 %v6520_v2  ;;  %v6017_v10 = vunpack.c.l.bf16 %v6520_v2  ;;  %v6022_v11 = vunpack.c.h.bf16 %v6521_v7  ;;  %v6021_v12 = vunpack.c.l.bf16 %v6521_v7  ;;  %v6524_v41 = vld [vmem:[%s7361_s7 + $0x30] sm:$0xff]   ;;  %v6525_v53 = vld [vmem:[%s7361_s7 + $0x38] sm:$0xff]  }
  0x14   : > { %v304_v13 = vmax.f32 %v6013_v3, 1e-06  ;;  %v302_v14 = vmax.f32 %v6009_v4, 1e-06  ;;  %v305_v15 = vmax.f32 %v6014_v5, 1e-06  ;;  %v6026_v19 = vunpack.c.h.bf16 %v6522_v8 }
  0x15   : > { %v303_v16 = vmax.f32 %v6010_v6, 1e-06  ;;  %v307_v17 = vmax.f32 %v6018_v9, 1e-06  ;;  %v306_v18 = vmax.f32 %v6017_v10, 1e-06  ;;  %v6025_v31 = vunpack.c.l.bf16 %v6522_v8 }
  0x16   : > { %v432_v20 = vmul.f32 %v304_v13, %v304_v13  ;;  %v430_v21 = vmul.f32 %v302_v14, %v302_v14  ;;  %v433_v22 = vmul.f32 %v305_v15, %v305_v15  ;;  %v309_v23 = vmax.f32 %v6022_v11, 1e-06  ;;  %v6526_v4 = vld [vmem:[%s7361_s7 + $0x400] sm:$0xff]  }
  0x17   : > { %v431_v24 = vmul.f32 %v303_v16, %v303_v16  ;;  %v435_v25 = vmul.f32 %v307_v17, %v307_v17  ;;  %v434_v26 = vmul.f32 %v306_v18, %v306_v18  ;;  %v308_v27 = vmax.f32 %v6021_v12, 1e-06 }
  0x18   : > { %v560_v28 = vmul.f32 %v432_v20, %v304_v13  ;;  %v558_v29 = vmul.f32 %v430_v21, %v302_v14  ;;  %v561_v30 = vmul.f32 %v433_v22, %v305_v15  ;;  %v437_v36 = vmul.f32 %v309_v23, %v309_v23  ;;  %v6527_v15 = vld [vmem:[%s7361_s7 + $0x408] sm:$0xff]   ;;  %v6528_v22 = vld [vmem:[%s7361_s7 + $0x410] sm:$0xff]  }
  0x19   : > { %v559_v32 = vmul.f32 %v431_v24, %v303_v16  ;;  %v563_v38 = vmul.f32 %v435_v25, %v307_v17  ;;  %v562_v39 = vmul.f32 %v434_v26, %v306_v18  ;;  %v436_v40 = vmul.f32 %v308_v27, %v308_v27 }
  0x1a   : > { %v693_v34 = vsel %vm686_vm0, %v560_v28, 0.0  ;;  %v687_v35 = vsel %vm686_vm0, %v558_v29, 0.0  ;;  %v696_v37 = vsel %vm686_vm0, %v561_v30, 0.0  ;;  %v311_v43 = vmax.f32 %v6026_v19, 1e-06 }
  0x1b   : > { %694 = vadd.xlane.f32.xlu1 %v693_v34  ;;  %688 = vadd.xlane.f32.xlu0 %v687_v35  ;;  %v690_v42 = vsel %vm686_vm0, %v559_v32, 0.0  ;;  %v310_v44 = vmax.f32 %v6025_v31, 1e-06  ;;  %v6030_v45 = vunpack.c.h.bf16 %v6523_v33  ;;  %v6029_v46 = vunpack.c.l.bf16 %v6523_v33  ;;  %v6529_v33 = vld [vmem:[%s7361_s7 + $0x418] sm:$0xff]  }
  0x1c   : > { %v565_v47 = vmul.f32 %v437_v36, %v309_v23  ;;  %v6034_v48 = vunpack.c.h.bf16 %v6524_v41  ;;  %v702_v49 = vsel %vm686_vm0, %v563_v38, 0.0  ;;  %v699_v50 = vsel %vm686_vm0, %v562_v39, 0.0 }
  0x1d   : > { %v313_v51 = vmax.f32 %v6030_v45, 1e-06  ;;  %v6033_v52 = vunpack.c.l.bf16 %v6524_v41  ;;  %v564_v54 = vmul.f32 %v436_v40, %v308_v27  ;;  %v439_v55 = vmul.f32 %v311_v43, %v311_v43 }
  0x1e   : > { %v438_v56 = vmul.f32 %v310_v44, %v310_v44  ;;  %v312_v57 = vmax.f32 %v6029_v46, 1e-06  ;;  %v315_v58 = vmax.f32 %v6034_v48, 1e-06  ;;  %v6038_v59 = vunpack.c.h.bf16 %v6525_v53  ;;  %v6530_v48 = vld [vmem:[%s7361_s7 + $0x420] sm:$0xff]  }
  0x1f   : > { %697 = vadd.xlane.f32.xlu1 %v696_v37  ;;  %691 = vadd.xlane.f32.xlu0 %v690_v42  ;;  %v708_v60 = vsel %vm686_vm0, %v565_v47, 0.0  ;;  %v441_v61 = vmul.f32 %v313_v51, %v313_v51  ;;  %v314_v62 = vmax.f32 %v6033_v52, 1e-06  ;;  %v6037_v63 = vunpack.c.l.bf16 %v6525_v53 }
  0x20   : > { %v705_v0 = vsel %vm686_vm0, %v564_v54, 0.0  ;;  %v567_v1 = vmul.f32 %v439_v55, %v311_v43  ;;  %v566_v2 = vmul.f32 %v438_v56, %v310_v44  ;;  %v440_v3 = vmul.f32 %v312_v57, %v312_v57 }
  0x21   : > { %v443_v5 = vmul.f32 %v315_v58, %v315_v58  ;;  %v317_v6 = vmax.f32 %v6038_v59, 1e-06  ;;  %v569_v7 = vmul.f32 %v441_v61, %v313_v51  ;;  %v442_v8 = vmul.f32 %v314_v62, %v314_v62  ;;  %v6531_v59 = vld [vmem:[%s7361_s7 + $0x428] sm:$0xff]  }
  0x22   : > { %v316_v9 = vmax.f32 %v6037_v63, 1e-06  ;;  %v6042_v10 = vunpack.c.h.bf16 %v6526_v4  ;;  %v714_v11 = vsel %vm686_vm0, %v567_v1, 0.0  ;;  %v711_v12 = vsel %vm686_vm0, %v566_v2, 0.0  ;;  %v6532_v2 = vld [vmem:[%s7361_s7 + $0x430] sm:$0xff]  }
  0x23   : > { %703 = vadd.xlane.f32.xlu1 %v702_v49  ;;  %700 = vadd.xlane.f32.xlu0 %v699_v50  ;;  %v568_v13 = vmul.f32 %v440_v3, %v312_v57  ;;  %v6041_v14 = vunpack.c.l.bf16 %v6526_v4  ;;  %v571_v16 = vmul.f32 %v443_v5, %v315_v58  ;;  %v445_v17 = vmul.f32 %v317_v6, %v317_v6 }
  0x24   : > { %v720_v18 = vsel %vm686_vm0, %v569_v7, 0.0  ;;  %v570_v19 = vmul.f32 %v442_v8, %v314_v62  ;;  %v319_v20 = vmax.f32 %v6042_v10, 1e-06  ;;  %v6046_v21 = vunpack.c.h.bf16 %v6527_v15 }
  0x25   : > { %v717_v23 = vsel %vm686_vm0, %v568_v13, 0.0  ;;  %v444_v24 = vmul.f32 %v316_v9, %v316_v9  ;;  %v318_v25 = vmax.f32 %v6041_v14, 1e-06  ;;  %v6045_v26 = vunpack.c.l.bf16 %v6527_v15  ;;  %v6533_v13 = vld [vmem:[%s7361_s7 + $0x438] sm:$0xff]  }
  0x26   : > { %v573_v27 = vmul.f32 %v445_v17, %v317_v6  ;;  %v6050_v28 = vunpack.c.h.bf16 %v6528_v22  ;;  %v726_v29 = vsel %vm686_vm0, %v571_v16, 0.0  ;;  %v447_v30 = vmul.f32 %v319_v20, %v319_v20 }
  0x27   : > { %709 = vadd.xlane.f32.xlu1 %v708_v60  ;;  %706 = vadd.xlane.f32.xlu0 %v705_v0  ;;  %v321_v31 = vmax.f32 %v6046_v21, 1e-06  ;;  %v6049_v32 = vunpack.c.l.bf16 %v6528_v22  ;;  %v723_v34 = vsel %vm686_vm0, %v570_v19, 0.0  ;;  %v572_v35 = vmul.f32 %v444_v24, %v316_v9 }
  0x28   : > { %v446_v36 = vmul.f32 %v318_v25, %v318_v25  ;;  %v320_v37 = vmax.f32 %v6045_v26, 1e-06  ;;  %v323_v38 = vmax.f32 %v6050_v28, 1e-06  ;;  %v6054_v39 = vunpack.c.h.bf16 %v6529_v33  ;;  %v6534_v28 = vld [vmem:[%s7361_s7 + $0x800] sm:$0xff]  }
  0x29   : > { %v732_v40 = vsel %vm686_vm0, %v573_v27, 0.0  ;;  %v575_v41 = vmul.f32 %v447_v30, %v319_v20  ;;  %v449_v42 = vmul.f32 %v321_v31, %v321_v31  ;;  %v322_v43 = vmax.f32 %v6049_v32, 1e-06 }
  0x2a   : > { %v729_v44 = vsel %vm686_vm0, %v572_v35, 0.0  ;;  %v574_v45 = vmul.f32 %v446_v36, %v318_v25  ;;  %v448_v46 = vmul.f32 %v320_v37, %v320_v37  ;;  %v6053_v47 = vunpack.c.l.bf16 %v6529_v33 }
  0x2b   : > { %715 = vadd.xlane.f32.xlu1 %v714_v11  ;;  %712 = vadd.xlane.f32.xlu0 %v711_v12  ;;  %v451_v49 = vmul.f32 %v323_v38, %v323_v38  ;;  %v325_v50 = vmax.f32 %v6054_v39, 1e-06  ;;  %v738_v51 = vsel %vm686_vm0, %v575_v41, 0.0  ;;  %v577_v52 = vmul.f32 %v449_v42, %v321_v31  ;;  %v6535_v39 = vld [vmem:[%s7361_s7 + $0x808] sm:$0xff]  }
  0x2c   : > { %v450_v53 = vmul.f32 %v322_v43, %v322_v43  ;;  %v6058_v54 = vunpack.c.h.bf16 %v6530_v48  ;;  %v735_v55 = vsel %vm686_vm0, %v574_v45, 0.0  ;;  %v576_v56 = vmul.f32 %v448_v46, %v320_v37  ;;  %v6536_v46 = vld [vmem:[%s7361_s7 + $0x810] sm:$0xff]  }
  0x2d   : > { %v324_v57 = vmax.f32 %v6053_v47, 1e-06  ;;  %v6057_v58 = vunpack.c.l.bf16 %v6530_v48  ;;  %v579_v60 = vmul.f32 %v451_v49, %v323_v38  ;;  %v453_v61 = vmul.f32 %v325_v50, %v325_v50 }
  0x2e   : > { %v744_v62 = vsel %vm686_vm0, %v577_v52, 0.0  ;;  %v578_v63 = vmul.f32 %v450_v53, %v322_v43  ;;  %v327_v0 = vmax.f32 %v6058_v54, 1e-06  ;;  %v6062_v1 = vunpack.c.h.bf16 %v6531_v59 }
  0x2f   : > { %721 = vadd.xlane.f32.xlu1 %v720_v18  ;;  %718 = vadd.xlane.f32.xlu0 %v717_v23  ;;  %v741_v3 = vsel %vm686_vm0, %v576_v56, 0.0  ;;  %v452_v4 = vmul.f32 %v324_v57, %v324_v57  ;;  %v326_v5 = vmax.f32 %v6057_v58, 1e-06  ;;  %v6061_v6 = vunpack.c.l.bf16 %v6531_v59 }
  0x30   : > { %v581_v7 = vmul.f32 %v453_v61, %v325_v50  ;;  %v6066_v8 = vunpack.c.h.bf16 %v6532_v2  ;;  %v750_v9 = vsel %vm686_vm0, %v579_v60, 0.0  ;;  %v455_v10 = vmul.f32 %v327_v0, %v327_v0 }
  0x31   : > { %v329_v11 = vmax.f32 %v6062_v1, 1e-06  ;;  %v6065_v12 = vunpack.c.l.bf16 %v6532_v2  ;;  %v747_v14 = vsel %vm686_vm0, %v578_v63, 0.0  ;;  %v580_v15 = vmul.f32 %v452_v4, %v324_v57  ;;  %v6537_v57 = vld [vmem:[%s7361_s7 + $0x818] sm:$0xff]  }
  0x32   : > { %v454_v16 = vmul.f32 %v326_v5, %v326_v5  ;;  %v328_v17 = vmax.f32 %v6061_v6, 1e-06  ;;  %v331_v18 = vmax.f32 %v6066_v8, 1e-06  ;;  %v6070_v19 = vunpack.c.h.bf16 %v6533_v13  ;;  %v6538_v8 = vld [vmem:[%s7361_s7 + $0x820] sm:$0xff]  }
  0x33   : > { %727 = vadd.xlane.f32.xlu1 %v726_v29  ;;  %724 = vadd.xlane.f32.xlu0 %v723_v34  ;;  %v756_v20 = vsel %vm686_vm0, %v581_v7, 0.0  ;;  %v583_v21 = vmul.f32 %v455_v10, %v327_v0  ;;  %v457_v22 = vmul.f32 %v329_v11, %v329_v11  ;;  %v330_v23 = vmax.f32 %v6065_v12, 1e-06 }
  0x34   : > { %v753_v24 = vsel %vm686_vm0, %v580_v15, 0.0  ;;  %v582_v25 = vmul.f32 %v454_v16, %v326_v5  ;;  %v456_v26 = vmul.f32 %v328_v17, %v328_v17  ;;  %v6069_v27 = vunpack.c.l.bf16 %v6533_v13 }
  0x35   : > { %v459_v29 = vmul.f32 %v331_v18, %v331_v18  ;;  %v333_v30 = vmax.f32 %v6070_v19, 1e-06  ;;  %v762_v31 = vsel %vm686_vm0, %v583_v21, 0.0  ;;  %v585_v32 = vmul.f32 %v457_v22, %v329_v11  ;;  %v6539_v19 = vld [vmem:[%s7361_s7 + $0x828] sm:$0xff]  }
  0x36   : > { %v458_v33 = vmul.f32 %v330_v23, %v330_v23  ;;  %v6074_v34 = vunpack.c.h.bf16 %v6534_v28  ;;  %v759_v35 = vsel %vm686_vm0, %v582_v25, 0.0  ;;  %v584_v36 = vmul.f32 %v456_v26, %v328_v17  ;;  %v6540_v26 = vld [vmem:[%s7361_s7 + $0x830] sm:$0xff]  }
  0x37   : > { %733 = vadd.xlane.f32.xlu1 %v732_v40  ;;  %730 = vadd.xlane.f32.xlu0 %v729_v44  ;;  %v332_v37 = vmax.f32 %v6069_v27, 1e-06  ;;  %v6073_v38 = vunpack.c.l.bf16 %v6534_v28  ;;  %v587_v40 = vmul.f32 %v459_v29, %v331_v18  ;;  %v461_v41 = vmul.f32 %v333_v30, %v333_v30 }
  0x38   : > { %v768_v42 = vsel %vm686_vm0, %v585_v32, 0.0  ;;  %v586_v43 = vmul.f32 %v458_v33, %v330_v23  ;;  %v335_v44 = vmax.f32 %v6074_v34, 1e-06  ;;  %v6078_v45 = vunpack.c.h.bf16 %v6535_v39 }
  0x39   : > { %v765_v47 = vsel %vm686_vm0, %v584_v36, 0.0  ;;  %v460_v48 = vmul.f32 %v332_v37, %v332_v37  ;;  %v334_v49 = vmax.f32 %v6073_v38, 1e-06  ;;  %v6077_v50 = vunpack.c.l.bf16 %v6535_v39 }
  0x3a   : > { %v6082_v52 = vunpack.c.h.bf16 %v6536_v46  ;;  %v774_v53 = vsel %vm686_vm0, %v587_v40, 0.0  ;;  %v463_v54 = vmul.f32 %v335_v44, %v335_v44  ;;  %v6081_v56 = vunpack.c.l.bf16 %v6536_v46 }
  0x3b   : > { %739 = vadd.xlane.f32.xlu1 %v738_v51  ;;  %736 = vadd.xlane.f32.xlu0 %v735_v55  ;;  %v589_v51 = vmul.f32 %v461_v41, %v333_v30  ;;  %v337_v55 = vmax.f32 %v6078_v45, 1e-06  ;;  %v771_v58 = vsel %vm686_vm0, %v586_v43, 0.0  ;;  %v588_v59 = vmul.f32 %v460_v48, %v332_v37  ;;  %v6541_v37 = vld [vmem:[%s7361_s7 + $0x838] sm:$0xff]  }
  0x3c   : > { %v462_v60 = vmul.f32 %v334_v49, %v334_v49  ;;  %v336_v61 = vmax.f32 %v6077_v50, 1e-06  ;;  %v6086_v63 = vunpack.c.h.bf16 %v6537_v57  ;;  %v591_v1 = vmul.f32 %v463_v54, %v335_v44 }
  0x3d   : > { %v780_v0 = vsel %vm686_vm0, %v589_v51, 0.0  ;;  %v465_v2 = vmul.f32 %v337_v55, %v337_v55  ;;  %v777_v4 = vsel %vm686_vm0, %v588_v59, 0.0  ;;  %v6085_v7 = vunpack.c.l.bf16 %v6537_v57 }
  0x3e   : > { %v590_v5 = vmul.f32 %v462_v60, %v334_v49  ;;  %v464_v6 = vmul.f32 %v336_v61, %v336_v61  ;;  %v341_v10 = vmax.f32 %v6086_v63, 1e-06  ;;  %v786_v11 = vsel %vm686_vm0, %v591_v1, 0.0  ;;  %v6543_v63 = vld [vmem:[%s7361_s7 + $0xc08] sm:$0xff]  }
  0x3f   : > { %745 = vadd.xlane.f32.xlu1 %v744_v62  ;;  %742 = vadd.xlane.f32.xlu0 %v741_v3  ;;  %v339_v62 = vmax.f32 %v6082_v52, 1e-06  ;;  %v338_v3 = vmax.f32 %v6081_v56, 1e-06  ;;  %v593_v12 = vmul.f32 %v465_v2, %v337_v55  ;;  %v340_v17 = vmax.f32 %v6085_v7, 1e-06 }
  0x40   : > { %v783_v15 = vsel %vm686_vm0, %v590_v5, 0.0  ;;  %v592_v16 = vmul.f32 %v464_v6, %v336_v61  ;;  %v6089_v18 = vunpack.c.l.bf16 %v6538_v8  ;;  %v469_v21 = vmul.f32 %v341_v10, %v341_v10  ;;  %v6542_v52 = vld [vmem:[%s7361_s7 + $0xc00] sm:$0xff]   ;;  %v6544_v6 = vld [vmem:[%s7361_s7 + $0xc10] sm:$0xff]  }
  0x41   : > { %v466_v13 = vmul.f32 %v338_v3, %v338_v3  ;;  %v792_v22 = vsel %vm686_vm0, %v593_v12, 0.0  ;;  %v6094_v25 = vunpack.c.h.bf16 %v6539_v19  ;;  %v468_v28 = vmul.f32 %v340_v17, %v340_v17 }
  0x42   : > { %v789_v27 = vsel %vm686_vm0, %v592_v16, 0.0  ;;  %v342_v29 = vmax.f32 %v6089_v18, 1e-06  ;;  %v6093_v30 = vunpack.c.l.bf16 %v6539_v19  ;;  %v6098_v32 = vunpack.c.h.bf16 %v6540_v26 }
  0x43   : > { %751 = vadd.xlane.f32.xlu1 %v750_v9  ;;  %748 = vadd.xlane.f32.xlu0 %v747_v14  ;;  %v467_v9 = vmul.f32 %v339_v62, %v339_v62  ;;  %v6090_v14 = vunpack.c.h.bf16 %v6538_v8  ;;  %v594_v23 = vmul.f32 %v466_v13, %v338_v3  ;;  %v6097_v36 = vunpack.c.l.bf16 %v6540_v26 }
  0x44   : > { %v596_v39 = vmul.f32 %v468_v28, %v340_v17  ;;  %v470_v40 = vmul.f32 %v342_v29, %v342_v29  ;;  %v344_v41 = vmax.f32 %v6093_v30, 1e-06  ;;  %v6102_v43 = vunpack.c.h.bf16 %v6541_v37  ;;  %v6545_v17 = vld [vmem:[%s7361_s7 + $0xc18] sm:$0xff]  }
  0x45   : > { %v795_v38 = vsel %vm686_vm0, %v594_v23, 0.0  ;;  %v6101_v51 = vunpack.c.l.bf16 %v6541_v37  ;;  %v6110_v5 = vunpack.c.h.bf16 %v6543_v63  ;;  %v6114_v12 = vunpack.c.h.bf16 %v6544_v6 }
  0x46   : > { %v801_v48 = vsel %vm686_vm0, %v596_v39, 0.0  ;;  %v598_v49 = vmul.f32 %v470_v40, %v342_v29  ;;  %v472_v50 = vmul.f32 %v344_v41, %v344_v41  ;;  %v349_v54 = vmax.f32 %v6102_v43, 1e-06  ;;  %v6547_v43 = vld [vmem:[%s7361_s7 + $0xc28] sm:$0xff]  }
  0x47   : > { %757 = vadd.xlane.f32.xlu1 %v756_v20  ;;  %754 = vadd.xlane.f32.xlu0 %v753_v24  ;;  %v595_v20 = vmul.f32 %v467_v9, %v339_v62  ;;  %v343_v24 = vmax.f32 %v6090_v14, 1e-06  ;;  %v348_v61 = vmax.f32 %v6101_v51, 1e-06  ;;  %v6105_v62 = vunpack.c.l.bf16 %v6542_v52 }
  0x48   : > { %v807_v59 = vsel %vm686_vm0, %v598_v49, 0.0  ;;  %v600_v60 = vmul.f32 %v472_v50, %v344_v41  ;;  %v477_v1 = vmul.f32 %v349_v54, %v349_v54  ;;  %v6113_v16 = vunpack.c.l.bf16 %v6544_v6  ;;  %v6548_v50 = vld [vmem:[%s7361_s7 + $0xc30] sm:$0xff]  }
  0x49   : > { %v798_v33 = vsel %vm686_vm0, %v595_v20, 0.0  ;;  %v471_v34 = vmul.f32 %v343_v24, %v343_v24  ;;  %v476_v8 = vmul.f32 %v348_v61, %v348_v61  ;;  %v350_v9 = vmax.f32 %v6105_v62, 1e-06 }
  0x4a   : > { %v813_v7 = vsel %vm686_vm0, %v600_v60, 0.0  ;;  %v6118_v23 = vunpack.c.h.bf16 %v6545_v17  ;;  %v354_v26 = vmax.f32 %v6113_v16, 1e-06  ;;  %v6126_v49 = vunpack.c.h.bf16 %v6547_v43 }
  0x4b   : > { %763 = vadd.xlane.f32.xlu1 %v762_v31  ;;  %760 = vadd.xlane.f32.xlu0 %v759_v35  ;;  %v597_v31 = vmul.f32 %v469_v21, %v341_v10  ;;  %v345_v35 = vmax.f32 %v6094_v25, 1e-06  ;;  %v599_v45 = vmul.f32 %v471_v34, %v343_v24  ;;  %v6109_v10 = vunpack.c.l.bf16 %v6543_v63 }
  0x4c   : > { %v604_v19 = vmul.f32 %v476_v8, %v348_v61  ;;  %v478_v20 = vmul.f32 %v350_v9, %v350_v9  ;;  %v357_v34 = vmax.f32 %v6118_v23, 1e-06  ;;  %v482_v37 = vmul.f32 %v354_v26, %v354_v26  ;;  %v6549_v61 = vld [vmem:[%s7361_s7 + $0xc38] sm:$0xff]  }
  0x4d   : > { %v804_v44 = vsel %vm686_vm0, %v597_v31, 0.0  ;;  %v473_v46 = vmul.f32 %v345_v35, %v345_v35  ;;  %v810_v55 = vsel %vm686_vm0, %v599_v45, 0.0  ;;  %v352_v21 = vmax.f32 %v6109_v10, 1e-06 }
  0x4e   : > { %v825_v29 = vsel %vm686_vm0, %v604_v19, 0.0  ;;  %v606_v30 = vmul.f32 %v478_v20, %v350_v9  ;;  %v485_v45 = vmul.f32 %v357_v34, %v357_v34  ;;  %v6129_v60 = vunpack.c.l.bf16 %v6548_v50  ;;  %v6552_v20 = vld [vmem:[%s7361_s7 + $0x1010] sm:$0xff]  }
  0x4f   : > { %769 = vadd.xlane.f32.xlu1 %v768_v42  ;;  %766 = vadd.xlane.f32.xlu0 %v765_v47  ;;  %v347_v42 = vmax.f32 %v6098_v32, 1e-06  ;;  %v346_v47 = vmax.f32 %v6097_v36, 1e-06  ;;  %v601_v56 = vmul.f32 %v473_v46, %v345_v35  ;;  %v480_v31 = vmul.f32 %v352_v21, %v352_v21  ;;  %v6546_v32 = vld [vmem:[%s7361_s7 + $0xc20] sm:$0xff]  }
  0x50   : > { %v831_v39 = vsel %vm686_vm0, %v606_v30, 0.0  ;;  %v6122_v41 = vunpack.c.h.bf16 %v6546_v32  ;;  %v6146_v30 = vunpack.c.h.bf16 %v6552_v20 }
  0x51   : > { %v474_v57 = vmul.f32 %v346_v47, %v346_v47  ;;  %v816_v2 = vsel %vm686_vm0, %v601_v56, 0.0  ;;  %v608_v40 = vmul.f32 %v480_v31, %v352_v21  ;;  %v6130_v56 = vunpack.c.h.bf16 %v6548_v50 }
  0x53   : > { %775 = vadd.xlane.f32.xlu1 %v774_v53  ;;  %772 = vadd.xlane.f32.xlu0 %v771_v58  ;;  %v475_v53 = vmul.f32 %v347_v42, %v347_v42  ;;  %v6106_v58 = vunpack.c.h.bf16 %v6542_v52  ;;  %v602_v3 = vmul.f32 %v474_v57, %v346_v47  ;;  %v610_v47 = vmul.f32 %v482_v37, %v354_v26  ;;  %v6553_v26 = vld [vmem:[%s7361_s7 + $0x1018] sm:$0xff]  }
  0x54   : > { %v837_v51 = vsel %vm686_vm0, %v608_v40, 0.0  ;;  %v359_v52 = vmax.f32 %v6122_v41, 1e-06  ;;  %v6145_v37 = vunpack.c.l.bf16 %v6552_v20  ;;  %v371_v41 = vmax.f32 %v6146_v30, 1e-06 }
  0x55   : > { %v819_v18 = vsel %vm686_vm0, %v602_v3, 0.0  ;;  %v843_v62 = vsel %vm686_vm0, %v610_v47, 0.0  ;;  %v6134_v3 = vunpack.c.h.bf16 %v6549_v61 }
  0x56   : > { %v487_v63 = vmul.f32 %v359_v52, %v359_v52 }
  0x57   : > { %781 = vadd.xlane.f32.xlu1 %v780_v0  ;;  %778 = vadd.xlane.f32.xlu0 %v777_v4  ;;  %v603_v0 = vmul.f32 %v475_v53, %v347_v42  ;;  %v351_v4 = vmax.f32 %v6106_v58, 1e-06  ;;  %v6121_v42 = vunpack.c.l.bf16 %v6546_v32 }
  0x58   : > { %v615_v8 = vmul.f32 %v487_v63, %v359_v52  ;;  %v1327_v63 = vlaneseq }
  0x59   : > { %v822_v13 = vsel %vm686_vm0, %v603_v0, 0.0  ;;  %v479_v14 = vmul.f32 %v351_v4, %v351_v4  ;;  %v358_v53 = vmax.f32 %v6121_v42, 1e-06  ;;  %v6149_v42 = vunpack.c.l.bf16 %v6553_v26 }
  0x5a   : > { %v858_v21 = vsel %vm686_vm0, %v615_v8, 0.0 }
  0x5b   : > { %787 = vadd.xlane.f32.xlu1 %v786_v11  ;;  %784 = vadd.xlane.f32.xlu0 %v783_v15  ;;  %v605_v11 = vmul.f32 %v477_v1, %v349_v54  ;;  %v353_v15 = vmax.f32 %v6110_v5, 1e-06  ;;  %v607_v24 = vmul.f32 %v479_v14, %v351_v4  ;;  %v6125_v54 = vunpack.c.l.bf16 %v6547_v43 }
  0x5c   : > { %v486_v0 = vmul.f32 %v358_v53, %v358_v53  ;;  %v365_v14 = vmax.f32 %v6134_v3, 1e-06 }
  0x5d   : > { %v481_v25 = vmul.f32 %v353_v15, %v353_v15  ;;  %v828_v28 = vsel %vm686_vm0, %v605_v11, 0.0  ;;  %v834_v35 = vsel %vm686_vm0, %v607_v24, 0.0  ;;  %v360_v1 = vmax.f32 %v6125_v54, 1e-06 }
  0x5e   : > { %v614_v9 = vmul.f32 %v486_v0, %v358_v53  ;;  %v6133_v11 = vunpack.c.l.bf16 %v6549_v61  ;;  %v499_v54 = vmul.f32 %v371_v41, %v371_v41 }
  0x5f   : > { %793 = vadd.xlane.f32.xlu1 %v792_v22  ;;  %790 = vadd.xlane.f32.xlu0 %v789_v27  ;;  %v355_v22 = vmax.f32 %v6114_v12, 1e-06  ;;  %v6117_v27 = vunpack.c.l.bf16 %v6545_v17  ;;  %v609_v36 = vmul.f32 %v481_v25, %v353_v15  ;;  %v488_v10 = vmul.f32 %v360_v1, %v360_v1  ;;  %v6550_v12 = vld [vmem:[%s7361_s7 + $0x1000] sm:$0xff]   ;;  %v6551_v15 = vld [vmem:[%s7361_s7 + $0x1008] sm:$0xff]  }
  0x60   : > { %v6137_v19 = vunpack.c.l.bf16 %v6550_v12  ;;  %v364_v24 = vmax.f32 %v6133_v11, 1e-06  ;;  %v6142_v25 = vunpack.c.h.bf16 %v6551_v15  ;;  %v627_v3 = vmul.f32 %v499_v54, %v371_v41 }
  0x61   : > { %v840_v46 = vsel %vm686_vm0, %v609_v36, 0.0  ;;  %v616_v23 = vmul.f32 %v488_v10, %v360_v1  ;;  %v6555_v1 = vld [vmem:[%s7361_s7 + $0x1028] sm:$0xff]  }
  0x62   : > { %v492_v36 = vmul.f32 %v364_v24, %v364_v24 }
  0x63   : > { %799 = vadd.xlane.f32.xlu1 %v798_v33  ;;  %796 = vadd.xlane.f32.xlu0 %v795_v38  ;;  %v483_v33 = vmul.f32 %v355_v22, %v355_v22  ;;  %v356_v38 = vmax.f32 %v6117_v27, 1e-06 }
  0x67   : > { %805 = vadd.xlane.f32.xlu1 %v804_v44  ;;  %802 = vadd.xlane.f32.xlu0 %v801_v48  ;;  %v611_v44 = vmul.f32 %v483_v33, %v355_v22  ;;  %v484_v48 = vmul.f32 %v356_v38, %v356_v38  ;;  %v855_v22 = vsel %vm686_vm0, %v614_v9, 0.0 }
  0x69   : > { %v846_v57 = vsel %vm686_vm0, %v611_v44, 0.0  ;;  %v612_v58 = vmul.f32 %v484_v48, %v356_v38  ;;  %v6150_v38 = vunpack.c.h.bf16 %v6553_v26  ;;  %v620_v48 = vmul.f32 %v492_v36, %v364_v24  ;;  %v6558_v26 = vld [vmem:[%s7361_s7 + $0x1400] sm:$0xff]  }
  0x6b   : > { %811 = vadd.xlane.f32.xlu1 %v810_v55  ;;  %808 = vadd.xlane.f32.xlu0 %v807_v59  ;;  %v613_v55 = vmul.f32 %v485_v45, %v357_v34  ;;  %v361_v59 = vmax.f32 %v6126_v49, 1e-06  ;;  %v849_v5 = vsel %vm686_vm0, %v612_v58, 0.0  ;;  %v366_v34 = vmax.f32 %v6137_v19, 1e-06 }
  0x6c   : > { %v370_v49 = vmax.f32 %v6145_v37, 1e-06  ;;  %v373_v50 = vmax.f32 %v6150_v38, 1e-06  ;;  %v894_v19 = vsel %vm686_vm0, %v627_v3, 0.0  ;;  %v6170_v38 = vunpack.c.h.bf16 %v6558_v26 }
  0x6d   : > { %v852_v4 = vsel %vm686_vm0, %v613_v55, 0.0  ;;  %v489_v6 = vmul.f32 %v361_v59, %v361_v59  ;;  %v372_v55 = vmax.f32 %v6149_v42, 1e-06 }
  0x6e   : > { %v498_v61 = vmul.f32 %v370_v49, %v370_v49  ;;  %v383_v54 = vmax.f32 %v6170_v38, 1e-06 }
  0x6f   : > { %817 = vadd.xlane.f32.xlu1 %v816_v2  ;;  %814 = vadd.xlane.f32.xlu0 %v813_v7  ;;  %v363_v2 = vmax.f32 %v6130_v56, 1e-06  ;;  %v362_v7 = vmax.f32 %v6129_v60, 1e-06  ;;  %v617_v16 = vmul.f32 %v489_v6, %v361_v59  ;;  %v873_v60 = vsel %vm686_vm0, %v620_v48, 0.0  ;;  %v6556_v6 = vld [vmem:[%s7361_s7 + $0x1030] sm:$0xff]  }
  0x70   : > { %v626_v10 = vmul.f32 %v498_v61, %v370_v49  ;;  %v6161_v24 = vunpack.c.l.bf16 %v6556_v6 }
  0x71   : > { %v490_v17 = vmul.f32 %v362_v7, %v362_v7  ;;  %v864_v31 = vsel %vm686_vm0, %v617_v16, 0.0  ;;  %v6157_v16 = vunpack.c.l.bf16 %v6555_v1 }
  0x72   : > { %v378_v41 = vmax.f32 %v6161_v24, 1e-06 }
  0x73   : > { %823 = vadd.xlane.f32.xlu1 %v822_v13  ;;  %820 = vadd.xlane.f32.xlu0 %v819_v18  ;;  %v491_v13 = vmul.f32 %v363_v2, %v363_v2  ;;  %v6138_v18 = vunpack.c.h.bf16 %v6550_v12  ;;  %v618_v32 = vmul.f32 %v490_v17, %v362_v7  ;;  %v7468_v12 = vand.u32 127, %v1327_v63 }
  0x74   : > { %v6162_v17 = vunpack.c.h.bf16 %v6556_v6 }
  0x75   : > { %v619_v27 = vmul.f32 %v491_v13, %v363_v2  ;;  %v367_v33 = vmax.f32 %v6138_v18, 1e-06  ;;  %v867_v47 = vsel %vm686_vm0, %v618_v32, 0.0  ;;  %v6158_v13 = vunpack.c.h.bf16 %v6555_v1 }
  0x76   : > { %v376_v32 = vmax.f32 %v6157_v16, 1e-06  ;;  %v1333_v37 = vadd.s32 4294967288, %v7468_v12  ;;  %v1389_v6 = vadd.s32 4294967224, %v7468_v12  ;;  %v1417_v38 = vadd.s32 4294967192, %v7468_v12 }
  0x77   : > { %829 = vadd.xlane.f32.xlu1 %v828_v28  ;;  %826 = vadd.xlane.f32.xlu0 %v825_v29  ;;  %v493_v28 = vmul.f32 %v365_v14, %v365_v14  ;;  %v6141_v29 = vunpack.c.l.bf16 %v6551_v15  ;;  %v870_v43 = vsel %vm686_vm0, %v619_v27, 0.0  ;;  %v495_v45 = vmul.f32 %v367_v33, %v367_v33 }
  0x78   : > { %v891_v27 = vsel %vm686_vm0, %v626_v10, 0.0  ;;  %v377_v30 = vmax.f32 %v6158_v13, 1e-06  ;;  %v1382_v13 = vadd.s32 4294967232, %v7468_v12 }
  0x79   : > { %v368_v40 = vmax.f32 %v6141_v29, 1e-06  ;;  %v621_v44 = vmul.f32 %v493_v28, %v365_v14  ;;  %v6557_v14 = vld [vmem:[%s7361_s7 + $0x1038] sm:$0xff]   ;;  %v1340_v29 = vadd.s32 4294967280, %v7468_v12 }
  0x7b   : > { %835 = vadd.xlane.f32.xlu1 %v834_v35  ;;  %832 = vadd.xlane.f32.xlu0 %v831_v39  ;;  %v861_v35 = vsel %vm686_vm0, %v616_v23, 0.0  ;;  %v369_v39 = vmax.f32 %v6142_v25, 1e-06  ;;  %v496_v53 = vmul.f32 %v368_v40, %v368_v40  ;;  %v876_v56 = vsel %vm686_vm0, %v621_v44, 0.0 }
  0x7c   : > { %v6166_v25 = vunpack.c.h.bf16 %v6557_v14  ;;  %v505_v44 = vmul.f32 %v377_v30, %v377_v30 }
  0x7d   : > { %v497_v52 = vmul.f32 %v369_v39, %v369_v39  ;;  %v624_v2 = vmul.f32 %v496_v53, %v368_v40 }
  0x7e   : > { %v381_v42 = vmax.f32 %v6166_v25, 1e-06 }
  0x7f   : > { %841 = vadd.xlane.f32.xlu1 %v840_v46  ;;  %838 = vadd.xlane.f32.xlu0 %v837_v51  ;;  %v494_v46 = vmul.f32 %v366_v34, %v366_v34  ;;  %v6554_v51 = vld [vmem:[%s7361_s7 + $0x1020] sm:$0xff]   ;;  %v625_v0 = vmul.f32 %v497_v52, %v369_v39  ;;  %v885_v18 = vsel %vm686_vm0, %v624_v2, 0.0 }
  0x80   : > { %v6154_v59 = vunpack.c.h.bf16 %v6554_v51 }
  0x81   : > { %v622_v58 = vmul.f32 %v494_v46, %v366_v34  ;;  %v888_v15 = vsel %vm686_vm0, %v625_v0, 0.0  ;;  %v6165_v34 = vunpack.c.l.bf16 %v6557_v14  ;;  %v1354_v46 = vadd.s32 4294967264, %v7468_v12 }
  0x82   : > { %v375_v9 = vmax.f32 %v6154_v59, 1e-06  ;;  %v7501_v59 = vld [vmem:[%s7361_s7 + $0x1800] sm:$0xff]  }
  0x83   : > { %847 = vadd.xlane.f32.xlu1 %v846_v57  ;;  %844 = vadd.xlane.f32.xlu0 %v843_v62  ;;  %v623_v57 = vmul.f32 %v495_v45, %v367_v33  ;;  %v501_v62 = vmul.f32 %v373_v50, %v373_v50  ;;  %v879_v8 = vsel %vm686_vm0, %v622_v58, 0.0  ;;  %v379_v33 = vmax.f32 %v6162_v17, 1e-06 }
  0x84   : > { %v503_v23 = vmul.f32 %v375_v9, %v375_v9  ;;  %v1361_v45 = vadd.s32 4294967256, %v7468_v12  ;;  %v380_v49 = vmax.f32 %v6165_v34, 1e-06  ;;  %v509_v58 = vmul.f32 %v381_v42, %v381_v42 }
  0x85   : > { %v882_v7 = vsel %vm686_vm0, %v623_v57, 0.0  ;;  %v629_v11 = vmul.f32 %v501_v62, %v373_v50  ;;  %v507_v48 = vmul.f32 %v379_v33, %v379_v33  ;;  %v6169_v50 = vunpack.c.l.bf16 %v6558_v26 }
  0x86   : > { %v631_v40 = vmul.f32 %v503_v23, %v375_v9  ;;  %v1375_v57 = vadd.s32 4294967240, %v7468_v12  ;;  %v508_v2 = vmul.f32 %v380_v49, %v380_v49 }
  0x87   : > { %853 = vadd.xlane.f32.xlu1 %v852_v4  ;;  %850 = vadd.xlane.f32.xlu0 %v849_v5  ;;  %v500_v4 = vmul.f32 %v372_v55, %v372_v55  ;;  %v6153_v5 = vunpack.c.l.bf16 %v6554_v51  ;;  %v900_v28 = vsel %vm686_vm0, %v629_v11, 0.0  ;;  %v635_v1 = vmul.f32 %v507_v48, %v379_v33 }
  0x88   : > { %v382_v3 = vmax.f32 %v6169_v50, 1e-06  ;;  %v637_v11 = vmul.f32 %v509_v58, %v381_v42  ;;  %v636_v23 = vmul.f32 %v508_v2, %v380_v49  ;;  %v1410_v48 = vadd.s32 4294967200, %v7468_v12 }
  0x89   : > { %v628_v20 = vmul.f32 %v500_v4, %v372_v55  ;;  %v906_v55 = vsel %vm686_vm0, %v631_v40, 0.0  ;;  %v7511_v4 = vld [vmem:[%s7361_s7 + $0x1408] sm:$0xff]  }
  0x8a   : > { %v510_v24 = vmul.f32 %v382_v3, %v382_v3  ;;  %v921_v42 = vsel %vm686_vm0, %v636_v23, 0.0  ;;  %v1431_v23 = vadd.s32 4294967176, %v7468_v12 }
  0x8b   : > { %859 = vadd.xlane.f32.xlu1 %v858_v21  ;;  %856 = vadd.xlane.f32.xlu0 %v855_v22  ;;  %v374_v21 = vmax.f32 %v6153_v5, 1e-06  ;;  %v7474_v22 = vshrl.u32 %v1327_v63, 7  ;;  %v1368_v63 = vadd.s32 4294967248, %v7468_v12 }
  0x8d   : > { %v502_v36 = vmul.f32 %v374_v21, %v374_v21  ;;  %v7485_v39 = vsub.s32 %v7468_v12, %v7474_v22  ;;  %v7496_v53 = vsub.s32 %v1333_v37, %v7474_v22  ;;  %v7504_v61 = vsub.s32 %v1361_v45, %v7474_v22 }
  0x8e   : > { %v7507_v62 = vsub.s32 %v1354_v46, %v7474_v22  ;;  %v7517_v10 = vsub.s32 %v1375_v57, %v7474_v22  ;;  %v7522_v17 = vsub.s32 %v1368_v63, %v7474_v22  ;;  %v7529_v25 = vsub.s32 %v1389_v6, %v7474_v22 }
  0x8f   : > { %865 = vadd.xlane.f32.xlu1 %v864_v31  ;;  %862 = vadd.xlane.f32.xlu0 %v861_v35  ;;  %v1347_v31 = vadd.s32 4294967272, %v7468_v12  ;;  %v897_v35 = vsel %vm686_vm0, %v628_v20, 0.0  ;;  %v630_v51 = vmul.f32 %v502_v36, %v374_v21  ;;  %v918_v21 = vsel %vm686_vm0, %v635_v1, 0.0 }
  0x90   : > { %v7560_v63 = vsub.s32 %v1417_v38, %v7474_v22 }
  0x91   : > { %v7493_v52 = vsub.s32 %v1347_v31, %v7474_v22  ;;  %v903_v5 = vsel %vm686_vm0, %v630_v51, 0.0  ;;  %v7534_v31 = vsel %vm686_vm0, %v637_v11, 0.0 }
  0x93   : > { %871 = vadd.xlane.f32.xlu1 %v870_v43  ;;  %868 = vadd.xlane.f32.xlu0 %v867_v47  ;;  %v7488_v43 = vsub.s32 %v1340_v29, %v7474_v22  ;;  %v504_v47 = vmul.f32 %v376_v32, %v376_v32 }
  0x95   : > { %v632_v0 = vmul.f32 %v504_v47, %v376_v32  ;;  %v7537_v32 = vsub.s32 %v1382_v13, %v7474_v22 }
  0x97   : > { %877 = vadd.xlane.f32.xlu1 %v876_v56  ;;  %874 = vadd.xlane.f32.xlu0 %v873_v60  ;;  %v506_v56 = vmul.f32 %v378_v41, %v378_v41  ;;  %v633_v60 = vmul.f32 %v505_v44, %v377_v30  ;;  %v909_v20 = vsel %vm686_vm0, %v632_v0, 0.0  ;;  %v638_v44 = vmul.f32 %v510_v24, %v382_v3 }
  0x98   : > { %v6202_v0 = vunpack.c.h.bf16 %v7501_v59 }
  0x99   : > { %v634_v9 = vmul.f32 %v506_v56, %v378_v41  ;;  %v912_v16 = vsel %vm686_vm0, %v633_v60, 0.0 }
  0x9b   : > { %883 = vadd.xlane.f32.xlu1 %v882_v7  ;;  %880 = vadd.xlane.f32.xlu0 %v879_v8  ;;  %v511_v7 = vmul.f32 %v383_v54, %v383_v54  ;;  %v6201_v8 = vunpack.c.l.bf16 %v7501_v59  ;;  %v915_v30 = vsel %vm686_vm0, %v634_v9, 0.0 }
  0x9d   : > { %v639_v26 = vmul.f32 %v511_v7, %v383_v54  ;;  %v6174_v54 = vunpack.c.h.bf16 %v7511_v4 }
  0x9f   : > { %889 = vadd.xlane.f32.xlu1 %v888_v15  ;;  %886 = vadd.xlane.f32.xlu0 %v885_v18  ;;  %v1403_v18 = vadd.s32 4294967208, %v7468_v12  ;;  %v7545_v45 = vsel %vm686_vm0, %v639_v26, 0.0 }
  0xa1   : > { %v7540_v36 = vsub.s32 %v1403_v18, %v7474_v22 }
  0xa3   : > { %895 = vadd.xlane.f32.xlu1 %v894_v19  ;;  %892 = vadd.xlane.f32.xlu0 %v891_v27  ;;  %v6173_v19 = vunpack.c.l.bf16 %v7511_v4  ;;  %v1396_v27 = vadd.s32 4294967216, %v7468_v12  ;;  %v7566_v4 = vld [vmem:[%s7361_s7 + $0x1808] sm:$0xff]  }
  0xa4   : > { %v6205_v24 = vunpack.c.l.bf16 %v7566_v4 }
  0xa5   : > { %v384_v37 = vmax.f32 %v6173_v19, 1e-06  ;;  %v7548_v46 = vsub.s32 %v1396_v27, %v7474_v22 }
  0xa7   : > { %901 = vadd.xlane.f32.xlu1 %v900_v28  ;;  %898 = vadd.xlane.f32.xlu0 %v897_v35  ;;  %v398_v28 = vmax.f32 %v6201_v8, 1e-06  ;;  %v512_v60 = vmul.f32 %v384_v37, %v384_v37  ;;  %v7570_v8 = vsub.s32 %v1410_v48, %v7474_v22  ;;  %v7594_v48 = vsub.s32 %v1431_v23, %v7474_v22 }
  0xa8   : > { %v695_v14 = vpop.xlane.xlu1 %694  ;;  %v689_v15 = vpop.xlane.xlu0 %688 }
  0xa9   : > { %v1071_v29 = vmul.f32 0.020408163, %v689_v15  ;;  %v1073_v33 = vmul.f32 0.020408163, %v695_v14  ;;  %v526_v47 = vmul.f32 %v398_v28, %v398_v28  ;;  %v385_v14 = vmax.f32 %v6174_v54, 1e-06 }
  0xaa   : > { %v7577_v15 = vld [vmem:[%s7361_s7 + $0x1410] sm:$0xff]   ;;  %v640_v19 = vmul.f32 %v512_v60, %v384_v37 }
  0xab   : > { %907 = vadd.xlane.f32.xlu1 %v906_v55  ;;  %904 = vadd.xlane.f32.xlu0 %v903_v5  ;;  %v1332_v49 = vrot.slane %v1071_v29, %v7485_v39  ;;  %v7556_v55 = vld [vmem:[%s7361_s7 + $0x1c00] sm:$0xff]   ;;  %v1344_v56 = vrot.slane %v1073_v33, %v7488_v43  ;;  %v927_v5 = vsel %vm686_vm0, %v638_v44, 0.0  ;;  %v654_v7 = vmul.f32 %v526_v47, %v398_v28  ;;  %v7602_v60 = vld [vmem:[%s7361_s7 + $0x1810] sm:$0xff]  }
  0xac   : > { %v698_v34 = vpop.xlane.xlu1 %697  ;;  %v692_v35 = vpop.xlane.xlu0 %691  ;;  %v6233_v9 = vunpack.c.l.bf16 %v7556_v55  ;;  %v1424_v29 = vadd.s32 4294967184, %v7468_v12  ;;  %v6234_v12 = vunpack.c.h.bf16 %v7556_v55 }
  0xad   : > { %v1074_v40 = vmul.f32 0.020408163, %v698_v34  ;;  %v1072_v41 = vmul.f32 0.020408163, %v692_v35  ;;  %v975_v33 = vsel %vm686_vm0, %v654_v7, 0.0  ;;  %v6177_v35 = vunpack.c.l.bf16 %v7577_v15 }
  0xae   : > { %v414_v34 = vmax.f32 %v6233_v9, 1e-06 }
  0xaf   : > { %v1351_v50 = vrot.slane %v1074_v40, %v7493_v52  ;;  %v1337_v51 = vrot.slane %v1072_v41, %v7496_v53  ;;  %913 = vadd.xlane.f32.xlu1 %v912_v16  ;;  %910 = vadd.xlane.f32.xlu0 %v909_v20  ;;  %v399_v20 = vmax.f32 %v6202_v0, 1e-06  ;;  %v513_v40 = vmul.f32 %v385_v14, %v385_v14 }
  0xb0   : > { %v704_v57 = vpop.xlane.xlu1 %703  ;;  %v701_v58 = vpop.xlane.xlu0 %700  ;;  %v542_v55 = vmul.f32 %v414_v34, %v414_v34 }
  0xb1   : > { %v1339_v1 = vsel %vm1338_vm1, %v1337_v51, %v1332_v49  ;;  %v1076_v2 = vmul.f32 0.020408163, %v704_v57  ;;  %v1075_v3 = vmul.f32 0.020408163, %v701_v58  ;;  %v527_v47 = vmul.f32 %v399_v20, %v399_v20 }
  0xb2   : > { %v1346_v6 = vsel %vm1345_vm2, %v1344_v56, %v1339_v1  ;;  %v400_v49 = vmax.f32 %v6205_v24, 1e-06  ;;  %v386_v57 = vmax.f32 %v6177_v35, 1e-06  ;;  %v6206_v58 = vunpack.c.h.bf16 %v7566_v4 }
  0xb3   : > { %v1365_v59 = vrot.slane %v1076_v2, %v7504_v61  ;;  %v1353_v11 = vsel %vm1352_vm3, %v1351_v50, %v1346_v6  ;;  %v1358_v13 = vrot.slane %v1075_v3, %v7507_v62  ;;  %919 = vadd.xlane.f32.xlu1 %v918_v21  ;;  %916 = vadd.xlane.f32.xlu0 %v915_v30  ;;  %v7584_v21 = vld [vmem:[%s7361_s7 + $0x1c08] sm:$0xff]   ;;  %v415_v3 = vmax.f32 %v6234_v12, 1e-06 }
  0xb4   : > { %v710_v16 = vpop.xlane.xlu1 %709  ;;  %v707_v18 = vpop.xlane.xlu0 %706  ;;  %v6237_v50 = vunpack.c.l.bf16 %v7584_v21  ;;  %v641_v2 = vmul.f32 %v513_v40, %v385_v14  ;;  %v655_v9 = vmul.f32 %v527_v47, %v399_v20  ;;  %v514_v14 = vmul.f32 %v386_v57, %v386_v57 }
  0xb5   : > { %v1360_v26 = vsel %vm1359_vm4, %v1358_v13, %v1353_v11  ;;  %v1078_v27 = vmul.f32 0.020408163, %v710_v16  ;;  %v1077_v28 = vmul.f32 0.020408163, %v707_v18  ;;  %v528_v11 = vmul.f32 %v400_v49, %v400_v49 }
  0xb6   : > { %v1367_v30 = vsel %vm1366_vm5, %v1365_v59, %v1360_v26  ;;  %v7608_v59 = vsub.s32 %v1424_v29, %v7474_v22  ;;  %v416_v4 = vmax.f32 %v6237_v50, 1e-06  ;;  %v401_v23 = vmax.f32 %v6206_v58, 1e-06 }
  0xb7   : > { %v1379_v37 = vrot.slane %v1078_v27, %v7517_v10  ;;  %v1372_v38 = vrot.slane %v1077_v28, %v7522_v17  ;;  %925 = vadd.xlane.f32.xlu1 %v7534_v31  ;;  %922 = vadd.xlane.f32.xlu0 %v921_v42  ;;  %v933_v31 = vsel %vm686_vm0, %v640_v19, 0.0  ;;  %v6209_v19 = vunpack.c.l.bf16 %v7602_v60  ;;  %v7617_v27 = vld [vmem:[%s7361_s7 + $0x1418] sm:$0xff]  }
  0xb8   : > { %v716_v41 = vpop.xlane.xlu1 %715  ;;  %v713_v44 = vpop.xlane.xlu0 %712  ;;  %v936_v24 = vsel %vm686_vm0, %v641_v2, 0.0  ;;  %v543_v26 = vmul.f32 %v415_v3, %v415_v3  ;;  %v656_v35 = vmul.f32 %v528_v11, %v400_v49  ;;  %v529_v47 = vmul.f32 %v401_v23, %v401_v23 }
  0xb9   : > { %v1374_v51 = vsel %vm1373_vm6, %v1372_v38, %v1367_v30  ;;  %v1080_v54 = vmul.f32 0.020408163, %v716_v41  ;;  %v1079_v56 = vmul.f32 0.020408163, %v713_v44  ;;  %v978_v30 = vsel %vm686_vm0, %v655_v9, 0.0  ;;  %v7634_v9 = vld [vmem:[%s7361_s7 + $0x1818] sm:$0xff]  }
  0xba   : > { %v1381_v42 = vsel %vm1380_vm7, %v1379_v37, %v1374_v51  ;;  %v6178_v37 = vunpack.c.h.bf16 %v7577_v15  ;;  %v402_v12 = vmax.f32 %v6209_v19, 1e-06  ;;  %v642_v44 = vmul.f32 %v514_v14, %v386_v57 }
  0xbb   : > { %v1393_v0 = vrot.slane %v1080_v54, %v7529_v25  ;;  %v1386_v1 = vrot.slane %v1079_v56, %v7537_v32  ;;  %931 = vadd.xlane.f32.xlu1 %v7545_v45  ;;  %928 = vadd.xlane.f32.xlu0 %v927_v5  ;;  %v670_v5 = vmul.f32 %v542_v55, %v414_v34  ;;  %v6181_v50 = vunpack.c.l.bf16 %v7617_v27  ;;  %v7628_v56 = vld [vmem:[%s7361_s7 + $0x1c10] sm:$0xff]  }
  0xbc   : > { %v722_v6 = vpop.xlane.xlu1 %721  ;;  %v719_v7 = vpop.xlane.xlu0 %718  ;;  %v544_v34 = vmul.f32 %v416_v4, %v416_v4  ;;  %v671_v49 = vmul.f32 %v543_v26, %v415_v3  ;;  %v981_v55 = vsel %vm686_vm0, %v656_v35, 0.0  ;;  %v387_v58 = vmax.f32 %v6178_v37, 1e-06  ;;  %v7651_v37 = vld [vmem:[%s7361_s7 + $0x1420] sm:$0xff]  }
  0xbd   : > { %v1388_v13 = vsel %vm1387_vm8, %v1386_v1, %v1381_v42  ;;  %v1082_v16 = vmul.f32 0.020408163, %v722_v6  ;;  %v1081_v18 = vmul.f32 0.020408163, %v719_v7  ;;  %v1023_v15 = vsel %vm686_vm0, %v670_v5, 0.0 }
  0xbe   : > { %v1395_v45 = vsel %vm9469_vm9, %v1393_v0, %v1388_v13  ;;  %v672_v57 = vmul.f32 %v544_v34, %v416_v4  ;;  %v6238_v0 = vunpack.c.h.bf16 %v7584_v21  ;;  %v530_v7 = vmul.f32 %v402_v12, %v402_v12 }
  0xbf   : > { %v1407_v20 = vrot.slane %v1082_v16, %v7540_v36  ;;  %v1400_v22 = vrot.slane %v1081_v18, %v7548_v46  ;;  %976 = vadd.xlane.f32.xlu1 %v975_v33  ;;  %934 = vadd.xlane.f32.xlu0 %v933_v31  ;;  %v939_v3 = vsel %vm686_vm0, %v642_v44, 0.0  ;;  %v388_v13 = vmax.f32 %v6181_v50, 1e-06 }
  0xc0   : > { %v728_v28 = vpop.xlane.xlu1 %727  ;;  %v725_v29 = vpop.xlane.xlu0 %724  ;;  %v6241_v16 = vunpack.c.l.bf16 %v7628_v56  ;;  %v657_v21 = vmul.f32 %v529_v47, %v401_v23  ;;  %v6210_v19 = vunpack.c.h.bf16 %v7602_v60  ;;  %v1026_v14 = vsel %vm686_vm0, %v671_v49, 0.0 }
  0xc1   : > { %v1402_v38 = vsel %vm1401_vm10, %v1400_v22, %v1395_v45  ;;  %v1084_v40 = vmul.f32 0.020408163, %v728_v28  ;;  %v1083_v33 = vmul.f32 0.020408163, %v725_v29  ;;  %v417_v22 = vmax.f32 %v6238_v0, 1e-06 }
  0xc2   : > { %v1409_v41 = vsel %vm1408_vm11, %v1407_v20, %v1402_v38  ;;  %v515_v20 = vmul.f32 %v387_v58, %v387_v58  ;;  %v516_v23 = vmul.f32 %v388_v13, %v388_v13  ;;  %v418_v34 = vmax.f32 %v6241_v16, 1e-06 }
  0xc3   : > { %v1421_v51 = vrot.slane %v1084_v40, %v7560_v63  ;;  %v1414_v54 = vrot.slane %v1083_v33, %v7570_v8  ;;  %937 = vadd.xlane.f32.xlu1 %v936_v24  ;;  %979 = vadd.xlane.f32.xlu0 %v978_v30  ;;  %v6213_v24 = vunpack.c.l.bf16 %v7634_v9  ;;  %v1029_v30 = vsel %vm686_vm0, %v672_v57, 0.0 }
  0xc4   : > { %v734_v31 = vpop.xlane.xlu1 %733  ;;  %v731_v42 = vpop.xlane.xlu0 %730  ;;  %v6182_v60 = vunpack.c.h.bf16 %v7617_v27  ;;  %v658_v33 = vmul.f32 %v530_v7, %v402_v12  ;;  %v984_v50 = vsel %vm686_vm0, %v657_v21, 0.0  ;;  %v546_v57 = vmul.f32 %v418_v34, %v418_v34 }
  0xc5   : > { %v1416_v1 = vsel %vm1415_vm12, %v1414_v54, %v1409_v41  ;;  %v1086_v2 = vmul.f32 0.020408163, %v734_v31  ;;  %v1085_v6 = vmul.f32 0.020408163, %v731_v42  ;;  %v403_v41 = vmax.f32 %v6210_v19, 1e-06 }
  0xc6   : > { %v1423_v11 = vsel %vm1422_vm13, %v1421_v51, %v1416_v1  ;;  %v643_v51 = vmul.f32 %v515_v20, %v387_v58  ;;  %v545_v54 = vmul.f32 %v417_v22, %v417_v22  ;;  %v6185_v42 = vunpack.c.l.bf16 %v7651_v37 }
  0xc7   : > { %v1435_v18 = vrot.slane %v1086_v2, %v7594_v48  ;;  %v1428_v4 = vrot.slane %v1085_v6, %v7608_v59  ;;  %1024 = vadd.xlane.f32.xlu1 %v1023_v15  ;;  %982 = vadd.xlane.f32.xlu0 %v981_v55  ;;  %v404_v15 = vmax.f32 %v6213_v24, 1e-06  ;;  %v644_v55 = vmul.f32 %v516_v23, %v388_v13  ;;  %v7664_v13 = vld [vmem:[%s7361_s7 + $0x1c18] sm:$0xff]  }
  0xc8   : > { %v740_v45 = vpop.xlane.xlu1 %739  ;;  %v737_v5 = vpop.xlane.xlu0 %736  ;;  %v389_v0 = vmax.f32 %v6182_v60, 1e-06  ;;  %v987_v58 = vsel %vm686_vm0, %v658_v33, 0.0  ;;  %v531_v2 = vmul.f32 %v403_v41, %v403_v41  ;;  %v674_v20 = vmul.f32 %v546_v57, %v418_v34 }
  0xc9   : > { %v1430_v26 = vsel %vm1429_vm14, %v1428_v4, %v1423_v11  ;;  %v1088_v28 = vmul.f32 0.020408163, %v740_v45  ;;  %v1087_v29 = vmul.f32 0.020408163, %v737_v5  ;;  %v942_v11 = vsel %vm686_vm0, %v643_v51, 0.0 }
  0xca   : > { %v7647_v35 = vsel %vm1436_vm15, %v1435_v18, %v1430_v26  ;;  %v532_v16 = vmul.f32 %v404_v15, %v404_v15  ;;  %v6242_v18 = vunpack.c.h.bf16 %v7628_v56  ;;  %v390_v45 = vmax.f32 %v6185_v42, 1e-06 }
  0xcb   : > { %v1445_v38 = vrot.slane %v1088_v28, %v7496_v53  ;;  %v1441_v40 = vrot.slane %v1087_v29, %v7485_v39  ;;  %940 = vadd.xlane.f32.xlu1 %v939_v3  ;;  %1027 = vadd.xlane.f32.xlu0 %v1026_v14  ;;  %v673_v3 = vmul.f32 %v545_v54, %v417_v22  ;;  %v945_v14 = vsel %vm686_vm0, %v644_v55, 0.0  ;;  %v7673_v29 = vld [vmem:[%s7361_s7 + $0x1820] sm:$0xff]  }
  0xcc   : > { %v746_v44 = vpop.xlane.xlu1 %745  ;;  %v743_v47 = vpop.xlane.xlu0 %742  ;;  %v517_v24 = vmul.f32 %v389_v0, %v389_v0  ;;  %v659_v56 = vmul.f32 %v531_v2, %v403_v41  ;;  %v6245_v28 = vunpack.c.l.bf16 %v7664_v13  ;;  %v6214_v34 = vunpack.c.h.bf16 %v7634_v9 }
  0xcd   : > { %v1446_v49 = vsel %vm1338_vm1, %v1445_v38, %v1441_v40  ;;  %v1090_v27 = vmul.f32 0.020408163, %v746_v44  ;;  %v1089_v31 = vmul.f32 0.020408163, %v743_v47  ;;  %v1032_v60 = vsel %vm686_vm0, %v673_v3, 0.0  ;;  %v7692_v3 = vld [vmem:[%s7361_s7 + $0x1c20] sm:$0xff]  }
  0xce   : > { %v660_v38 = vmul.f32 %v532_v16, %v404_v15  ;;  %v419_v40 = vmax.f32 %v6242_v18, 1e-06  ;;  %v1035_v51 = vsel %vm686_vm0, %v674_v20, 0.0  ;;  %v645_v54 = vmul.f32 %v517_v24, %v389_v0 }
  0xcf   : > { %v1455_v12 = vrot.slane %v1090_v27, %v7493_v52  ;;  %v1450_v1 = vrot.slane %v1089_v31, %v7488_v43  ;;  %1030 = vadd.xlane.f32.xlu1 %v1029_v30  ;;  %985 = vadd.xlane.f32.xlu0 %v984_v50  ;;  %v518_v50 = vmul.f32 %v390_v45, %v390_v45  ;;  %v7682_v27 = vld [vmem:[%s7361_s7 + $0x1428] sm:$0xff]   ;;  %v990_v9 = vsel %vm686_vm0, %v659_v56, 0.0 }
  0xd0   : > { %v752_v6 = vpop.xlane.xlu1 %751  ;;  %v749_v7 = vpop.xlane.xlu0 %748  ;;  %v420_v42 = vmax.f32 %v6245_v28, 1e-06  ;;  %v405_v0 = vmax.f32 %v6214_v34, 1e-06  ;;  %v948_v18 = vsel %vm686_vm0, %v645_v54, 0.0  ;;  %v6249_v28 = vunpack.c.l.bf16 %v7692_v3 }
  0xd1   : > { %v1451_v4 = vsel %vm1345_vm2, %v1450_v1, %v1446_v49  ;;  %v1092_v21 = vmul.f32 0.020408163, %v752_v6  ;;  %v1091_v19 = vmul.f32 0.020408163, %v749_v7  ;;  %v6217_v49 = vunpack.c.l.bf16 %v7673_v29 }
  0xd2   : > { %v1456_v5 = vsel %vm1352_vm3, %v1455_v12, %v1451_v4  ;;  %v993_v12 = vsel %vm686_vm0, %v660_v38, 0.0  ;;  %v547_v1 = vmul.f32 %v419_v40, %v419_v40  ;;  %v646_v4 = vmul.f32 %v518_v50, %v390_v45 }
  0xd3   : > { %v1465_v26 = vrot.slane %v1092_v21, %v7504_v61  ;;  %v1460_v22 = vrot.slane %v1091_v19, %v7507_v62  ;;  %988 = vadd.xlane.f32.xlu1 %v987_v58  ;;  %943 = vadd.xlane.f32.xlu0 %v942_v11  ;;  %v6186_v58 = vunpack.c.h.bf16 %v7651_v37  ;;  %v6189_v11 = vunpack.c.l.bf16 %v7682_v27 }
  0xd4   : > { %v758_v30 = vpop.xlane.xlu1 %757  ;;  %v755_v23 = vpop.xlane.xlu0 %754  ;;  %v406_v21 = vmax.f32 %v6217_v49, 1e-06  ;;  %v548_v37 = vmul.f32 %v420_v42, %v420_v42  ;;  %v951_v34 = vsel %vm686_vm0, %v646_v4, 0.0 }
  0xd5   : > { %v1461_v33 = vsel %vm1359_vm4, %v1460_v22, %v1456_v5  ;;  %v1094_v44 = vmul.f32 0.020408163, %v758_v30  ;;  %v1093_v47 = vmul.f32 0.020408163, %v755_v23  ;;  %v533_v22 = vmul.f32 %v405_v0, %v405_v0 }
  0xd6   : > { %v1466_v41 = vsel %vm1366_vm5, %v1465_v26, %v1461_v33  ;;  %v675_v26 = vmul.f32 %v547_v1, %v419_v40  ;;  %v391_v56 = vmax.f32 %v6186_v58, 1e-06  ;;  %v534_v33 = vmul.f32 %v406_v21, %v406_v21 }
  0xd7   : > { %v1475_v31 = vrot.slane %v1094_v44, %v7517_v10  ;;  %v1470_v15 = vrot.slane %v1093_v47, %v7522_v17  ;;  %946 = vadd.xlane.f32.xlu1 %v945_v14  ;;  %1033 = vadd.xlane.f32.xlu0 %v1032_v60  ;;  %v6246_v14 = vunpack.c.h.bf16 %v7664_v13  ;;  %v392_v60 = vmax.f32 %v6189_v11, 1e-06 }
  0xd8   : > { %v764_v55 = vpop.xlane.xlu1 %763  ;;  %v761_v57 = vpop.xlane.xlu0 %760  ;;  %v6218_v13 = vunpack.c.h.bf16 %v7673_v29  ;;  %v676_v47 = vmul.f32 %v548_v37, %v420_v42  ;;  %v1038_v49 = vsel %vm686_vm0, %v675_v26, 0.0  ;;  %v662_v42 = vmul.f32 %v534_v33, %v406_v21 }
  0xd9   : > { %v1471_v2 = vsel %vm1373_vm6, %v1470_v15, %v1466_v41  ;;  %v1096_v6 = vmul.f32 0.020408163, %v764_v55  ;;  %v1095_v7 = vmul.f32 0.020408163, %v761_v57  ;;  %v421_v50 = vmax.f32 %v6246_v14, 1e-06 }
  0xda   : > { %v1476_v16 = vsel %vm1380_vm7, %v1475_v31, %v1471_v2  ;;  %v7707_v41 = vld [vmem:[%s7361_s7 + $0x1828] sm:$0xff]   ;;  %v661_v31 = vmul.f32 %v533_v22, %v405_v0  ;;  %v519_v15 = vmul.f32 %v391_v56, %v391_v56  ;;  %v520_v1 = vmul.f32 %v392_v60, %v392_v60 }
  0xdb   : > { %v1485_v19 = vrot.slane %v1096_v6, %v7529_v25  ;;  %v1480_v5 = vrot.slane %v1095_v7, %v7537_v32  ;;  %1036 = vadd.xlane.f32.xlu1 %v1035_v51  ;;  %991 = vadd.xlane.f32.xlu0 %v990_v9  ;;  %v422_v9 = vmax.f32 %v6249_v28, 1e-06  ;;  %v407_v58 = vmax.f32 %v6218_v13, 1e-06 }
  0xdc   : > { %v770_v20 = vpop.xlane.xlu1 %769  ;;  %v767_v24 = vpop.xlane.xlu0 %766  ;;  %v6221_v2 = vunpack.c.l.bf16 %v7707_v41  ;;  %v1041_v0 = vsel %vm686_vm0, %v676_v47, 0.0  ;;  %v549_v11 = vmul.f32 %v421_v50, %v421_v50  ;;  %v647_v21 = vmul.f32 %v519_v15, %v391_v56 }
  0xdd   : > { %v1481_v45 = vsel %vm1387_vm8, %v1480_v5, %v1476_v16  ;;  %v1098_v30 = vmul.f32 0.020408163, %v770_v20  ;;  %v1097_v23 = vmul.f32 0.020408163, %v767_v24  ;;  %v7717_v16 = vld [vmem:[%s7361_s7 + $0x1430] sm:$0xff]   ;;  %v550_v5 = vmul.f32 %v422_v9, %v422_v9 }
  0xde   : > { %v1486_v38 = vsel %vm9469_vm9, %v1485_v19, %v1481_v45  ;;  %vm1991_vm9 = vcmask 1041409   ;;  %v996_v19 = vsel %vm686_vm0, %v661_v31, 0.0  ;;  %v6190_v37 = vunpack.c.h.bf16 %v7682_v27 }
  0xdf   : > { %v1495_v44 = vrot.slane %v1098_v30, %v7540_v36  ;;  %v1490_v40 = vrot.slane %v1097_v23, %v7548_v46  ;;  %994 = vadd.xlane.f32.xlu1 %v993_v12  ;;  %949 = vadd.xlane.f32.xlu0 %v948_v18  ;;  %v648_v26 = vmul.f32 %v520_v1, %v392_v60  ;;  %v408_v45 = vmax.f32 %v6221_v2, 1e-06  ;;  %v7725_v23 = vld [vmem:[%s7361_s7 + $0x1c28] sm:$0xff]  }
  0xe0   : > { %v776_v51 = vpop.xlane.xlu1 %775  ;;  %v773_v54 = vpop.xlane.xlu0 %772  ;;  %v535_v28 = vmul.f32 %v407_v58, %v407_v58  ;;  %v6193_v30 = vunpack.c.l.bf16 %v7717_v16  ;;  %v999_v27 = vsel %vm686_vm0, %v662_v42, 0.0  ;;  %v954_v13 = vsel %vm686_vm0, %v647_v21, 0.0 }
  0xe1   : > { %v1491_v29 = vsel %vm1401_vm10, %v1490_v40, %v1486_v38  ;;  %v1100_v55 = vmul.f32 0.020408163, %v776_v51  ;;  %v1099_v57 = vmul.f32 0.020408163, %v773_v54  ;;  %v678_v40 = vmul.f32 %v550_v5, %v422_v9 }
  0xe2   : > { %v1496_v12 = vsel %vm1408_vm11, %v1495_v44, %v1491_v29  ;;  %v677_v44 = vmul.f32 %v549_v11, %v421_v50  ;;  %v393_v47 = vmax.f32 %v6190_v37, 1e-06  ;;  %v6253_v31 = vunpack.c.l.bf16 %v7725_v23  ;;  %v7750_v37 = vld [vmem:[%s7361_s7 + $0x1438] sm:$0xff]  }
  0xe3   : > { %v1505_v6 = vrot.slane %v1100_v55, %v7560_v63  ;;  %v1500_v7 = vrot.slane %v1099_v57, %v7570_v8  ;;  %952 = vadd.xlane.f32.xlu1 %v951_v34  ;;  %1039 = vadd.xlane.f32.xlu0 %v1038_v49  ;;  %v6250_v34 = vunpack.c.h.bf16 %v7692_v3  ;;  %v663_v29 = vmul.f32 %v535_v28, %v407_v58 }
  0xe4   : > { %v782_v18 = vpop.xlane.xlu1 %781  ;;  %v779_v4 = vpop.xlane.xlu0 %778  ;;  %v536_v55 = vmul.f32 %v408_v45, %v408_v45  ;;  %v394_v57 = vmax.f32 %v6193_v30, 1e-06  ;;  %v957_v2 = vsel %vm686_vm0, %v648_v26, 0.0  ;;  %v1044_v58 = vsel %vm686_vm0, %v677_v44, 0.0 }
  0xe5   : > { %v1501_v14 = vsel %vm1415_vm12, %v1500_v7, %v1496_v12  ;;  %v1102_v20 = vmul.f32 0.020408163, %v782_v18  ;;  %v1101_v24 = vmul.f32 0.020408163, %v779_v4  ;;  %v423_v1 = vmax.f32 %v6250_v34, 1e-06 }
  0xe6   : > { %v1506_v22 = vsel %vm1422_vm13, %v1505_v6, %v1501_v14  ;;  %v521_v6 = vmul.f32 %v393_v47, %v393_v47  ;;  %v6222_v7 = vunpack.c.h.bf16 %v7707_v41  ;;  %v7746_v18 = vld [vmem:[%s7361_s7 + $0x1830] sm:$0xff]   ;;  %v1047_v4 = vsel %vm686_vm0, %v678_v40, 0.0 }
  0xe7   : > { %v1515_v38 = vrot.slane %v1102_v20, %v7594_v48  ;;  %v1510_v56 = vrot.slane %v1101_v24, %v7608_v59  ;;  %1042 = vadd.xlane.f32.xlu1 %v1041_v0  ;;  %997 = vadd.xlane.f32.xlu0 %v996_v19  ;;  %v664_v19 = vmul.f32 %v536_v55, %v408_v45  ;;  %v424_v5 = vmax.f32 %v6253_v31, 1e-06 }
  0xe8   : > { %v788_v33 = vpop.xlane.xlu1 %787  ;;  %v785_v60 = vpop.xlane.xlu0 %784  ;;  %v522_v21 = vmul.f32 %v394_v57, %v394_v57  ;;  %v1002_v41 = vsel %vm686_vm0, %v663_v29, 0.0  ;;  %v551_v24 = vmul.f32 %v423_v1, %v423_v1  ;;  %v649_v28 = vmul.f32 %v521_v6, %v393_v47 }
  0xe9   : > { %v1511_v51 = vsel %vm1429_vm14, %v1510_v56, %v1506_v22  ;;  %v1104_v54 = vmul.f32 0.020408163, %v788_v33  ;;  %v1103_v49 = vmul.f32 0.020408163, %v785_v60  ;;  %v409_v30 = vmax.f32 %v6222_v7, 1e-06 }
  0xea   : > { %v1516_v15 = vsel %vm1436_vm15, %v1515_v38, %v1511_v51  ;;  %v6225_v38 = vunpack.c.l.bf16 %v7746_v18  ;;  %v6194_v45 = vunpack.c.h.bf16 %v7717_v16  ;;  %v6197_v33 = vunpack.c.l.bf16 %v7750_v37 }
  0xeb   : > { %v7737_v3 = vsel %vm1991_vm9, %v1516_v15, %v7647_v35  ;;  %v1524_v50 = vrot.slane %v1104_v54, %v7496_v53  ;;  %v1520_v9 = vrot.slane %v1103_v49, %v7485_v39  ;;  %1000 = vadd.xlane.f32.xlu1 %v999_v27  ;;  %955 = vadd.xlane.f32.xlu0 %v954_v13  ;;  %v1005_v13 = vsel %vm686_vm0, %v664_v19, 0.0  ;;  %v7765_v49 = vld [vmem:[%s7361_s7 + $0x1c30] sm:$0xff]  }
  0xec   : > { %v794_v12 = vpop.xlane.xlu1 %793  ;;  %v791_v42 = vpop.xlane.xlu0 %790  ;;  %v650_v44 = vmul.f32 %v522_v21, %v394_v57  ;;  %v552_v40 = vmul.f32 %v424_v5, %v424_v5  ;;  %v679_v54 = vmul.f32 %v551_v24, %v423_v1  ;;  %v6254_v16 = vunpack.c.h.bf16 %v7725_v23 }
  0xed   : > { %v1525_v35 = vsel %vm1338_vm1, %v1524_v50, %v1520_v9  ;;  %v1106_v0 = vmul.f32 0.020408163, %v794_v12  ;;  %v1105_v11 = vmul.f32 0.020408163, %v791_v42  ;;  %v960_v29 = vsel %vm686_vm0, %v649_v28, 0.0 }
  0xee   : > { %v537_v55 = vmul.f32 %v409_v30, %v409_v30  ;;  %v410_v50 = vmax.f32 %v6225_v38, 1e-06  ;;  %v395_v57 = vmax.f32 %v6194_v45, 1e-06  ;;  %v680_v1 = vmul.f32 %v552_v40, %v424_v5 }
  0xef   : > { %v1534_v14 = vrot.slane %v1106_v0, %v7493_v52  ;;  %v1529_v20 = vrot.slane %v1105_v11, %v7488_v43  ;;  %958 = vadd.xlane.f32.xlu1 %v957_v2  ;;  %1045 = vadd.xlane.f32.xlu0 %v1044_v58  ;;  %v396_v2 = vmax.f32 %v6197_v33, 1e-06  ;;  %v6257_v23 = vunpack.c.l.bf16 %v7765_v49 }
  0xf0   : > { %v800_v26 = vpop.xlane.xlu1 %799  ;;  %v797_v22 = vpop.xlane.xlu0 %796  ;;  %v6226_v6 = vunpack.c.h.bf16 %v7746_v18  ;;  %v963_v0 = vsel %vm686_vm0, %v650_v44, 0.0  ;;  %v425_v11 = vmax.f32 %v6254_v16, 1e-06  ;;  %v665_v5 = vmul.f32 %v537_v55, %v409_v30 }
  0xf1   : > { %v1530_v56 = vsel %vm1345_vm2, %v1529_v20, %v1525_v35  ;;  %v1108_v27 = vmul.f32 0.020408163, %v800_v26  ;;  %v1107_v34 = vmul.f32 0.020408163, %v797_v22  ;;  %v538_v20 = vmul.f32 %v410_v50, %v410_v50 }
  0xf2   : > { %v1535_v60 = vsel %vm1352_vm3, %v1534_v14, %v1530_v56  ;;  %v1050_v14 = vsel %vm686_vm0, %v679_v54, 0.0  ;;  %v524_v22 = vmul.f32 %v396_v2, %v396_v2  ;;  %v426_v38 = vmax.f32 %v6257_v23, 1e-06 }
  0xf3   : > { %v1544_v47 = vrot.slane %v1108_v27, %v7504_v61  ;;  %v1539_v51 = vrot.slane %v1107_v34, %v7507_v62  ;;  %1048 = vadd.xlane.f32.xlu1 %v1047_v4  ;;  %1003 = vadd.xlane.f32.xlu0 %v1002_v41  ;;  %v7776_v4 = vld [vmem:[%s7361_s7 + $0x1838] sm:$0xff]   ;;  %v523_v41 = vmul.f32 %v395_v57, %v395_v57  ;;  %v411_v45 = vmax.f32 %v6226_v6, 1e-06 }
  0xf4   : > { %v806_v31 = vpop.xlane.xlu1 %805  ;;  %v803_v15 = vpop.xlane.xlu0 %802  ;;  %v6229_v56 = vunpack.c.l.bf16 %v7776_v4  ;;  %v553_v30 = vmul.f32 %v425_v11, %v425_v11  ;;  %v6198_v33 = vunpack.c.h.bf16 %v7750_v37  ;;  %v1053_v44 = vsel %vm686_vm0, %v680_v1, 0.0 }
  0xf5   : > { %v1540_v9 = vsel %vm1359_vm4, %v1539_v51, %v1535_v60  ;;  %v1110_v12 = vmul.f32 0.020408163, %v806_v31  ;;  %v1109_v42 = vmul.f32 0.020408163, %v803_v15  ;;  %v1008_v40 = vsel %vm686_vm0, %v665_v5, 0.0 }
  0xf6   : > { %v1545_v58 = vsel %vm1366_vm5, %v1544_v47, %v1540_v9  ;;  %v666_v47 = vmul.f32 %v538_v20, %v410_v50  ;;  %v651_v51 = vmul.f32 %v523_v41, %v395_v57  ;;  %v652_v15 = vmul.f32 %v524_v22, %v396_v2 }
  0xf7   : > { %v1554_v7 = vrot.slane %v1110_v12, %v7517_v10  ;;  %v1549_v35 = vrot.slane %v1109_v42, %v7522_v17  ;;  %1006 = vadd.xlane.f32.xlu1 %v1005_v13  ;;  %961 = vadd.xlane.f32.xlu0 %v960_v29  ;;  %vm9471_vm9 = vcmask 654912   ;;  %v554_v55 = vmul.f32 %v426_v38, %v426_v38 }
  0xf8   : > { %v812_v19 = vpop.xlane.xlu1 %811  ;;  %v809_v21 = vpop.xlane.xlu0 %808  ;;  %v539_v9 = vmul.f32 %v411_v45, %v411_v45  ;;  %v412_v12 = vmax.f32 %v6229_v56, 1e-06  ;;  %v397_v50 = vmax.f32 %v6198_v33, 1e-06  ;;  %v1011_v23 = vsel %vm686_vm0, %v666_v47, 0.0 }
  0xf9   : > { %v1550_v18 = vsel %vm1373_vm6, %v1549_v35, %v1545_v58  ;;  %v1112_v24 = vmul.f32 0.020408163, %v812_v19  ;;  %v1111_v26 = vmul.f32 0.020408163, %v809_v21  ;;  %v681_v58 = vmul.f32 %v553_v30, %v425_v11 }
  0xfa   : > { %v1555_v28 = vsel %vm1380_vm7, %v1554_v7, %v1550_v18  ;;  %v966_v2 = vsel %vm686_vm0, %v651_v51, 0.0  ;;  %v6230_v6 = vunpack.c.h.bf16 %v7776_v4  ;;  %v6258_v7 = vunpack.c.h.bf16 %v7765_v49 }
  0xfb   : > { %v1564_v27 = vrot.slane %v1112_v24, %v7529_v25  ;;  %v1559_v34 = vrot.slane %v1111_v26, %v7537_v32  ;;  %964 = vadd.xlane.f32.xlu1 %v963_v0  ;;  %1051 = vadd.xlane.f32.xlu0 %v1050_v14  ;;  %v969_v21 = vsel %vm686_vm0, %v652_v15, 0.0  ;;  %v6581_v14 = vld [vmem:[%s7361_s7 + $0x1c38] sm:$0xff]   ;;  %v682_v5 = vmul.f32 %v554_v55, %v426_v38 }
  0xfc   : > { %v818_v60 = vpop.xlane.xlu1 %817  ;;  %v815_v13 = vpop.xlane.xlu0 %814  ;;  %v667_v20 = vmul.f32 %v539_v9, %v411_v45  ;;  %v540_v41 = vmul.f32 %v412_v12, %v412_v12  ;;  %v1056_v49 = vsel %vm686_vm0, %v681_v58, 0.0  ;;  %v525_v4 = vmul.f32 %v397_v50, %v397_v50 }
  0xfd   : > { %v1560_v54 = vsel %vm1387_vm8, %v1559_v34, %v1555_v28  ;;  %v1114_v16 = vmul.f32 0.020408163, %v818_v60  ;;  %v1113_v31 = vmul.f32 0.020408163, %v815_v13  ;;  %v413_v28 = vmax.f32 %v6230_v6, 1e-06 }
  0xfe   : > { %v1565_v29 = vsel %vm9471_vm9, %v1564_v27, %v1560_v54  ;;  %v427_v56 = vmax.f32 %v6258_v7, 1e-06  ;;  %v6261_v27 = vunpack.c.l.bf16 %v6581_v14  ;;  %v6262_v34 = vunpack.c.h.bf16 %v6581_v14 }
  0xff   : > { %v1574_v37 = vrot.slane %v1114_v16, %v7540_v36  ;;  %v1569_v42 = vrot.slane %v1113_v31, %v7548_v46  ;;  %1054 = vadd.xlane.f32.xlu1 %v1053_v44  ;;  %1009 = vadd.xlane.f32.xlu0 %v1008_v40  ;;  %vm1993_vm9 = vcmask 1042434   ;;  %v1059_v60 = vsel %vm686_vm0, %v682_v5, 0.0 }
 0x100   : > { %v824_v57 = vpop.xlane.xlu1 %823  ;;  %v821_v1 = vpop.xlane.xlu0 %820  ;;  %v668_v13 = vmul.f32 %v540_v41, %v412_v12  ;;  %v1014_v47 = vsel %vm686_vm0, %v667_v20, 0.0  ;;  %v653_v51 = vmul.f32 %v525_v4, %v397_v50  ;;  %v541_v31 = vmul.f32 %v413_v28, %v413_v28 }
 0x101   : > { %v1570_v35 = vsel %vm1401_vm10, %v1569_v42, %v1565_v29  ;;  %v1116_v0 = vmul.f32 0.020408163, %v824_v57  ;;  %v1115_v19 = vmul.f32 0.020408163, %v821_v1  ;;  %v555_v15 = vmul.f32 %v427_v56, %v427_v56 }
 0x102   : > { %v1575_v11 = vsel %vm1408_vm11, %v1574_v37, %v1570_v35  ;;  %v428_v29 = vmax.f32 %v6261_v27, 1e-06  ;;  %v429_v55 = vmax.f32 %v6262_v34, 1e-06  ;;  %v1017_v58 = vsel %vm686_vm0, %v668_v13, 0.0 }
 0x103   : > { %v1584_v18 = vrot.slane %v1116_v0, %v7560_v63  ;;  %v1579_v24 = vrot.slane %v1115_v19, %v7570_v8  ;;  %1012 = vadd.xlane.f32.xlu1 %v1011_v23  ;;  %967 = vadd.xlane.f32.xlu0 %v966_v2  ;;  %v972_v23 = vsel %vm686_vm0, %v653_v51, 0.0  ;;  %v669_v7 = vmul.f32 %v541_v31, %v413_v28 }
 0x104   : > { %v830_v26 = vpop.xlane.xlu1 %829  ;;  %v827_v22 = vpop.xlane.xlu0 %826  ;;  %v683_v35 = vmul.f32 %v555_v15, %v427_v56  ;;  %v556_v0 = vmul.f32 %v428_v29, %v428_v29  ;;  %v557_v19 = vmul.f32 %v429_v55, %v429_v55 }
 0x105   : > { %v1580_v30 = vsel %vm1415_vm12, %v1579_v24, %v1575_v11  ;;  %v1118_v38 = vmul.f32 0.020408163, %v830_v26  ;;  %v1117_v45 = vmul.f32 0.020408163, %v827_v22 }
 0x106   : > { %v1585_v33 = vsel %vm1422_vm13, %v1584_v18, %v1580_v30  ;;  %v1020_v18 = vsel %vm686_vm0, %v669_v7, 0.0  ;;  %v1062_v24 = vsel %vm686_vm0, %v683_v35, 0.0  ;;  %v685_v4 = vmul.f32 %v557_v19, %v429_v55 }
 0x107   : > { %v1594_v44 = vrot.slane %v1118_v38, %v7594_v48  ;;  %v1589_v40 = vrot.slane %v1117_v45, %v7608_v59  ;;  %970 = vadd.xlane.f32.xlu1 %v969_v21  ;;  %1057 = vadd.xlane.f32.xlu0 %v1056_v49  ;;  %v684_v49 = vmul.f32 %v556_v0, %v428_v29 }
 0x108   : > { %v836_v54 = vpop.xlane.xlu1 %835  ;;  %v833_v16 = vpop.xlane.xlu0 %832 }
 0x109   : > { %v1590_v9 = vsel %vm1429_vm14, %v1589_v40, %v1585_v33  ;;  %v1120_v37 = vmul.f32 0.020408163, %v836_v54  ;;  %v1119_v42 = vmul.f32 0.020408163, %v833_v16  ;;  %v1065_v45 = vsel %vm686_vm0, %v684_v49, 0.0 }
 0x10a   : > { %v1595_v12 = vsel %vm1436_vm15, %v1594_v44, %v1590_v9  ;;  %v1068_v33 = vsel %vm686_vm0, %v685_v4, 0.0  ;;  %vm9472_vm0 = vcmask 654912  }
 0x10b   : > { %v7813_v57 = vsel %vm1993_vm9, %v1595_v12, %v7737_v3  ;;  %v1603_v50 = vrot.slane %v1120_v37, %v7496_v53  ;;  %v1599_v1 = vrot.slane %v1119_v42, %v7485_v39  ;;  %1060 = vadd.xlane.f32.xlu1 %v1059_v60  ;;  %1015 = vadd.xlane.f32.xlu0 %v1014_v47  ;;  %vm1995_vm9 = vcmask 1043459  }
 0x10c   : > { %v842_v2 = vpop.xlane.xlu1 %841  ;;  %v839_v6 = vpop.xlane.xlu0 %838 }
 0x10d   : > { %v1604_v21 = vsel %vm1338_vm1, %v1603_v50, %v1599_v1  ;;  %v1122_v14 = vmul.f32 0.020408163, %v842_v2  ;;  %v1121_v11 = vmul.f32 0.020408163, %v839_v6 }
 0x10f   : > { %v1613_v3 = vrot.slane %v1122_v14, %v7493_v52  ;;  %v1608_v5 = vrot.slane %v1121_v11, %v7488_v43  ;;  %1018 = vadd.xlane.f32.xlu1 %v1017_v58  ;;  %973 = vadd.xlane.f32.xlu0 %v972_v23 }
 0x110   : > { %v848_v20 = vpop.xlane.xlu1 %847  ;;  %v845_v41 = vpop.xlane.xlu0 %844 }
 0x111   : > { %v1609_v26 = vsel %vm1345_vm2, %v1608_v5, %v1604_v21  ;;  %v1124_v22 = vmul.f32 0.020408163, %v848_v20  ;;  %v1123_v28 = vmul.f32 0.020408163, %v845_v41 }
 0x112   : > { %v1614_v56 = vsel %vm1352_vm3, %v1613_v3, %v1609_v26 }
 0x113   : > { %v1623_v27 = vrot.slane %v1124_v22, %v7504_v61  ;;  %v1618_v34 = vrot.slane %v1123_v28, %v7507_v62  ;;  %1021 = vadd.xlane.f32.xlu1 %v1020_v18  ;;  %1063 = vadd.xlane.f32.xlu0 %v1062_v24 }
 0x114   : > { %v854_v30 = vpop.xlane.xlu1 %853  ;;  %v851_v38 = vpop.xlane.xlu0 %850 }
 0x115   : > { %v1619_v60 = vsel %vm1359_vm4, %v1618_v34, %v1614_v56  ;;  %v1126_v13 = vmul.f32 0.020408163, %v854_v30  ;;  %v1125_v44 = vmul.f32 0.020408163, %v851_v38 }
 0x116   : > { %v1624_v40 = vsel %vm1366_vm5, %v1623_v27, %v1619_v60 }
 0x117   : > { %v1633_v47 = vrot.slane %v1126_v13, %v7517_v10  ;;  %v1628_v51 = vrot.slane %v1125_v44, %v7522_v17  ;;  %1066 = vadd.xlane.f32.xlu0 %v1065_v45  ;;  %1069 = vadd.xlane.f32.xlu1 %v1068_v33 }
 0x118   : > { %v860_v54 = vpop.xlane.xlu1 %859  ;;  %v857_v16 = vpop.xlane.xlu0 %856 }
 0x119   : > { %v1629_v31 = vsel %vm1373_vm6, %v1628_v51, %v1624_v40  ;;  %v1128_v15 = vmul.f32 0.020408163, %v860_v54  ;;  %v1127_v29 = vmul.f32 0.020408163, %v857_v16 }
 0x11a   : > { %v1634_v55 = vsel %vm1380_vm7, %v1633_v47, %v1629_v31 }
 0x11b   : > { %v1643_v9 = vrot.slane %v1128_v15, %v7529_v25  ;;  %v1638_v37 = vrot.slane %v1127_v29, %v7537_v32 }
 0x11c   : > { %v866_v42 = vpop.xlane.xlu1 %865  ;;  %v863_v12 = vpop.xlane.xlu0 %862 }
 0x11d   : > { %v1639_v58 = vsel %vm1387_vm8, %v1638_v37, %v1634_v55  ;;  %v1130_v50 = vmul.f32 0.020408163, %v866_v42  ;;  %v1129_v1 = vmul.f32 0.020408163, %v863_v12 }
 0x11e   : > { %v1644_v23 = vsel %vm9472_vm0, %v1643_v9, %v1639_v58 }
 0x11f   : > { %v1653_v2 = vrot.slane %v1130_v50, %v7540_v36  ;;  %v1648_v6 = vrot.slane %v1129_v1, %v7548_v46 }
 0x120   : > { %v872_v7 = vpop.xlane.xlu1 %871  ;;  %v869_v35 = vpop.xlane.xlu0 %868 }
 0x121   : > { %v1649_v0 = vsel %vm1401_vm10, %v1648_v6, %v1644_v23  ;;  %v1132_v19 = vmul.f32 0.020408163, %v872_v7  ;;  %v1131_v21 = vmul.f32 0.020408163, %v869_v35 }
 0x122   : > { %v1654_v14 = vsel %vm1408_vm11, %v1653_v2, %v1649_v0 }
 0x123   : > { %v1663_v11 = vrot.slane %v1132_v19, %v7560_v63  ;;  %v1658_v3 = vrot.slane %v1131_v21, %v7570_v8 }
 0x124   : > { %v878_v5 = vpop.xlane.xlu1 %877  ;;  %v875_v20 = vpop.xlane.xlu0 %874 }
 0x125   : > { %v1659_v41 = vsel %vm1415_vm12, %v1658_v3, %v1654_v14  ;;  %v1134_v18 = vmul.f32 0.020408163, %v878_v5  ;;  %v1133_v24 = vmul.f32 0.020408163, %v875_v20 }
 0x126   : > { %v1664_v49 = vsel %vm1422_vm13, %v1663_v11, %v1659_v41 }
 0x127   : > { %v1673_v4 = vrot.slane %v1134_v18, %v7594_v48  ;;  %v1668_v26 = vrot.slane %v1133_v24, %v7608_v59 }
 0x128   : > { %v884_v22 = vpop.xlane.xlu1 %883  ;;  %v881_v28 = vpop.xlane.xlu0 %880 }
 0x129   : > { %v1669_v56 = vsel %vm1429_vm14, %v1668_v26, %v1664_v49  ;;  %v1136_v27 = vmul.f32 0.020408163, %v884_v22  ;;  %v1135_v34 = vmul.f32 0.020408163, %v881_v28 }
 0x12a   : > { %v1674_v30 = vsel %vm1436_vm15, %v1673_v4, %v1669_v56 }
 0x12b   : > { %v7852_v38 = vsel %vm1995_vm9, %v1674_v30, %v7813_v57  ;;  %v1682_v45 = vrot.slane %v1136_v27, %v7496_v53  ;;  %v1678_v33 = vrot.slane %v1135_v34, %v7485_v39  ;;  %vm1997_vm9 = vcmask 1044484  }
 0x12c   : > { %v890_v60 = vpop.xlane.xlu1 %889  ;;  %v887_v13 = vpop.xlane.xlu0 %886 }
 0x12d   : > { %v1683_v44 = vsel %vm1338_vm1, %v1682_v45, %v1678_v33  ;;  %v1138_v40 = vmul.f32 0.020408163, %v890_v60  ;;  %v1137_v47 = vmul.f32 0.020408163, %v887_v13 }
 0x12f   : > { %v1692_v51 = vrot.slane %v1138_v40, %v7493_v52  ;;  %v1687_v54 = vrot.slane %v1137_v47, %v7488_v43 }
 0x130   : > { %v896_v16 = vpop.xlane.xlu1 %895  ;;  %v893_v31 = vpop.xlane.xlu0 %892 }
 0x131   : > { %v1688_v15 = vsel %vm1345_vm2, %v1687_v54, %v1683_v44  ;;  %v1140_v57 = vmul.f32 0.020408163, %v896_v16  ;;  %v1139_v29 = vmul.f32 0.020408163, %v893_v31 }
 0x132   : > { %v1693_v55 = vsel %vm1352_vm3, %v1692_v51, %v1688_v15 }
 0x133   : > { %v1702_v9 = vrot.slane %v1140_v57, %v7504_v61  ;;  %v1697_v37 = vrot.slane %v1139_v29, %v7507_v62 }
 0x134   : > { %v902_v42 = vpop.xlane.xlu1 %901  ;;  %v899_v12 = vpop.xlane.xlu0 %898 }
 0x135   : > { %v1698_v58 = vsel %vm1359_vm4, %v1697_v37, %v1693_v55  ;;  %v1142_v50 = vmul.f32 0.020408163, %v902_v42  ;;  %v1141_v1 = vmul.f32 0.020408163, %v899_v12 }
 0x136   : > { %v1703_v23 = vsel %vm1366_vm5, %v1702_v9, %v1698_v58 }
 0x137   : > { %v1712_v2 = vrot.slane %v1142_v50, %v7517_v10  ;;  %v1707_v6 = vrot.slane %v1141_v1, %v7522_v17 }
 0x138   : > { %v908_v7 = vpop.xlane.xlu1 %907  ;;  %v905_v35 = vpop.xlane.xlu0 %904 }
 0x139   : > { %v1708_v0 = vsel %vm1373_vm6, %v1707_v6, %v1703_v23  ;;  %v1144_v19 = vmul.f32 0.020408163, %v908_v7  ;;  %v1143_v21 = vmul.f32 0.020408163, %v905_v35 }
 0x13a   : > { %v1713_v14 = vsel %vm1380_vm7, %v1712_v2, %v1708_v0 }
 0x13b   : > { %v1722_v11 = vrot.slane %v1144_v19, %v7529_v25  ;;  %v1717_v3 = vrot.slane %v1143_v21, %v7537_v32 }
 0x13c   : > { %v914_v5 = vpop.xlane.xlu1 %913  ;;  %v911_v20 = vpop.xlane.xlu0 %910 }
 0x13d   : > { %v1718_v41 = vsel %vm1387_vm8, %v1717_v3, %v1713_v14  ;;  %v1146_v18 = vmul.f32 0.020408163, %v914_v5  ;;  %v1145_v24 = vmul.f32 0.020408163, %v911_v20 }
 0x13e   : > { %v1723_v49 = vsel %vm9472_vm0, %v1722_v11, %v1718_v41 }
 0x13f   : > { %v1732_v4 = vrot.slane %v1146_v18, %v7540_v36  ;;  %v1727_v26 = vrot.slane %v1145_v24, %v7548_v46 }
 0x140   : > { %v920_v22 = vpop.xlane.xlu1 %919  ;;  %v917_v28 = vpop.xlane.xlu0 %916 }
 0x141   : > { %v1728_v56 = vsel %vm1401_vm10, %v1727_v26, %v1723_v49  ;;  %v1148_v27 = vmul.f32 0.020408163, %v920_v22  ;;  %v1147_v34 = vmul.f32 0.020408163, %v917_v28 }
 0x142   : > { %v1733_v30 = vsel %vm1408_vm11, %v1732_v4, %v1728_v56 }
 0x143   : > { %v1742_v45 = vrot.slane %v1148_v27, %v7560_v63  ;;  %v1737_v33 = vrot.slane %v1147_v34, %v7570_v8 }
 0x144   : > { %v926_v60 = vpop.xlane.xlu1 %925  ;;  %v923_v13 = vpop.xlane.xlu0 %922 }
 0x145   : > { %v1738_v44 = vsel %vm1415_vm12, %v1737_v33, %v1733_v30  ;;  %v1150_v40 = vmul.f32 0.020408163, %v926_v60  ;;  %v1149_v47 = vmul.f32 0.020408163, %v923_v13 }
 0x146   : > { %v1743_v51 = vsel %vm1422_vm13, %v1742_v45, %v1738_v44 }
 0x147   : > { %v1752_v54 = vrot.slane %v1150_v40, %v7594_v48  ;;  %v1747_v16 = vrot.slane %v1149_v47, %v7608_v59 }
 0x148   : > { %v932_v31 = vpop.xlane.xlu1 %931  ;;  %v929_v15 = vpop.xlane.xlu0 %928 }
 0x149   : > { %v1748_v57 = vsel %vm1429_vm14, %v1747_v16, %v1743_v51  ;;  %v1152_v29 = vmul.f32 0.020408163, %v932_v31  ;;  %v1151_v55 = vmul.f32 0.020408163, %v929_v15 }
 0x14a   : > { %v1753_v9 = vsel %vm1436_vm15, %v1752_v54, %v1748_v57 }
 0x14b   : > { %v1761_v37 = vrot.slane %v1152_v29, %v7496_v53  ;;  %v1757_v42 = vrot.slane %v1151_v55, %v7485_v39  ;;  %v7888_v12 = vsel %vm1997_vm9, %v1753_v9, %v7852_v38 }
 0x14c   : > { %v977_v58 = vpop.xlane.xlu1 %976  ;;  %v935_v50 = vpop.xlane.xlu0 %934 }
 0x14d   : > { %v1762_v1 = vsel %vm1338_vm1, %v1761_v37, %v1757_v42  ;;  %v1153_v23 = vmul.f32 0.020408163, %v935_v50  ;;  %v1167_v2 = vmul.f32 0.020408163, %v977_v58 }
 0x14f   : > { %v1766_v6 = vrot.slane %v1153_v23, %v7488_v43  ;;  %v1836_v14 = vrot.slane %v1167_v2, %v7485_v39 }
 0x150   : > { %v938_v7 = vpop.xlane.xlu1 %937  ;;  %v980_v35 = vpop.xlane.xlu0 %979 }
 0x151   : > { %v1767_v0 = vsel %vm1345_vm2, %v1766_v6, %v1762_v1  ;;  %v1154_v19 = vmul.f32 0.020408163, %v938_v7  ;;  %v1168_v21 = vmul.f32 0.020408163, %v980_v35 }
 0x153   : > { %v1771_v11 = vrot.slane %v1154_v19, %v7493_v52  ;;  %v1840_v38 = vrot.slane %v1168_v21, %v7496_v53 }
 0x154   : > { %v1025_v3 = vpop.xlane.xlu1 %1024  ;;  %v983_v5 = vpop.xlane.xlu0 %982 }
 0x155   : > { %v1772_v20 = vsel %vm1352_vm3, %v1771_v11, %v1767_v0  ;;  %v1841_v41 = vsel %vm1338_vm1, %v1840_v38, %v1836_v14  ;;  %v1169_v18 = vmul.f32 0.020408163, %v983_v5  ;;  %v1183_v58 = vmul.f32 0.020408163, %v1025_v3 }
 0x157   : > { %v1845_v24 = vrot.slane %v1169_v18, %v7488_v43  ;;  %v1915_v14 = vrot.slane %v1183_v58, %v7485_v39 }
 0x158   : > { %v941_v49 = vpop.xlane.xlu1 %940  ;;  %v1028_v4 = vpop.xlane.xlu0 %1027 }
 0x159   : > { %v1846_v26 = vsel %vm1345_vm2, %v1845_v24, %v1841_v41  ;;  %v1155_v37 = vmul.f32 0.020408163, %v941_v49  ;;  %v1184_v42 = vmul.f32 0.020408163, %v1028_v4 }
 0x15b   : > { %v1776_v6 = vrot.slane %v1155_v37, %v7507_v62  ;;  %v1919_v7 = vrot.slane %v1184_v42, %v7496_v53 }
 0x15c   : > { %v1031_v22 = vpop.xlane.xlu1 %1030  ;;  %v986_v28 = vpop.xlane.xlu0 %985 }
 0x15d   : > { %v1185_v50 = vmul.f32 0.020408163, %v1031_v22  ;;  %v1170_v1 = vmul.f32 0.020408163, %v986_v28  ;;  %v1777_v49 = vsel %vm1359_vm4, %v1776_v6, %v1772_v20  ;;  %v1920_v53 = vsel %vm1338_vm1, %v1919_v7, %v1915_v14 }
 0x15e   : > { %vm1999_vm1 = vcmask 1045509  }
 0x15f   : > { %v1924_v11 = vrot.slane %v1185_v50, %v7488_v43  ;;  %v1850_v3 = vrot.slane %v1170_v1, %v7493_v52 }
 0x160   : > { %v989_v56 = vpop.xlane.xlu1 %988  ;;  %v944_v27 = vpop.xlane.xlu0 %943 }
 0x161   : > { %v1156_v35 = vmul.f32 0.020408163, %v944_v27  ;;  %v1171_v0 = vmul.f32 0.020408163, %v989_v56  ;;  %v1925_v27 = vsel %vm1345_vm2, %v1924_v11, %v1920_v53  ;;  %v1851_v20 = vsel %vm1352_vm3, %v1850_v3, %v1846_v26  ;;  %vm9473_vm2 = vmmov %vm9472_vm0 }
 0x163   : > { %v1781_v4 = vrot.slane %v1156_v35, %v7504_v61  ;;  %v1855_v28 = vrot.slane %v1171_v0, %v7507_v62 }
 0x164   : > { %v947_v34 = vpop.xlane.xlu1 %946  ;;  %v1034_v30 = vpop.xlane.xlu0 %1033 }
 0x165   : > { %v1157_v19 = vmul.f32 0.020408163, %v947_v34  ;;  %v1186_v21 = vmul.f32 0.020408163, %v1034_v30  ;;  %v1782_v58 = vsel %vm1366_vm5, %v1781_v4, %v1777_v49  ;;  %v1856_v1 = vsel %vm1359_vm4, %v1855_v28, %v1851_v20 }
 0x167   : > { %v1786_v39 = vrot.slane %v1157_v19, %v7522_v17  ;;  %v1929_v43 = vrot.slane %v1186_v21, %v7493_v52 }
 0x168   : > { %v1037_v45 = vpop.xlane.xlu1 %1036  ;;  %v992_v33 = vpop.xlane.xlu0 %991 }
 0x169   : > { %v1187_v38 = vmul.f32 0.020408163, %v1037_v45  ;;  %v1172_v5 = vmul.f32 0.020408163, %v992_v33 }
 0x16b   : > { %v1934_v34 = vrot.slane %v1187_v38, %v7507_v62  ;;  %v1860_v30 = vrot.slane %v1172_v5, %v7504_v61  ;;  %v1787_v62 = vsel %vm1373_vm6, %v1786_v39, %v1782_v58 }
 0x16c   : > { %v995_v60 = vpop.xlane.xlu1 %994  ;;  %v950_v13 = vpop.xlane.xlu0 %949 }
 0x16d   : > { %v1173_v41 = vmul.f32 0.020408163, %v995_v60  ;;  %v1158_v22 = vmul.f32 0.020408163, %v950_v13 }
 0x16f   : > { %v1865_v33 = vrot.slane %v1173_v41, %v7522_v17  ;;  %v1791_v52 = vrot.slane %v1158_v22, %v7517_v10 }
 0x170   : > { %v953_v44 = vpop.xlane.xlu1 %952  ;;  %v1040_v40 = vpop.xlane.xlu0 %1039 }
 0x171   : > { %v1159_v56 = vmul.f32 0.020408163, %v953_v44  ;;  %v1188_v45 = vmul.f32 0.020408163, %v1040_v40  ;;  %v1930_v40 = vsel %vm1352_vm3, %v1929_v43, %v1925_v27  ;;  %v1792_v14 = vsel %vm1380_vm7, %v1791_v52, %v1787_v62 }
 0x172   : > { %v1935_v6 = vsel %vm1359_vm4, %v1934_v34, %v1930_v40  ;;  %vm2001_vm3 = vcmask 1046534   ;;  %vm9474_vm4 = vmmov %vm9472_vm0 }
 0x173   : > { %v1796_v26 = vrot.slane %v1159_v56, %v7537_v32 }
 0x174   : > { %v1043_v47 = vpop.xlane.xlu1 %1042  ;;  %v998_v51 = vpop.xlane.xlu0 %997 }
 0x175   : > { %v1189_v60 = vmul.f32 0.020408163, %v1043_v47  ;;  %v1174_v13 = vmul.f32 0.020408163, %v998_v51  ;;  %v1861_v47 = vsel %vm1366_vm5, %v1860_v30, %v1856_v1  ;;  %v1939_v51 = vrot.slane %v1188_v45, %v7504_v61 }
 0x176   : > { %v1866_v35 = vsel %vm1373_vm6, %v1865_v33, %v1861_v47  ;;  %v1797_v3 = vsel %vm1387_vm8, %v1796_v26, %v1792_v14 }
 0x178   : > { %v1001_v54 = vpop.xlane.xlu1 %1000  ;;  %v956_v16 = vpop.xlane.xlu0 %955 }
 0x179   : > { %v1175_v44 = vmul.f32 0.020408163, %v1001_v54  ;;  %v1160_v50 = vmul.f32 0.020408163, %v956_v16  ;;  %v1944_v54 = vrot.slane %v1189_v60, %v7522_v17  ;;  %v1870_v16 = vrot.slane %v1174_v13, %v7517_v10 }
 0x17a   : > { %v1940_v17 = vsel %vm1366_vm5, %v1939_v51, %v1935_v6  ;;  %vm9475_vm5 = vmmov %vm9472_vm0 }
 0x17b   : > { %v1875_v11 = vrot.slane %v1175_v44, %v7537_v32  ;;  %v1801_v38 = vrot.slane %v1160_v50, %v7529_v25  ;;  %v1945_v4 = vsel %vm1373_vm6, %v1944_v54, %v1940_v17  ;;  %v1871_v22 = vsel %vm1380_vm7, %v1870_v16, %v1866_v35 }
 0x17c   : > { %v959_v31 = vpop.xlane.xlu1 %958  ;;  %v7900_v15 = vpop.xlane.xlu0 %1045  ;;  %vm2003_vm6 = vcmask 1047559  }
 0x17d   : > { %v1161_v7 = vmul.f32 0.020408163, %v959_v31  ;;  %v1190_v61 = vmul.f32 0.020408163, %v7900_v15 }
 0x180   : > { %v7902_v57 = vpop.xlane.xlu1 %1048  ;;  %v1004_v29 = vpop.xlane.xlu0 %1003 }
 0x181   : > { %v1176_v0 = vmul.f32 0.020408163, %v1004_v29  ;;  %v1806_v29 = vrot.slane %v1161_v7, %v7548_v46  ;;  %v1191_v49 = vmul.f32 0.020408163, %v7902_v57  ;;  %v1949_v57 = vrot.slane %v1190_v61, %v7517_v10 }
 0x183   : > { %v1954_v20 = vrot.slane %v1191_v49, %v7537_v32 }
 0x184   : > { %v7904_v55 = vpop.xlane.xlu1 %1006  ;;  %v962_v9 = vpop.xlane.xlu0 %961 }
 0x185   : > { %v1162_v5 = vmul.f32 0.020408163, %v962_v9  ;;  %v1177_v31 = vmul.f32 0.020408163, %v7904_v55  ;;  %v1880_v9 = vrot.slane %v1176_v0, %v7529_v25  ;;  %v1876_v55 = vsel %vm1387_vm8, %v1875_v11, %v1871_v22 }
 0x187   : > { %v1811_v43 = vrot.slane %v1162_v5, %v7540_v36  ;;  %v1885_v27 = vrot.slane %v1177_v31, %v7548_v46  ;;  %v1881_v13 = vsel %vm9474_vm4, %v1880_v9, %v1876_v55 }
 0x188   : > { %v965_v23 = vpop.xlane.xlu1 %964  ;;  %v7906_v2 = vpop.xlane.xlu0 %1051 }
 0x189   : > { %v1163_v41 = vmul.f32 0.020408163, %v965_v23  ;;  %v1802_v23 = vsel %vm9473_vm2, %v1801_v38, %v1797_v3  ;;  %v1886_v1 = vsel %vm1401_vm10, %v1885_v27, %v1881_v13  ;;  %v1950_v38 = vsel %vm1380_vm7, %v1949_v57, %v1945_v4 }
 0x18a   : > { %v1807_v45 = vsel %vm1401_vm10, %v1806_v29, %v1802_v23  ;;  %v1955_v3 = vsel %vm1387_vm8, %v1954_v20, %v1950_v38 }
 0x18b   : > { %v1816_v34 = vrot.slane %v1163_v41, %v7570_v8 }
 0x18c   : > { %v7913_v18 = vpop.xlane.xlu1 %1054  ;;  %v1010_v24 = vpop.xlane.xlu0 %1009 }
 0x18d   : > { %v1178_v56 = vmul.f32 0.020408163, %v1010_v24  ;;  %v1193_v24 = vmul.f32 0.020408163, %v7913_v18 }
 0x18f   : > { %v1890_v44 = vrot.slane %v1178_v56, %v7540_v36  ;;  %v1964_v7 = vrot.slane %v1193_v24, %v7548_v46 }
 0x190   : > { %v1013_v37 = vpop.xlane.xlu1 %1012  ;;  %v968_v42 = vpop.xlane.xlu0 %967 }
 0x191   : > { %v1164_v53 = vmul.f32 0.020408163, %v968_v42  ;;  %v1179_v30 = vmul.f32 0.020408163, %v1013_v37  ;;  %v1192_v42 = vmul.f32 0.020408163, %v7906_v2  ;;  %v1812_v37 = vsel %vm1408_vm11, %v1811_v43, %v1807_v45 }
 0x192   : > { %v1817_v62 = vsel %vm1415_vm12, %v1816_v34, %v1812_v37 }
 0x193   : > { %v1821_v33 = vrot.slane %v1164_v53, %v7560_v63  ;;  %v1895_v40 = vrot.slane %v1179_v30, %v7570_v8  ;;  %v1959_v51 = vrot.slane %v1192_v42, %v7529_v25 }
 0x194   : > { %v971_v19 = vpop.xlane.xlu1 %970  ;;  %v1058_v21 = vpop.xlane.xlu0 %1057 }
 0x195   : > { %v1165_v28 = vmul.f32 0.020408163, %v971_v19  ;;  %v1194_v26 = vmul.f32 0.020408163, %v1058_v21  ;;  %v1822_v2 = vsel %vm1422_vm13, %v1821_v33, %v1817_v62  ;;  %v1891_v19 = vsel %vm1408_vm11, %v1890_v44, %v1886_v1 }
 0x196   : > { %v1896_v5 = vsel %vm1415_vm12, %v1895_v40, %v1891_v19  ;;  %v1960_v17 = vsel %vm9475_vm5, %v1959_v51, %v1955_v3 }
 0x197   : > { %v1826_v10 = vrot.slane %v1165_v28, %v7608_v59  ;;  %v1969_v25 = vrot.slane %v1194_v26, %v7540_v36 }
 0x198   : > { %v1061_v39 = vpop.xlane.xlu1 %1060  ;;  %v1016_v15 = vpop.xlane.xlu0 %1015 }
 0x199   : > { %v1180_v60 = vmul.f32 0.020408163, %v1016_v15  ;;  %v1195_v18 = vmul.f32 0.020408163, %v1061_v39  ;;  %v1827_v35 = vsel %vm1429_vm14, %v1826_v10, %v1822_v2 }
 0x19b   : > { %v1900_v6 = vrot.slane %v1180_v60, %v7560_v63  ;;  %v1974_v61 = vrot.slane %v1195_v18, %v7570_v8 }
 0x19c   : > { %v1019_v58 = vpop.xlane.xlu1 %1018  ;;  %v974_v52 = vpop.xlane.xlu0 %973 }
 0x19d   : > { %v1181_v50 = vmul.f32 0.020408163, %v1019_v58  ;;  %v1166_v32 = vmul.f32 0.020408163, %v974_v52  ;;  %v1901_v31 = vsel %vm1422_vm13, %v1900_v6, %v1896_v5 }
 0x19f   : > { %v1831_v47 = vrot.slane %v1166_v32, %v7594_v48  ;;  %v1905_v54 = vrot.slane %v1181_v50, %v7608_v59 }
 0x1a0   : > { %v1022_v16 = vpop.xlane.xlu1 %1021  ;;  %v1064_v0 = vpop.xlane.xlu0 %1063 }
 0x1a1   : > { %v1832_v21 = vsel %vm1436_vm15, %v1831_v47, %v1827_v35  ;;  %v1182_v14 = vmul.f32 0.020408163, %v1022_v16  ;;  %v1196_v11 = vmul.f32 0.020408163, %v1064_v0  ;;  %v1906_v29 = vsel %vm1429_vm14, %v1905_v54, %v1901_v31 }
 0x1a2   : > { %v2000_v46 = vsel %vm1999_vm1, %v1832_v21, %v7888_v12  ;;  %v1965_v12 = vsel %vm1401_vm10, %v1964_v7, %v1960_v17 }
 0x1a3   : > { %v1910_v41 = vrot.slane %v1182_v14, %v7594_v48  ;;  %v1979_v49 = vrot.slane %v1196_v11, %v7560_v63  ;;  %v1970_v9 = vsel %vm1408_vm11, %v1969_v25, %v1965_v12 }
 0x1a4   : > { %v1067_v36 = vpop.xlane.xlu0 %1066  ;;  %v1070_v53 = vpop.xlane.xlu1 %1069  ;;  %v1975_v39 = vsel %vm1415_vm12, %v1974_v61, %v1970_v9 }
 0x1a5   : > { %v1911_v4 = vsel %vm1436_vm15, %v1910_v41, %v1906_v29  ;;  %v1197_v22 = vmul.f32 0.020408163, %v1067_v36  ;;  %v1198_v8 = vmul.f32 0.020408163, %v1070_v53  ;;  %v1980_v63 = vsel %vm1422_vm13, %v1979_v49, %v1975_v39 }
 0x1a6   : > { %v2002_v28 = vsel %vm2001_vm3, %v1911_v4, %v2000_v46  ;;  %39 = sbr.rel (!%p37_p1) target bundleno = 13 (0xd), region = 78 }
 0x1a7   : > { %v1984_v15 = vrot.slane %v1197_v22, %v7608_v59  ;;  %v1989_v55 = vrot.slane %v1198_v8, %v7594_v48 }
 0x1a9   : > { %v1985_v23 = vsel %vm1429_vm14, %v1984_v15, %v1980_v63 }
 0x1aa   : > { %v1990_v43 = vsel %vm1436_vm15, %v1989_v55, %v1985_v23 }
 0x1ab   : > { %v2004_v56 = vsel %vm2003_vm6, %v1990_v43, %v2002_v28 }
 0x1ac   : > { %2010 = vst [vmem:[%s2009_s10] sm:$0xff] %v2004_v56 }
 0x1ad PF:  { %2013 = sbr.rel (%p31_p0) target bundleno = 921 (0x399), region = 40  ;;  %s8006_s11 = smov (!%p31_p0), 0  }
 0x1b4 LB: > { %s5841_s12 = sshll.u32 %s7303_s11, 7  ;;  %v8037_v3 = vstv %s9465_s3  ;;  %vm3050_vm7 = vcmask 400384   ;;  %vm3702_vm8 = vcmask 130112   ;;  %vm3709_vm10 = vcmask 195712   ;;  %s2019_s11 = sadd.s32 1, %s7303_s11   ;;  %s7303_s11 = sphi %s8006_s11, %s2019_s11  }
 0x1b5   : > { %s2021_s13 = sshra.s32 %s5841_s12, 3  ;;  %vm3716_vm11 = vcmask 261312   ;;  %vm3723_vm12 = vcmask 326912   ;;  %vm3730_vm13 = vcmask 392512   ;;  %vm3737_vm14 = vcmask 458112   ;;  %s4370_s20 = sshra.s32 %s5841_s12, 7 }
 0x1b6   : > { %s5842_s14 = sshll.u32 %s2021_s13, 2  ;;  %vm3744_vm15 = vcmask 523712   ;;  %vm9470_vm0 = vcmask 589312   ;;  %vm3758_vm9 = vcmask 654912   ;;  %vm3765_vm1 = vcmask 720512   ;;  %s5843_s21 = sshll.u32 %s4370_s20, 3 }
 0x1b7   : > { %s8017_s17 = scalar_lea.vmem %s9462_s0, %s5842_s14  ;;  %vm3772_vm2 = vcmask 786112   ;;  %vm3779_vm3 = vcmask 851712   ;;  %vm3786_vm4 = vcmask 917312   ;;  %vm3793_vm5 = vcmask 982912   ;;  %s4373_s22 = scalar_lea.vmem [#allocation2], %s5843_s21 }
 0x1b8   : > { %v6582_v48 = vld [vmem:[%s8017_s17 + $0x8] sm:$0xff]   ;;  %v6264_v59 = vld [vmem:[%s8017_s17] sm:$0xff]   ;;  %v6583_v57 = vld [vmem:[%s8017_s17 + $0x10] sm:$0xff]   ;;  %vm3800_vm6 = vcmask 1048512   ;;  %p2016_p2 = scmp.ge.s32.totalorder %s2019_s11, 16  }
 0x1b9   : > { %v6269_v27 = vunpack.c.l.bf16 %v6582_v48  ;;  %v6265_v34 = vunpack.c.l.bf16 %v6264_v59  ;;  %v6270_v30 = vunpack.c.h.bf16 %v6582_v48  ;;  %v6266_v45 = vunpack.c.h.bf16 %v6264_v59  ;;  %v6584_v20 = vld [vmem:[%s8017_s17 + $0x18] sm:$0xff]   ;;  %v6585_v13 = vld [vmem:[%s8017_s17 + $0x20] sm:$0xff]   ;;  %v6586_v44 = vld [vmem:[%s8017_s17 + $0x28] sm:$0xff]  }
 0x1ba   : > { %v6274_v33 = vunpack.c.h.bf16 %v6583_v57  ;;  %v6273_v60 = vunpack.c.l.bf16 %v6583_v57  ;;  %v6278_v58 = vunpack.c.h.bf16 %v6584_v20  ;;  %v6277_v37 = vunpack.c.l.bf16 %v6584_v20  ;;  %v6587_v40 = vld [vmem:[%s8017_s17 + $0x30] sm:$0xff]   ;;  %v6588_v47 = vld [vmem:[%s8017_s17 + $0x38] sm:$0xff]   ;;  %v6589_v35 = vld [vmem:[%s8017_s17 + $0x400] sm:$0xff]  }
 0x1bb   : > { %v2283_v42 = vmax.f32 %v6269_v27, 1e-06  ;;  %v2281_v24 = vmax.f32 %v6265_v34, 1e-06  ;;  %v2284_v10 = vmax.f32 %v6270_v30, 1e-06  ;;  %v6282_v32 = vunpack.c.h.bf16 %v6585_v13 }
 0x1bc   : > { %v2282_v52 = vmax.f32 %v6266_v45, 1e-06  ;;  %v2286_v50 = vmax.f32 %v6274_v33, 1e-06  ;;  %v2285_v1 = vmax.f32 %v6273_v60, 1e-06  ;;  %v6281_v62 = vunpack.c.l.bf16 %v6585_v13 }
 0x1bd   : > { %6706 = vlog2.f32 %v2283_v42  ;;  %v2288_v26 = vmax.f32 %v6278_v58, 1e-06  ;;  %v6286_v2 = vunpack.c.h.bf16 %v6586_v44  ;;  %v2287_v18 = vmax.f32 %v6277_v37, 1e-06  ;;  %v8029_v14 = vld [vmem:[%s8017_s17 + $0x408] sm:$0xff]   ;;  %v8032_v46 = vld [vmem:[%s8017_s17 + $0x410] sm:$0xff]  }
 0x1be   : > { %6708 = vlog2.f32 %v2281_v24  ;;  %v6285_v6 = vunpack.c.l.bf16 %v6586_v44  ;;  %v2290_v51 = vmax.f32 %v6282_v32, 1e-06  ;;  %v6290_v7 = vunpack.c.h.bf16 %v6587_v40  ;;  %v8043_v22 = vld [vmem:[%s8017_s17 + $0x418] sm:$0xff]  }
 0x1bf   : > { %6710 = vlog2.f32 %v2284_v10  ;;  %v2289_v54 = vmax.f32 %v6281_v62, 1e-06  ;;  %v6289_v16 = vunpack.c.l.bf16 %v6587_v40  ;;  %v2292_v0 = vmax.f32 %v6286_v2, 1e-06 }
 0x1c0   : > { %6712 = vlog2.f32 %v2282_v52  ;;  %v6294_v19 = vunpack.c.h.bf16 %v6588_v47  ;;  %v6293_v21 = vunpack.c.l.bf16 %v6588_v47  ;;  %v2291_v11 = vmax.f32 %v6285_v6, 1e-06 }
 0x1c1   : > { %6714 = vlog2.f32 %v2286_v50  ;;  %v6298_v38 = vunpack.c.h.bf16 %v6589_v35  ;;  %v2294_v5 = vmax.f32 %v6290_v7, 1e-06  ;;  %v6297_v25 = vunpack.c.l.bf16 %v6589_v35 }
 0x1c2   : > { %6716 = vlog2.f32 %v2285_v1  ;;  %v2293_v61 = vmax.f32 %v6289_v16, 1e-06  ;;  %v6302_v31 = vunpack.c.h.bf16 %v8029_v14  ;;  %v2296_v17 = vmax.f32 %v6294_v19, 1e-06 }
 0x1c3   : > { %6718 = vlog2.f32 %v2288_v26  ;;  %v2295_v29 = vmax.f32 %v6293_v21, 1e-06  ;;  %v6301_v49 = vunpack.c.l.bf16 %v8029_v14  ;;  %v2298_v12 = vmax.f32 %v6298_v38, 1e-06 }
 0x1c4   : > { %6720 = vlog2.f32 %v2287_v18  ;;  %v6306_v4 = vunpack.c.h.bf16 %v8032_v46  ;;  %v8045_v28 = vmax.f32 %v6297_v25, 1e-06  ;;  %v6305_v39 = vunpack.c.l.bf16 %v8032_v46 }
 0x1c5   : > { %6722 = vlog2.f32 %v2290_v51  ;;  %v8049_v23 = vmax.f32 %v6302_v31, 1e-06  ;;  %v6310_v59 = vunpack.c.h.bf16 %v8043_v22 }
 0x1c6   : > { %6724 = vlog2.f32 %v2289_v54 }
 0x1c7   : > { %v6707_v41 = vpop.eup %6706  ;;  %6726 = vlog2.f32 %v2292_v0  ;;  %v2304_v14 = vmax.f32 %v6310_v59, 1e-06 }
 0x1c8   : > { %v6709_v36 = vpop.eup %6708  ;;  %v2414_v53 = vmul.f32 0.6931472, %v6707_v41  ;;  %6728 = vlog2.f32 %v2291_v11 }
 0x1c9   : > { %v6711_v8 = vpop.eup %6710  ;;  %v2410_v9 = vmul.f32 0.6931472, %v6709_v36  ;;  %6730 = vlog2.f32 %v2294_v5 }
 0x1ca   : > { %v6713_v15 = vpop.eup %6712  ;;  %v2668_v55 = vmul.f32 %v8037_v3, %v2414_v53  ;;  %v2416_v63 = vmul.f32 0.6931472, %v6711_v8  ;;  %6732 = vlog2.f32 %v2293_v61 }
 0x1cb   : > { %v6715_v43 = vpop.eup %6714  ;;  %v2666_v56 = vmul.f32 %v8037_v3, %v2410_v9  ;;  %v2412_v48 = vmul.f32 0.6931472, %v6713_v15  ;;  %6734 = vlog2.f32 %v2296_v17 }
 0x1cc   : > { %v6717_v57 = vpop.eup %6716  ;;  %v2798_v27 = vmul.f32 1.442695, %v2668_v55  ;;  %v2669_v34 = vmul.f32 %v8037_v3, %v2416_v63  ;;  %v2420_v30 = vmul.f32 0.6931472, %v6715_v43  ;;  %6736 = vlog2.f32 %v2295_v29 }
 0x1cd   : > { %v6719_v45 = vpop.eup %6718  ;;  %v2794_v20 = vmul.f32 1.442695, %v2666_v56  ;;  %v2667_v33 = vmul.f32 %v8037_v3, %v2412_v48  ;;  %v2418_v60 = vmul.f32 0.6931472, %v6717_v57  ;;  %6738 = vlog2.f32 %v2298_v12 }
 0x1ce   : > { %v6721_v13 = vpop.eup %6720  ;;  %6740 = vpow2.f32 %v2798_v27  ;;  %v2800_v42 = vmul.f32 1.442695, %v2669_v34  ;;  %v2671_v24 = vmul.f32 %v8037_v3, %v2420_v30  ;;  %v2424_v10 = vmul.f32 0.6931472, %v6719_v45  ;;  %v6593_v34 = vld [vmem:[%s8017_s17 + $0x420] sm:$0xff]  }
 0x1cf   : > { %v6723_v58 = vpop.eup %6722  ;;  %6742 = vpow2.f32 %v2794_v20  ;;  %v2796_v52 = vmul.f32 1.442695, %v2667_v33  ;;  %v2670_v37 = vmul.f32 %v8037_v3, %v2418_v60  ;;  %v2422_v44 = vmul.f32 0.6931472, %v6721_v13 }
 0x1d0   : > { %v6725_v50 = vpop.eup %6724  ;;  %6744 = vpow2.f32 %v2800_v42  ;;  %v2804_v32 = vmul.f32 1.442695, %v2671_v24  ;;  %v2673_v1 = vmul.f32 %v8037_v3, %v2424_v10  ;;  %v2428_v62 = vmul.f32 0.6931472, %v6723_v58  ;;  %v6594_v10 = vld [vmem:[%s8017_s17 + $0x428] sm:$0xff]  }
 0x1d1   : > { %v6727_v40 = vpop.eup %6726  ;;  %6746 = vpow2.f32 %v2796_v52  ;;  %v2802_v26 = vmul.f32 1.442695, %v2670_v37  ;;  %v2672_v2 = vmul.f32 %v8037_v3, %v2422_v44  ;;  %v2426_v18 = vmul.f32 0.6931472, %v6725_v50 }
 0x1d2   : > { %v6729_v6 = vpop.eup %6728  ;;  %6748 = vpow2.f32 %v2804_v32  ;;  %v2808_v47 = vmul.f32 1.442695, %v2673_v1  ;;  %v2675_v51 = vmul.f32 %v8037_v3, %v2428_v62  ;;  %v2432_v7 = vmul.f32 0.6931472, %v6727_v40 }
 0x1d3   : > { %v6731_v35 = vpop.eup %6730  ;;  %6750 = vpow2.f32 %v2802_v26  ;;  %v2806_v54 = vmul.f32 1.442695, %v2672_v2  ;;  %v2674_v16 = vmul.f32 %v8037_v3, %v2426_v18  ;;  %v2430_v0 = vmul.f32 0.6931472, %v6729_v6  ;;  %v6595_v18 = vld [vmem:[%s8017_s17 + $0x430] sm:$0xff]  }
 0x1d4   : > { %v6733_v19 = vpop.eup %6732  ;;  %6752 = vpow2.f32 %v2808_v47  ;;  %v2812_v21 = vmul.f32 1.442695, %v2675_v51  ;;  %v2677_v11 = vmul.f32 %v8037_v3, %v2432_v7  ;;  %v2436_v38 = vmul.f32 0.6931472, %v6731_v35  ;;  %v6596_v51 = vld [vmem:[%s8017_s17 + $0x438] sm:$0xff]   ;;  %v6597_v35 = vld [vmem:[%s8017_s17 + $0x800] sm:$0xff]  }
 0x1d5   : > { %v6735_v5 = vpop.eup %6734  ;;  %6754 = vpow2.f32 %v2806_v54  ;;  %v2810_v25 = vmul.f32 1.442695, %v2674_v16  ;;  %v2676_v61 = vmul.f32 %v8037_v3, %v2430_v0  ;;  %v2434_v31 = vmul.f32 0.6931472, %v6733_v19 }
 0x1d6   : > { %v6737_v41 = vpop.eup %6736  ;;  %6756 = vpow2.f32 %v2812_v21  ;;  %v2816_v17 = vmul.f32 1.442695, %v2677_v11  ;;  %v2679_v29 = vmul.f32 %v8037_v3, %v2436_v38  ;;  %v2440_v36 = vmul.f32 0.6931472, %v6735_v5  ;;  %v6598_v21 = vld [vmem:[%s8017_s17 + $0x808] sm:$0xff]  }
 0x1d7   : > { %v6739_v53 = vpop.eup %6738  ;;  %6758 = vpow2.f32 %v2810_v25  ;;  %v2814_v12 = vmul.f32 1.442695, %v2676_v61  ;;  %v2678_v8 = vmul.f32 %v8037_v3, %v2434_v31  ;;  %v2438_v9 = vmul.f32 0.6931472, %v6737_v41 }
 0x1d8   : > { %v6741_v15 = vpop.eup %6740  ;;  %6760 = vpow2.f32 %v2816_v17  ;;  %v2820_v55 = vmul.f32 1.442695, %v2679_v29  ;;  %v2681_v63 = vmul.f32 %v8037_v3, %v2440_v36  ;;  %v2444_v43 = vmul.f32 0.6931472, %v6739_v53 }
 0x1d9   : > { %v6743_v56 = vpop.eup %6742  ;;  %v3057_v48 = vsel %vm3050_vm7, %v6741_v15, 0.0  ;;  %6762 = vpow2.f32 %v2814_v12  ;;  %v2818_v57 = vmul.f32 1.442695, %v2678_v8  ;;  %v2680_v27 = vmul.f32 %v8037_v3, %v2438_v9 }
 0x1da   : > { %v6745_v30 = vpop.eup %6744  ;;  %3058 = vadd.xlane.f32.xlu1 %v3057_v48  ;;  %v3051_v45 = vsel %vm3050_vm7, %v6743_v56, 0.0  ;;  %6764 = vpow2.f32 %v2820_v55  ;;  %v2824_v20 = vmul.f32 1.442695, %v2681_v63  ;;  %v2683_v33 = vmul.f32 %v8037_v3, %v2444_v43  ;;  %v8095_v63 = vld [vmem:[%s8017_s17 + $0x810] sm:$0xff]  }
 0x1db   : > { %v6747_v60 = vpop.eup %6746  ;;  %3052 = vadd.xlane.f32.xlu0 %v3051_v45  ;;  %v3060_v13 = vsel %vm3050_vm7, %v6745_v30, 0.0  ;;  %6766 = vpow2.f32 %v2818_v57  ;;  %v2822_v42 = vmul.f32 1.442695, %v2680_v27  ;;  %v6309_v24 = vunpack.c.l.bf16 %v8043_v22  ;;  %v8100_v27 = vld [vmem:[%s8017_s17 + $0x818] sm:$0xff]  }
 0x1dc   : > { %v6749_v58 = vpop.eup %6748  ;;  %v3054_v52 = vsel %vm3050_vm7, %v6747_v60, 0.0  ;;  %6768 = vpow2.f32 %v2824_v20  ;;  %v2828_v37 = vmul.f32 1.442695, %v2683_v33  ;;  %v6314_v44 = vunpack.c.h.bf16 %v6593_v34 }
 0x1dd   : > { %v6751_v50 = vpop.eup %6750  ;;  %6770 = vpow2.f32 %v2822_v42  ;;  %v2299_v32 = vmax.f32 %v6301_v49, 1e-06  ;;  %v6313_v1 = vunpack.c.l.bf16 %v6593_v34  ;;  %v2302_v40 = vmax.f32 %v6306_v4, 1e-06 }
 0x1de   : > { %v6753_v62 = vpop.eup %6752  ;;  %3061 = vadd.xlane.f32.xlu1 %v3060_v13  ;;  %6772 = vpow2.f32 %v2828_v37  ;;  %v2301_v26 = vmax.f32 %v6305_v39, 1e-06  ;;  %v6318_v2 = vunpack.c.h.bf16 %v6594_v10  ;;  %v3066_v47 = vsel %vm3050_vm7, %v6749_v58, 0.0 }
 0x1df   : > { %v6755_v6 = vpop.eup %6754  ;;  %3055 = vadd.xlane.f32.xlu0 %v3054_v52  ;;  %6774 = vlog2.f32 %v8045_v28  ;;  %v6317_v49 = vunpack.c.l.bf16 %v6594_v10  ;;  %v3063_v4 = vsel %vm3050_vm7, %v6751_v50, 0.0  ;;  %v2303_v46 = vmax.f32 %v6309_v24, 1e-06 }
 0x1e0   : > { %v6757_v7 = vpop.eup %6756  ;;  %6776 = vlog2.f32 %v8049_v23  ;;  %v2306_v39 = vmax.f32 %v6314_v44, 1e-06  ;;  %v2305_v16 = vmax.f32 %v6313_v1, 1e-06  ;;  %v6322_v0 = vunpack.c.h.bf16 %v6595_v18 }
 0x1e1   : > { %v6759_v54 = vpop.eup %6758  ;;  %6778 = vlog2.f32 %v2299_v32  ;;  %v6321_v19 = vunpack.c.l.bf16 %v6595_v18  ;;  %v2308_v22 = vmax.f32 %v6318_v2, 1e-06  ;;  %v6326_v59 = vunpack.c.h.bf16 %v6596_v51 }
 0x1e2   : > { %v6761_v28 = vpop.eup %6760  ;;  %3067 = vadd.xlane.f32.xlu1 %v3066_v47  ;;  %6780 = vlog2.f32 %v2302_v40  ;;  %v6325_v11 = vunpack.c.l.bf16 %v6596_v51  ;;  %v3072_v5 = vsel %vm3050_vm7, %v6753_v62, 0.0  ;;  %v2307_v23 = vmax.f32 %v6317_v49, 1e-06 }
 0x1e3   : > { %v6763_v38 = vpop.eup %6762  ;;  %3064 = vadd.xlane.f32.xlu0 %v3063_v4  ;;  %6782 = vlog2.f32 %v2301_v26  ;;  %v6330_v25 = vunpack.c.h.bf16 %v6597_v35  ;;  %v3069_v31 = vsel %vm3050_vm7, %v6755_v6, 0.0  ;;  %v6329_v41 = vunpack.c.l.bf16 %v6597_v35 }
 0x1e4   : > { %v6765_v61 = vpop.eup %6764  ;;  %6784 = vlog2.f32 %v2304_v14  ;;  %v6334_v17 = vunpack.c.h.bf16 %v6598_v21  ;;  %v2310_v36 = vmax.f32 %v6322_v0, 1e-06  ;;  %v2309_v53 = vmax.f32 %v6321_v19, 1e-06 }
 0x1e5   : > { %v6767_v29 = vpop.eup %6766  ;;  %6786 = vlog2.f32 %v2303_v46  ;;  %v6333_v12 = vunpack.c.l.bf16 %v6598_v21  ;;  %v3078_v9 = vsel %vm3050_vm7, %v6757_v7, 0.0  ;;  %v2312_v15 = vmax.f32 %v6326_v59, 1e-06 }
 0x1e6   : > { %v6769_v8 = vpop.eup %6768  ;;  %3073 = vadd.xlane.f32.xlu1 %v3072_v5  ;;  %6788 = vlog2.f32 %v2306_v39  ;;  %v2311_v55 = vmax.f32 %v6325_v11, 1e-06  ;;  %v3075_v56 = vsel %vm3050_vm7, %v6759_v54, 0.0  ;;  %v3084_v48 = vsel %vm3050_vm7, %v6761_v28, 0.0 }
 0x1e7   : > { %v6771_v43 = vpop.eup %6770  ;;  %3070 = vadd.xlane.f32.xlu0 %v3069_v31  ;;  %6790 = vlog2.f32 %v2305_v16  ;;  %v2314_v57 = vmax.f32 %v6330_v25, 1e-06  ;;  %v3081_v30 = vsel %vm3050_vm7, %v6763_v38, 0.0  ;;  %v2313_v45 = vmax.f32 %v6329_v41, 1e-06 }
 0x1e8   : > { %v6773_v34 = vpop.eup %6772  ;;  %6792 = vlog2.f32 %v2308_v22  ;;  %v8103_v20 = vmax.f32 %v6334_v17, 1e-06  ;;  %v3090_v60 = vsel %vm3050_vm7, %v6765_v61, 0.0  ;;  %v8106_v13 = vmax.f32 %v6333_v12, 1e-06 }
 0x1e9   : > { %v6775_v33 = vpop.eup %6774  ;;  %6794 = vlog2.f32 %v2307_v23  ;;  %v6338_v42 = vunpack.c.h.bf16 %v8095_v63  ;;  %v6337_v58 = vunpack.c.l.bf16 %v8095_v63  ;;  %v6342_v52 = vunpack.c.h.bf16 %v8100_v27 }
 0x1ea   : > { %v6777_v24 = vpop.eup %6776  ;;  %3079 = vadd.xlane.f32.xlu1 %v3078_v9  ;;  %v2442_v10 = vmul.f32 0.6931472, %v6775_v33  ;;  %6796 = vlog2.f32 %v2310_v36  ;;  %v3087_v44 = vsel %vm3050_vm7, %v6767_v29, 0.0  ;;  %v3096_v50 = vsel %vm3050_vm7, %v6769_v8, 0.0 }
 0x1eb   : > { %v6779_v37 = vpop.eup %6778  ;;  %3076 = vadd.xlane.f32.xlu0 %v3075_v56  ;;  %v2448_v32 = vmul.f32 0.6931472, %v6777_v24  ;;  %6798 = vlog2.f32 %v2309_v53  ;;  %v3093_v62 = vsel %vm3050_vm7, %v6771_v43, 0.0  ;;  %v8116_v18 = vsel %vm3050_vm7, %v6773_v34, 0.0 }
 0x1ec   : > { %v6781_v1 = vpop.eup %6780  ;;  %v2682_v40 = vmul.f32 %v8037_v3, %v2442_v10  ;;  %v2446_v26 = vmul.f32 0.6931472, %v6779_v37  ;;  %6800 = vlog2.f32 %v2312_v15 }
 0x1ed   : > { %v6783_v2 = vpop.eup %6782  ;;  %v2685_v6 = vmul.f32 %v8037_v3, %v2448_v32  ;;  %v2452_v47 = vmul.f32 0.6931472, %v6781_v1  ;;  %6802 = vlog2.f32 %v2311_v55 }
 0x1ee   : > { %v6785_v14 = vpop.eup %6784  ;;  %3085 = vadd.xlane.f32.xlu1 %v3084_v48  ;;  %v2826_v49 = vmul.f32 1.442695, %v2682_v40  ;;  %v2684_v51 = vmul.f32 %v8037_v3, %v2446_v26  ;;  %v2450_v7 = vmul.f32 0.6931472, %v6783_v2  ;;  %6804 = vlog2.f32 %v2314_v57 }
 0x1ef   : > { %v6787_v4 = vpop.eup %6786  ;;  %3082 = vadd.xlane.f32.xlu0 %v3081_v30  ;;  %v2832_v46 = vmul.f32 1.442695, %v2685_v6  ;;  %v2687_v39 = vmul.f32 %v8037_v3, %v2452_v47  ;;  %v2456_v35 = vmul.f32 0.6931472, %v6785_v14  ;;  %6806 = vlog2.f32 %v2313_v45 }
 0x1f0   : > { %v6789_v54 = vpop.eup %6788  ;;  %6808 = vpow2.f32 %v2826_v49  ;;  %v2830_v16 = vmul.f32 1.442695, %v2684_v51  ;;  %v2686_v0 = vmul.f32 %v8037_v3, %v2450_v7  ;;  %v2454_v19 = vmul.f32 0.6931472, %v6787_v4  ;;  %v6601_v49 = vld [vmem:[%s8017_s17 + $0x820] sm:$0xff]  }
 0x1f1   : > { %v6791_v21 = vpop.eup %6790  ;;  %6810 = vpow2.f32 %v2832_v46  ;;  %v2836_v28 = vmul.f32 1.442695, %v2687_v39  ;;  %v2689_v22 = vmul.f32 %v8037_v3, %v2456_v35  ;;  %v2460_v59 = vmul.f32 0.6931472, %v6789_v54  ;;  %v6602_v46 = vld [vmem:[%s8017_s17 + $0x828] sm:$0xff]  }
 0x1f2   : > { %v6793_v11 = vpop.eup %6792  ;;  %3091 = vadd.xlane.f32.xlu1 %v3090_v60  ;;  %6812 = vpow2.f32 %v2830_v16  ;;  %v2834_v38 = vmul.f32 1.442695, %v2686_v0  ;;  %v2688_v5 = vmul.f32 %v8037_v3, %v2454_v19  ;;  %v2458_v23 = vmul.f32 0.6931472, %v6791_v21 }
 0x1f3   : > { %v6795_v25 = vpop.eup %6794  ;;  %3088 = vadd.xlane.f32.xlu0 %v3087_v44  ;;  %6814 = vpow2.f32 %v2836_v28  ;;  %v2840_v61 = vmul.f32 1.442695, %v2689_v22  ;;  %v2691_v31 = vmul.f32 %v8037_v3, %v2460_v59  ;;  %v2464_v41 = vmul.f32 0.6931472, %v6793_v11  ;;  %v6603_v22 = vld [vmem:[%s8017_s17 + $0x830] sm:$0xff]  }
 0x1f4   : > { %v6797_v17 = vpop.eup %6796  ;;  %6816 = vpow2.f32 %v2834_v38  ;;  %v2838_v29 = vmul.f32 1.442695, %v2688_v5  ;;  %v2690_v36 = vmul.f32 %v8037_v3, %v2458_v23  ;;  %v2462_v53 = vmul.f32 0.6931472, %v6795_v25 }
 0x1f5   : > { %v6799_v12 = vpop.eup %6798  ;;  %6818 = vpow2.f32 %v2840_v61  ;;  %v2844_v8 = vmul.f32 1.442695, %v2691_v31  ;;  %v2693_v9 = vmul.f32 %v8037_v3, %v2464_v41  ;;  %v2468_v15 = vmul.f32 0.6931472, %v6797_v17  ;;  %v6604_v41 = vld [vmem:[%s8017_s17 + $0x838] sm:$0xff]  }
 0x1f6   : > { %v6801_v55 = vpop.eup %6800  ;;  %3097 = vadd.xlane.f32.xlu1 %v3096_v50  ;;  %6820 = vpow2.f32 %v2838_v29  ;;  %v2842_v43 = vmul.f32 1.442695, %v2690_v36  ;;  %v2692_v56 = vmul.f32 %v8037_v3, %v2462_v53  ;;  %v2466_v48 = vmul.f32 0.6931472, %v6799_v12  ;;  %v6605_v53 = vld [vmem:[%s8017_s17 + $0xc00] sm:$0xff]  }
 0x1f7   : > { %v6803_v57 = vpop.eup %6802  ;;  %3094 = vadd.xlane.f32.xlu0 %v3093_v62  ;;  %6822 = vpow2.f32 %v2844_v8  ;;  %v2848_v34 = vmul.f32 1.442695, %v2693_v9  ;;  %v2695_v30 = vmul.f32 %v8037_v3, %v2468_v15  ;;  %v2472_v45 = vmul.f32 0.6931472, %v6801_v55  ;;  %v6606_v55 = vld [vmem:[%s8017_s17 + $0xc08] sm:$0xff]  }
 0x1f8   : > { %v6805_v33 = vpop.eup %6804  ;;  %6824 = vpow2.f32 %v2842_v43  ;;  %v2846_v60 = vmul.f32 1.442695, %v2692_v56  ;;  %v2694_v24 = vmul.f32 %v8037_v3, %v2466_v48  ;;  %v2470_v10 = vmul.f32 0.6931472, %v6803_v57  ;;  %v8157_v57 = vld [vmem:[%s8017_s17 + $0xc10] sm:$0xff]  }
 0x1f9   : > { %v6807_v37 = vpop.eup %6806  ;;  %6826 = vpow2.f32 %v2848_v34  ;;  %v2852_v44 = vmul.f32 1.442695, %v2695_v30  ;;  %v2697_v50 = vmul.f32 %v8037_v3, %v2472_v45  ;;  %v2476_v32 = vmul.f32 0.6931472, %v6805_v33 }
 0x1fa   : > { %v6809_v1 = vpop.eup %6808  ;;  %3103 = vadd.xlane.f32.xlu1 %v8116_v18  ;;  %6828 = vpow2.f32 %v2846_v60  ;;  %v2850_v62 = vmul.f32 1.442695, %v2694_v24  ;;  %v2696_v40 = vmul.f32 %v8037_v3, %v2470_v10  ;;  %v2474_v26 = vmul.f32 0.6931472, %v6807_v37 }
 0x1fb   : > { %v6811_v2 = vpop.eup %6810  ;;  %v3099_v6 = vsel %vm3050_vm7, %v6809_v1, 0.0  ;;  %6830 = vpow2.f32 %v2852_v44  ;;  %v2856_v47 = vmul.f32 1.442695, %v2697_v50  ;;  %v2699_v14 = vmul.f32 %v8037_v3, %v2476_v32 }
 0x1fc   : > { %v6813_v51 = vpop.eup %6812  ;;  %3100 = vadd.xlane.f32.xlu0 %v3099_v6  ;;  %v3108_v7 = vsel %vm3050_vm7, %v6811_v2, 0.0  ;;  %6832 = vpow2.f32 %v2850_v62  ;;  %v2854_v18 = vmul.f32 1.442695, %v2696_v40  ;;  %v2698_v4 = vmul.f32 %v8037_v3, %v2474_v26 }
 0x1fd   : > { %v6815_v39 = vpop.eup %6814  ;;  %v3105_v35 = vsel %vm3050_vm7, %v6813_v51, 0.0  ;;  %6834 = vpow2.f32 %v2856_v47  ;;  %v2860_v54 = vmul.f32 1.442695, %v2699_v14  ;;  %v6341_v16 = vunpack.c.l.bf16 %v8100_v27 }
 0x1fe   : > { %v6817_v0 = vpop.eup %6816  ;;  %3109 = vadd.xlane.f32.xlu1 %v3108_v7  ;;  %6836 = vpow2.f32 %v2854_v18  ;;  %v2858_v19 = vmul.f32 1.442695, %v2698_v4  ;;  %v6346_v21 = vunpack.c.h.bf16 %v6601_v49  ;;  %v6345_v28 = vunpack.c.l.bf16 %v6601_v49  ;;  %v8166_v49 = vld [vmem:[%s8017_s17 + $0xc18] sm:$0xff]  }
 0x1ff   : > { %v6819_v59 = vpop.eup %6818  ;;  %v3114_v11 = vsel %vm3050_vm7, %v6815_v39, 0.0  ;;  %6838 = vpow2.f32 %v2860_v54  ;;  %v2318_v38 = vmax.f32 %v6338_v42, 1e-06  ;;  %v6350_v5 = vunpack.c.h.bf16 %v6602_v46 }
 0x200   : > { %v6821_v23 = vpop.eup %6820  ;;  %3106 = vadd.xlane.f32.xlu0 %v3105_v35  ;;  %6840 = vpow2.f32 %v2858_v19  ;;  %v2317_v25 = vmax.f32 %v6337_v58, 1e-06  ;;  %v2320_v61 = vmax.f32 %v6342_v52, 1e-06  ;;  %v6349_v31 = vunpack.c.l.bf16 %v6602_v46 }
 0x201   : > { %v6823_v17 = vpop.eup %6822  ;;  %v3111_v29 = vsel %vm3050_vm7, %v6817_v0, 0.0  ;;  %6842 = vlog2.f32 %v8103_v20  ;;  %v2319_v36 = vmax.f32 %v6341_v16, 1e-06  ;;  %v6354_v42 = vunpack.c.h.bf16 %v6603_v22 }
 0x202   : > { %v6825_v12 = vpop.eup %6824  ;;  %3115 = vadd.xlane.f32.xlu1 %v3114_v11  ;;  %6844 = vlog2.f32 %v8106_v13  ;;  %v2322_v63 = vmax.f32 %v6346_v21, 1e-06  ;;  %v2321_v58 = vmax.f32 %v6345_v28, 1e-06  ;;  %v6353_v27 = vunpack.c.l.bf16 %v6603_v22 }
 0x203   : > { %v6827_v52 = vpop.eup %6826  ;;  %v3120_v8 = vsel %vm3050_vm7, %v6819_v59, 0.0  ;;  %6846 = vlog2.f32 %v2318_v38  ;;  %v2324_v9 = vmax.f32 %v6350_v5, 1e-06  ;;  %v6358_v15 = vunpack.c.h.bf16 %v6604_v41 }
 0x204   : > { %v6829_v43 = vpop.eup %6828  ;;  %3112 = vadd.xlane.f32.xlu0 %v3111_v29  ;;  %6848 = vlog2.f32 %v2317_v25  ;;  %v2323_v20 = vmax.f32 %v6349_v31, 1e-06  ;;  %v6357_v56 = vunpack.c.l.bf16 %v6604_v41  ;;  %v6362_v48 = vunpack.c.h.bf16 %v6605_v53 }
 0x205   : > { %v6831_v13 = vpop.eup %6830  ;;  %v3117_v34 = vsel %vm3050_vm7, %v6821_v23, 0.0  ;;  %6850 = vlog2.f32 %v2320_v61  ;;  %v2326_v30 = vmax.f32 %v6354_v42, 1e-06  ;;  %v6361_v45 = vunpack.c.l.bf16 %v6605_v53 }
 0x206   : > { %v6833_v33 = vpop.eup %6832  ;;  %3121 = vadd.xlane.f32.xlu1 %v3120_v8  ;;  %6852 = vlog2.f32 %v2319_v36  ;;  %v2325_v60 = vmax.f32 %v6353_v27, 1e-06  ;;  %v6366_v24 = vunpack.c.h.bf16 %v6606_v55  ;;  %v6365_v10 = vunpack.c.l.bf16 %v6606_v55 }
 0x207   : > { %v6835_v37 = vpop.eup %6834  ;;  %v3126_v44 = vsel %vm3050_vm7, %v6823_v17, 0.0  ;;  %6854 = vlog2.f32 %v2322_v63  ;;  %v2328_v50 = vmax.f32 %v6358_v15, 1e-06  ;;  %v6370_v32 = vunpack.c.h.bf16 %v8157_v57 }
 0x208   : > { %v6837_v1 = vpop.eup %6836  ;;  %3118 = vadd.xlane.f32.xlu0 %v3117_v34  ;;  %v3123_v62 = vsel %vm3050_vm7, %v6825_v12, 0.0  ;;  %6856 = vlog2.f32 %v2321_v58  ;;  %v2327_v40 = vmax.f32 %v6357_v56, 1e-06  ;;  %v2330_v26 = vmax.f32 %v6362_v48, 1e-06 }
 0x209   : > { %v6839_v2 = vpop.eup %6838  ;;  %v3132_v6 = vsel %vm3050_vm7, %v6827_v52, 0.0  ;;  %v3129_v47 = vsel %vm3050_vm7, %v6829_v43, 0.0  ;;  %6858 = vlog2.f32 %v2324_v9  ;;  %v2329_v14 = vmax.f32 %v6361_v45, 1e-06 }
 0x20a   : > { %v6841_v51 = vpop.eup %6840  ;;  %3127 = vadd.xlane.f32.xlu1 %v3126_v44  ;;  %v3138_v7 = vsel %vm3050_vm7, %v6831_v13, 0.0  ;;  %6860 = vlog2.f32 %v2323_v20  ;;  %v2332_v18 = vmax.f32 %v6366_v24, 1e-06  ;;  %v8169_v4 = vmax.f32 %v6365_v10, 1e-06 }
 0x20b   : > { %v6843_v46 = vpop.eup %6842  ;;  %v3135_v39 = vsel %vm3050_vm7, %v6833_v33, 0.0  ;;  %6862 = vlog2.f32 %v2326_v30  ;;  %v8172_v35 = vmax.f32 %v6370_v32, 1e-06  ;;  %v6369_v54 = vunpack.c.l.bf16 %v8157_v57 }
 0x20c   : > { %v6845_v16 = vpop.eup %6844  ;;  %3124 = vadd.xlane.f32.xlu0 %v3123_v62  ;;  %v2480_v0 = vmul.f32 0.6931472, %v6843_v46  ;;  %6864 = vlog2.f32 %v2325_v60  ;;  %v6374_v19 = vunpack.c.h.bf16 %v8166_v49  ;;  %v6373_v21 = vunpack.c.l.bf16 %v8166_v49 }
 0x20d   : > { %v6847_v28 = vpop.eup %6846  ;;  %v3144_v22 = vsel %vm3050_vm7, %v6835_v37, 0.0  ;;  %v3141_v59 = vsel %vm3050_vm7, %v6837_v1, 0.0  ;;  %v2478_v11 = vmul.f32 0.6931472, %v6845_v16  ;;  %6866 = vlog2.f32 %v2328_v50 }
 0x20e   : > { %v6849_v38 = vpop.eup %6848  ;;  %3133 = vadd.xlane.f32.xlu1 %v3132_v6  ;;  %v8180_v5 = vsel %vm3050_vm7, %v6839_v2, 0.0  ;;  %v2701_v23 = vmul.f32 %v8037_v3, %v2480_v0  ;;  %v2484_v25 = vmul.f32 0.6931472, %v6847_v28  ;;  %6868 = vlog2.f32 %v2327_v40 }
 0x20f   : > { %v6851_v61 = vpop.eup %6850  ;;  %v8184_v31 = vsel %vm3050_vm7, %v6841_v51, 0.0  ;;  %v2700_v41 = vmul.f32 %v8037_v3, %v2478_v11  ;;  %v2482_v17 = vmul.f32 0.6931472, %v6849_v38  ;;  %6870 = vlog2.f32 %v2330_v26 }
 0x210   : > { %v6853_v29 = vpop.eup %6852  ;;  %3130 = vadd.xlane.f32.xlu0 %v3129_v47  ;;  %v2864_v36 = vmul.f32 1.442695, %v2701_v23  ;;  %v2703_v42 = vmul.f32 %v8037_v3, %v2484_v25  ;;  %v2488_v53 = vmul.f32 0.6931472, %v6851_v61  ;;  %6872 = vlog2.f32 %v2329_v14  ;;  %v6609_v61 = vld [vmem:[%s8017_s17 + $0xc20] sm:$0xff]  }
 0x211   : > { %v6855_v12 = vpop.eup %6854  ;;  %v2862_v63 = vmul.f32 1.442695, %v2700_v41  ;;  %v2702_v58 = vmul.f32 %v8037_v3, %v2482_v17  ;;  %v2486_v27 = vmul.f32 0.6931472, %v6853_v29  ;;  %6874 = vlog2.f32 %v2332_v18 }
 0x212   : > { %v6857_v52 = vpop.eup %6856  ;;  %3139 = vadd.xlane.f32.xlu1 %v3138_v7  ;;  %6876 = vpow2.f32 %v2864_v36  ;;  %v2868_v8 = vmul.f32 1.442695, %v2703_v42  ;;  %v2705_v9 = vmul.f32 %v8037_v3, %v2488_v53  ;;  %v2492_v15 = vmul.f32 0.6931472, %v6855_v12  ;;  %v6610_v42 = vld [vmem:[%s8017_s17 + $0xc28] sm:$0xff]  }
 0x213   : > { %v6859_v55 = vpop.eup %6858  ;;  %6878 = vpow2.f32 %v2862_v63  ;;  %v2866_v43 = vmul.f32 1.442695, %v2702_v58  ;;  %v2704_v20 = vmul.f32 %v8037_v3, %v2486_v27  ;;  %v2490_v56 = vmul.f32 0.6931472, %v6857_v52 }
 0x214   : > { %v6861_v48 = vpop.eup %6860  ;;  %3136 = vadd.xlane.f32.xlu0 %v3135_v39  ;;  %6880 = vpow2.f32 %v2868_v8  ;;  %v2872_v13 = vmul.f32 1.442695, %v2705_v9  ;;  %v2707_v34 = vmul.f32 %v8037_v3, %v2492_v15  ;;  %v2496_v30 = vmul.f32 0.6931472, %v6859_v55  ;;  %v6611_v9 = vld [vmem:[%s8017_s17 + $0xc30] sm:$0xff]  }
 0x215   : > { %v6863_v45 = vpop.eup %6862  ;;  %6882 = vpow2.f32 %v2866_v43  ;;  %v2870_v33 = vmul.f32 1.442695, %v2704_v20  ;;  %v2706_v60 = vmul.f32 %v8037_v3, %v2490_v56  ;;  %v2494_v24 = vmul.f32 0.6931472, %v6861_v48 }
 0x216   : > { %v6865_v10 = vpop.eup %6864  ;;  %3145 = vadd.xlane.f32.xlu1 %v3144_v22  ;;  %6884 = vpow2.f32 %v2872_v13  ;;  %v2876_v37 = vmul.f32 1.442695, %v2707_v34  ;;  %v2709_v44 = vmul.f32 %v8037_v3, %v2496_v30  ;;  %v2500_v50 = vmul.f32 0.6931472, %v6863_v45  ;;  %v6612_v30 = vld [vmem:[%s8017_s17 + $0xc38] sm:$0xff]  }
 0x217   : > { %v6867_v32 = vpop.eup %6866  ;;  %6886 = vpow2.f32 %v2870_v33  ;;  %v2874_v1 = vmul.f32 1.442695, %v2706_v60  ;;  %v2708_v62 = vmul.f32 %v8037_v3, %v2494_v24  ;;  %v2498_v40 = vmul.f32 0.6931472, %v6865_v10 }
 0x218   : > { %v6869_v26 = vpop.eup %6868  ;;  %3142 = vadd.xlane.f32.xlu0 %v3141_v59  ;;  %6888 = vpow2.f32 %v2876_v37  ;;  %v2880_v2 = vmul.f32 1.442695, %v2709_v44  ;;  %v2711_v6 = vmul.f32 %v8037_v3, %v2500_v50  ;;  %v2504_v47 = vmul.f32 0.6931472, %v6867_v32  ;;  %v6613_v44 = vld [vmem:[%s8017_s17 + $0x1000] sm:$0xff]  }
 0x219   : > { %v6871_v14 = vpop.eup %6870  ;;  %6890 = vpow2.f32 %v2874_v1  ;;  %v2878_v51 = vmul.f32 1.442695, %v2708_v62  ;;  %v2710_v7 = vmul.f32 %v8037_v3, %v2498_v40  ;;  %v2502_v18 = vmul.f32 0.6931472, %v6869_v26  ;;  %v6614_v62 = vld [vmem:[%s8017_s17 + $0x1008] sm:$0xff]  }
 0x21a   : > { %v6873_v46 = vpop.eup %6872  ;;  %3151 = vadd.xlane.f32.xlu1 %v8180_v5  ;;  %6892 = vpow2.f32 %v2880_v2  ;;  %v2884_v39 = vmul.f32 1.442695, %v2711_v6  ;;  %v2713_v16 = vmul.f32 %v8037_v3, %v2504_v47  ;;  %v2508_v0 = vmul.f32 0.6931472, %v6871_v14  ;;  %v6615_v2 = vld [vmem:[%s8017_s17 + $0x1010] sm:$0xff]  }
 0x21b   : > { %v6875_v28 = vpop.eup %6874  ;;  %6894 = vpow2.f32 %v2878_v51  ;;  %v2882_v22 = vmul.f32 1.442695, %v2710_v7  ;;  %v2712_v59 = vmul.f32 %v8037_v3, %v2502_v18  ;;  %v2506_v11 = vmul.f32 0.6931472, %v6873_v46 }
 0x21c   : > { %v6877_v38 = vpop.eup %6876  ;;  %3148 = vadd.xlane.f32.xlu0 %v8184_v31  ;;  %6896 = vpow2.f32 %v2884_v39  ;;  %v2888_v23 = vmul.f32 1.442695, %v2713_v16  ;;  %v2715_v5 = vmul.f32 %v8037_v3, %v2508_v0  ;;  %v2512_v25 = vmul.f32 0.6931472, %v6875_v28 }
 0x21d   : > { %v6879_v41 = vpop.eup %6878  ;;  %v3156_v17 = vsel %vm3050_vm7, %v6877_v38, 0.0  ;;  %6898 = vpow2.f32 %v2882_v22  ;;  %v2886_v29 = vmul.f32 1.442695, %v2712_v59  ;;  %v2714_v36 = vmul.f32 %v8037_v3, %v2506_v11 }
 0x21e   : > { %v6881_v53 = vpop.eup %6880  ;;  %3157 = vadd.xlane.f32.xlu1 %v3156_v17  ;;  %v3153_v12 = vsel %vm3050_vm7, %v6879_v41, 0.0  ;;  %6900 = vpow2.f32 %v2888_v23  ;;  %v2892_v31 = vmul.f32 1.442695, %v2715_v5  ;;  %v2717_v63 = vmul.f32 %v8037_v3, %v2512_v25 }
 0x21f   : > { %v6883_v58 = vpop.eup %6882  ;;  %v3162_v27 = vsel %vm3050_vm7, %v6881_v53, 0.0  ;;  %6902 = vpow2.f32 %v2886_v29  ;;  %v2890_v52 = vmul.f32 1.442695, %v2714_v36  ;;  %v6378_v8 = vunpack.c.h.bf16 %v6609_v61 }
 0x220   : > { %v6885_v15 = vpop.eup %6884  ;;  %3154 = vadd.xlane.f32.xlu0 %v3153_v12  ;;  %6904 = vpow2.f32 %v2892_v31  ;;  %v2896_v55 = vmul.f32 1.442695, %v2717_v63  ;;  %v6377_v43 = vunpack.c.l.bf16 %v6609_v61  ;;  %v6382_v20 = vunpack.c.h.bf16 %v6610_v42  ;;  %v8229_v61 = vld [vmem:[%s8017_s17 + $0x1018] sm:$0xff]  }
 0x221   : > { %v6887_v56 = vpop.eup %6886  ;;  %v3159_v48 = vsel %vm3050_vm7, %v6883_v58, 0.0  ;;  %6906 = vpow2.f32 %v2890_v52  ;;  %v2333_v13 = vmax.f32 %v6369_v54, 1e-06  ;;  %v6381_v34 = vunpack.c.l.bf16 %v6610_v42 }
 0x222   : > { %v6889_v45 = vpop.eup %6888  ;;  %3163 = vadd.xlane.f32.xlu1 %v3162_v27  ;;  %6908 = vpow2.f32 %v2896_v55  ;;  %v2336_v33 = vmax.f32 %v6374_v19, 1e-06  ;;  %v2335_v60 = vmax.f32 %v6373_v21, 1e-06  ;;  %v6386_v24 = vunpack.c.h.bf16 %v6611_v9 }
 0x223   : > { %v6891_v10 = vpop.eup %6890  ;;  %v3168_v37 = vsel %vm3050_vm7, %v6885_v15, 0.0  ;;  %6910 = vlog2.f32 %v8169_v4  ;;  %v2338_v57 = vmax.f32 %v6378_v8, 1e-06  ;;  %v6385_v54 = vunpack.c.l.bf16 %v6611_v9 }
 0x224   : > { %v6893_v50 = vpop.eup %6892  ;;  %3160 = vadd.xlane.f32.xlu0 %v3159_v48  ;;  %6912 = vlog2.f32 %v8172_v35  ;;  %v2337_v32 = vmax.f32 %v6377_v43, 1e-06  ;;  %v2340_v1 = vmax.f32 %v6382_v20, 1e-06  ;;  %v6390_v19 = vunpack.c.h.bf16 %v6612_v30 }
 0x225   : > { %v6895_v49 = vpop.eup %6894  ;;  %v3165_v21 = vsel %vm3050_vm7, %v6887_v56, 0.0  ;;  %6914 = vlog2.f32 %v2333_v13  ;;  %v2339_v40 = vmax.f32 %v6381_v34, 1e-06  ;;  %v6389_v26 = vunpack.c.l.bf16 %v6612_v30 }
 0x226   : > { %v6897_v4 = vpop.eup %6896  ;;  %3169 = vadd.xlane.f32.xlu1 %v3168_v37  ;;  %6916 = vlog2.f32 %v2336_v33  ;;  %v2342_v6 = vmax.f32 %v6386_v24, 1e-06  ;;  %v6394_v47 = vunpack.c.h.bf16 %v6613_v44  ;;  %v6393_v14 = vunpack.c.l.bf16 %v6613_v44 }
 0x227   : > { %v6899_v51 = vpop.eup %6898  ;;  %v3174_v35 = vsel %vm3050_vm7, %v6889_v45, 0.0  ;;  %6918 = vlog2.f32 %v2335_v60  ;;  %v2341_v7 = vmax.f32 %v6385_v54, 1e-06  ;;  %v6398_v18 = vunpack.c.h.bf16 %v6614_v62 }
 0x228   : > { %v6901_v46 = vpop.eup %6900  ;;  %3166 = vadd.xlane.f32.xlu0 %v3165_v21  ;;  %6920 = vlog2.f32 %v2338_v57  ;;  %v2344_v39 = vmax.f32 %v6390_v19, 1e-06  ;;  %v6397_v16 = vunpack.c.l.bf16 %v6614_v62  ;;  %v6402_v0 = vunpack.c.h.bf16 %v6615_v2 }
 0x229   : > { %v6903_v28 = vpop.eup %6902  ;;  %v3171_v22 = vsel %vm3050_vm7, %v6891_v10, 0.0  ;;  %6922 = vlog2.f32 %v2337_v32  ;;  %v2343_v59 = vmax.f32 %v6389_v26, 1e-06  ;;  %v6401_v11 = vunpack.c.l.bf16 %v6615_v2 }
 0x22a   : > { %v6905_v38 = vpop.eup %6904  ;;  %3175 = vadd.xlane.f32.xlu1 %v3174_v35  ;;  %v3180_v23 = vsel %vm3050_vm7, %v6893_v50, 0.0  ;;  %6924 = vlog2.f32 %v2340_v1  ;;  %v2346_v5 = vmax.f32 %v6394_v47, 1e-06  ;;  %v2345_v25 = vmax.f32 %v6393_v14, 1e-06 }
 0x22b   : > { %v6907_v41 = vpop.eup %6906  ;;  %v3177_v17 = vsel %vm3050_vm7, %v6895_v49, 0.0  ;;  %v3186_v29 = vsel %vm3050_vm7, %v6897_v4, 0.0  ;;  %6926 = vlog2.f32 %v2339_v40  ;;  %v2348_v36 = vmax.f32 %v6398_v18, 1e-06 }
 0x22c   : > { %v6909_v42 = vpop.eup %6908  ;;  %3172 = vadd.xlane.f32.xlu0 %v3171_v22  ;;  %v3183_v53 = vsel %vm3050_vm7, %v6899_v51, 0.0  ;;  %6928 = vlog2.f32 %v2342_v6  ;;  %v2347_v12 = vmax.f32 %v6397_v16, 1e-06  ;;  %v8234_v31 = vmax.f32 %v6402_v0, 1e-06 }
 0x22d   : > { %v6911_v63 = vpop.eup %6910  ;;  %v3192_v58 = vsel %vm3050_vm7, %v6901_v46, 0.0  ;;  %6930 = vlog2.f32 %v2341_v7  ;;  %v8237_v27 = vmax.f32 %v6401_v11, 1e-06  ;;  %v6406_v52 = vunpack.c.h.bf16 %v8229_v61 }
 0x22e   : > { %v6913_v8 = vpop.eup %6912  ;;  %3181 = vadd.xlane.f32.xlu1 %v3180_v23  ;;  %v2510_v9 = vmul.f32 0.6931472, %v6911_v63  ;;  %6932 = vlog2.f32 %v2344_v39  ;;  %v6405_v15 = vunpack.c.l.bf16 %v8229_v61  ;;  %v3691_v55 = vlaneseq }
 0x22f   : > { %v6915_v43 = vpop.eup %6914  ;;  %v3189_v20 = vsel %vm3050_vm7, %v6903_v28, 0.0  ;;  %v3198_v56 = vsel %vm3050_vm7, %v6905_v38, 0.0  ;;  %v2516_v48 = vmul.f32 0.6931472, %v6913_v8  ;;  %6934 = vlog2.f32 %v2343_v59 }
 0x230   : > { %v6917_v13 = vpop.eup %6916  ;;  %3178 = vadd.xlane.f32.xlu0 %v3177_v17  ;;  %v8244_v34 = vsel %vm3050_vm7, %v6907_v41, 0.0  ;;  %v2716_v30 = vmul.f32 %v8037_v3, %v2510_v9  ;;  %v2514_v45 = vmul.f32 0.6931472, %v6915_v43  ;;  %6936 = vlog2.f32 %v2346_v5 }
 0x231   : > { %v6919_v33 = vpop.eup %6918  ;;  %v8248_v60 = vsel %vm3050_vm7, %v6909_v42, 0.0  ;;  %v2719_v24 = vmul.f32 %v8037_v3, %v2516_v48  ;;  %v2520_v10 = vmul.f32 0.6931472, %v6917_v13  ;;  %6938 = vlog2.f32 %v2345_v25 }
 0x232   : > { %v6921_v37 = vpop.eup %6920  ;;  %3187 = vadd.xlane.f32.xlu1 %v3186_v29  ;;  %v2894_v57 = vmul.f32 1.442695, %v2716_v30  ;;  %v2718_v54 = vmul.f32 %v8037_v3, %v2514_v45  ;;  %v2518_v44 = vmul.f32 0.6931472, %v6919_v33  ;;  %6940 = vlog2.f32 %v2348_v36  ;;  %v6617_v45 = vld [vmem:[%s8017_s17 + $0x1020] sm:$0xff]  }
 0x233   : > { %v6923_v50 = vpop.eup %6922  ;;  %v2900_v32 = vmul.f32 1.442695, %v2719_v24  ;;  %v2721_v1 = vmul.f32 %v8037_v3, %v2520_v10  ;;  %v2524_v19 = vmul.f32 0.6931472, %v6921_v37  ;;  %6942 = vlog2.f32 %v2347_v12 }
 0x234   : > { %v6925_v62 = vpop.eup %6924  ;;  %3184 = vadd.xlane.f32.xlu0 %v3183_v53  ;;  %6944 = vpow2.f32 %v2894_v57  ;;  %v2898_v49 = vmul.f32 1.442695, %v2718_v54  ;;  %v2720_v21 = vmul.f32 %v8037_v3, %v2518_v44  ;;  %v2522_v40 = vmul.f32 0.6931472, %v6923_v50  ;;  %v6618_v50 = vld [vmem:[%s8017_s17 + $0x1028] sm:$0xff]  }
 0x235   : > { %v6927_v26 = vpop.eup %6926  ;;  %6946 = vpow2.f32 %v2900_v32  ;;  %v2904_v2 = vmul.f32 1.442695, %v2721_v1  ;;  %v2723_v4 = vmul.f32 %v8037_v3, %v2524_v19  ;;  %v2528_v6 = vmul.f32 0.6931472, %v6925_v62 }
 0x236   : > { %v6929_v47 = vpop.eup %6928  ;;  %3193 = vadd.xlane.f32.xlu1 %v3192_v58  ;;  %6948 = vpow2.f32 %v2898_v49  ;;  %v2902_v14 = vmul.f32 1.442695, %v2720_v21  ;;  %v2722_v51 = vmul.f32 %v8037_v3, %v2522_v40  ;;  %v2526_v35 = vmul.f32 0.6931472, %v6927_v26 }
 0x237   : > { %v6931_v7 = vpop.eup %6930  ;;  %6950 = vpow2.f32 %v2904_v2  ;;  %v2908_v18 = vmul.f32 1.442695, %v2723_v4  ;;  %v2725_v46 = vmul.f32 %v8037_v3, %v2528_v6  ;;  %v2532_v39 = vmul.f32 0.6931472, %v6929_v47 }
 0x238   : > { %v6933_v16 = vpop.eup %6932  ;;  %3190 = vadd.xlane.f32.xlu0 %v3189_v20  ;;  %6952 = vpow2.f32 %v2902_v14  ;;  %v2906_v0 = vmul.f32 1.442695, %v2722_v51  ;;  %v2724_v28 = vmul.f32 %v8037_v3, %v2526_v35  ;;  %v2530_v22 = vmul.f32 0.6931472, %v6931_v7 }
 0x239   : > { %v6935_v59 = vpop.eup %6934  ;;  %6954 = vpow2.f32 %v2908_v18  ;;  %v2912_v11 = vmul.f32 1.442695, %v2725_v46  ;;  %v2727_v38 = vmul.f32 %v8037_v3, %v2532_v39  ;;  %v2536_v23 = vmul.f32 0.6931472, %v6933_v16  ;;  %v6619_v16 = vld [vmem:[%s8017_s17 + $0x1030] sm:$0xff]  }
 0x23a   : > { %v6937_v5 = vpop.eup %6936  ;;  %3199 = vadd.xlane.f32.xlu1 %v3198_v56  ;;  %6956 = vpow2.f32 %v2906_v0  ;;  %v2910_v25 = vmul.f32 1.442695, %v2724_v28  ;;  %v2726_v41 = vmul.f32 %v8037_v3, %v2530_v22  ;;  %v2534_v17 = vmul.f32 0.6931472, %v6935_v59 }
 0x23b   : > { %v6939_v29 = vpop.eup %6938  ;;  %6958 = vpow2.f32 %v2912_v11  ;;  %v2916_v36 = vmul.f32 1.442695, %v2727_v38  ;;  %v2729_v42 = vmul.f32 %v8037_v3, %v2536_v23  ;;  %v2540_v53 = vmul.f32 0.6931472, %v6937_v5 }
 0x23c   : > { %v6941_v12 = vpop.eup %6940  ;;  %3196 = vadd.xlane.f32.xlu0 %v8244_v34  ;;  %6960 = vpow2.f32 %v2910_v25  ;;  %v2914_v63 = vmul.f32 1.442695, %v2726_v41  ;;  %v2728_v58 = vmul.f32 %v8037_v3, %v2534_v17  ;;  %v2538_v8 = vmul.f32 0.6931472, %v6939_v29 }
 0x23d   : > { %v6943_v9 = vpop.eup %6942  ;;  %6962 = vpow2.f32 %v2916_v36  ;;  %v2920_v43 = vmul.f32 1.442695, %v2729_v42  ;;  %v2731_v20 = vmul.f32 %v8037_v3, %v2540_v53  ;;  %v2544_v56 = vmul.f32 0.6931472, %v6941_v12  ;;  %v6620_v42 = vld [vmem:[%s8017_s17 + $0x1038] sm:$0xff]  }
 0x23e   : > { %v6945_v48 = vpop.eup %6944  ;;  %3205 = vadd.xlane.f32.xlu1 %v8248_v60  ;;  %6964 = vpow2.f32 %v2914_v63  ;;  %v2918_v13 = vmul.f32 1.442695, %v2728_v58  ;;  %v2730_v34 = vmul.f32 %v8037_v3, %v2538_v8  ;;  %v2542_v30 = vmul.f32 0.6931472, %v6943_v9 }
 0x23f   : > { %v6947_v33 = vpop.eup %6946  ;;  %v3201_v24 = vsel %vm3050_vm7, %v6945_v48, 0.0  ;;  %6966 = vpow2.f32 %v2920_v43  ;;  %v2924_v10 = vmul.f32 1.442695, %v2731_v20  ;;  %v2733_v37 = vmul.f32 %v8037_v3, %v2544_v56 }
 0x240   : > { %v6949_v57 = vpop.eup %6948  ;;  %3202 = vadd.xlane.f32.xlu0 %v3201_v24  ;;  %v3210_v54 = vsel %vm3050_vm7, %v6947_v33, 0.0  ;;  %6968 = vpow2.f32 %v2918_v13  ;;  %v2922_v60 = vmul.f32 1.442695, %v2730_v34  ;;  %v2732_v44 = vmul.f32 %v8037_v3, %v2542_v30 }
 0x241   : > { %v6951_v32 = vpop.eup %6950  ;;  %v3207_v1 = vsel %vm3050_vm7, %v6949_v57, 0.0  ;;  %6970 = vpow2.f32 %v2924_v10  ;;  %v2928_v19 = vmul.f32 1.442695, %v2733_v37  ;;  %v6410_v62 = vunpack.c.h.bf16 %v6617_v45  ;;  %v8320_v10 = vld [vmem:[%s8017_s17 + $0x1400] sm:$0xff]  }
 0x242   : > { %v6953_v49 = vpop.eup %6952  ;;  %3211 = vadd.xlane.f32.xlu1 %v3210_v54  ;;  %6972 = vpow2.f32 %v2922_v60  ;;  %v2926_v21 = vmul.f32 1.442695, %v2732_v44  ;;  %v8274_v40 = vand.u32 127, %v3691_v55  ;;  %v6409_v26 = vunpack.c.l.bf16 %v6617_v45 }
 0x243   : > { %v6955_v2 = vpop.eup %6954  ;;  %v3216_v4 = vsel %vm3050_vm7, %v6951_v32, 0.0  ;;  %6974 = vpow2.f32 %v2928_v19  ;;  %v2352_v6 = vmax.f32 %v6406_v52, 1e-06  ;;  %v6414_v47 = vunpack.c.h.bf16 %v6618_v50 }
 0x244   : > { %v6957_v14 = vpop.eup %6956  ;;  %3208 = vadd.xlane.f32.xlu0 %v3207_v1  ;;  %6976 = vpow2.f32 %v2926_v21  ;;  %v2351_v51 = vmax.f32 %v6405_v15, 1e-06  ;;  %v6413_v35 = vunpack.c.l.bf16 %v6618_v50  ;;  %v3213_v18 = vsel %vm3050_vm7, %v6953_v49, 0.0 }
 0x245   : > { %v6959_v7 = vpop.eup %6958  ;;  %6978 = vlog2.f32 %v8234_v31  ;;  %v8284_v46 = vshrl.u32 %v3691_v55, 7  ;;  %v2354_v39 = vmax.f32 %v6410_v62, 1e-06  ;;  %v3704_v52 = vadd.s32 4294967280, %v8274_v40 }
 0x246   : > { %v6961_v0 = vpop.eup %6960  ;;  %3217 = vadd.xlane.f32.xlu1 %v3216_v4  ;;  %6980 = vlog2.f32 %v8237_v27  ;;  %v2353_v28 = vmax.f32 %v6409_v26, 1e-06  ;;  %v3711_v61 = vadd.s32 4294967272, %v8274_v40  ;;  %v3222_v22 = vsel %vm3050_vm7, %v6955_v2, 0.0 }
 0x247   : > { %v6963_v15 = vpop.eup %6962  ;;  %6982 = vlog2.f32 %v2352_v6  ;;  %v3697_v31 = vadd.s32 4294967288, %v8274_v40  ;;  %v2356_v59 = vmax.f32 %v6414_v47, 1e-06  ;;  %v2355_v11 = vmax.f32 %v6413_v35, 1e-06 }
 0x248   : > { %v6965_v55 = vpop.eup %6964  ;;  %3214 = vadd.xlane.f32.xlu0 %v3213_v18  ;;  %6984 = vlog2.f32 %v2351_v51  ;;  %v6418_v38 = vunpack.c.h.bf16 %v6619_v16  ;;  %v6417_v23 = vunpack.c.l.bf16 %v6619_v16  ;;  %v3219_v5 = vsel %vm3050_vm7, %v6957_v14, 0.0 }
 0x249   : > { %v6967_v27 = vpop.eup %6966  ;;  %v8295_v25 = vsub.s32 %v8274_v40, %v8284_v46  ;;  %6986 = vlog2.f32 %v2354_v39  ;;  %v3725_v17 = vadd.s32 4294967256, %v8274_v40  ;;  %v3228_v12 = vsel %vm3050_vm7, %v6959_v7, 0.0 }
 0x24a   : > { %v6969_v41 = vpop.eup %6968  ;;  %3223 = vadd.xlane.f32.xlu1 %v3222_v22  ;;  %6988 = vlog2.f32 %v2353_v28  ;;  %v2358_v29 = vmax.f32 %v6418_v38, 1e-06  ;;  %v2357_v36 = vmax.f32 %v6417_v23, 1e-06  ;;  %v8301_v63 = vsub.s32 %v3704_v52, %v8284_v46 }
 0x24b   : > { %v6971_v53 = vpop.eup %6970  ;;  %6990 = vlog2.f32 %v2356_v59  ;;  %v3718_v58 = vadd.s32 4294967264, %v8274_v40  ;;  %v8305_v9 = vsub.s32 %v3711_v61, %v8284_v46  ;;  %v8308_v43 = vsub.s32 %v3697_v31, %v8284_v46 }
 0x24c   : > { %v6973_v8 = vpop.eup %6972  ;;  %3220 = vadd.xlane.f32.xlu0 %v3219_v5  ;;  %6992 = vlog2.f32 %v2355_v11  ;;  %v3739_v20 = vadd.s32 4294967240, %v8274_v40  ;;  %v3225_v48 = vsel %vm3050_vm7, %v6961_v0, 0.0  ;;  %v6422_v13 = vunpack.c.h.bf16 %v6620_v42 }
 0x24d   : > { %v6975_v56 = vpop.eup %6974  ;;  %6994 = vlog2.f32 %v2358_v29  ;;  %v6421_v34 = vunpack.c.l.bf16 %v6620_v42  ;;  %v3234_v45 = vsel %vm3050_vm7, %v6963_v15, 0.0  ;;  %v3231_v33 = vsel %vm3050_vm7, %v6965_v55, 0.0 }
 0x24e   : > { %v8312_v30 = vpop.eup %6976  ;;  %3229 = vadd.xlane.f32.xlu1 %v3228_v12  ;;  %v8317_v24 = vsub.s32 %v3725_v17, %v8284_v46  ;;  %6996 = vlog2.f32 %v2357_v36  ;;  %v3240_v57 = vsel %vm3050_vm7, %v6967_v27, 0.0  ;;  %v8324_v54 = vsub.s32 %v3718_v58, %v8284_v46 }
 0x24f   : > { %v6979_v37 = vpop.eup %6978  ;;  %v2360_v60 = vmax.f32 %v6422_v13, 1e-06  ;;  %v2359_v44 = vmax.f32 %v6421_v34, 1e-06  ;;  %v3237_v32 = vsel %vm3050_vm7, %v6969_v41, 0.0  ;;  %v3246_v1 = vsel %vm3050_vm7, %v6971_v53, 0.0 }
 0x250   : > { %v6981_v50 = vpop.eup %6980  ;;  %3226 = vadd.xlane.f32.xlu0 %v3225_v48  ;;  %v2548_v19 = vmul.f32 0.6931472, %v6979_v37  ;;  %v8329_v62 = vsub.s32 %v3739_v20, %v8284_v46  ;;  %v3732_v26 = vadd.s32 4294967248, %v8274_v40  ;;  %v6426_v2 = vunpack.c.h.bf16 %v8320_v10  ;;  %v6622_v37 = vld [vmem:[%s8017_s17 + $0x1408] sm:$0xff]  }
 0x251   : > { %v6983_v49 = vpop.eup %6982  ;;  %v2546_v21 = vmul.f32 0.6931472, %v6981_v50  ;;  %6998 = vlog2.f32 %v2360_v60  ;;  %v3243_v6 = vsel %vm3050_vm7, %v6973_v8, 0.0  ;;  %v3252_v35 = vsel %vm3050_vm7, %v6975_v56, 0.0 }
 0x252   : > { %v6985_v4 = vpop.eup %6984  ;;  %3235 = vadd.xlane.f32.xlu1 %v3234_v45  ;;  %v2735_v47 = vmul.f32 %v8037_v3, %v2548_v19  ;;  %v2552_v14 = vmul.f32 0.6931472, %v6983_v49  ;;  %7000 = vlog2.f32 %v2359_v44  ;;  %v2362_v39 = vmax.f32 %v6426_v2, 1e-06 }
 0x253   : > { %v6987_v51 = vpop.eup %6986  ;;  %v2734_v7 = vmul.f32 %v8037_v3, %v2546_v21  ;;  %v2550_v18 = vmul.f32 0.6931472, %v6985_v4  ;;  %v6425_v61 = vunpack.c.l.bf16 %v8320_v10  ;;  %v3753_v48 = vadd.s32 4294967224, %v8274_v40  ;;  %v8351_v10 = vld [vmem:[%s8017_s17 + $0x1800] sm:$0xff]  }
 0x254   : > { %v6989_v16 = vpop.eup %6988  ;;  %3232 = vadd.xlane.f32.xlu0 %v3231_v33  ;;  %v2932_v0 = vmul.f32 1.442695, %v2735_v47  ;;  %v2737_v52 = vmul.f32 %v8037_v3, %v2552_v14  ;;  %v2556_v28 = vmul.f32 0.6931472, %v6987_v51  ;;  %7002 = vlog2.f32 %v2362_v39 }
 0x255   : > { %v6991_v15 = vpop.eup %6990  ;;  %v2930_v22 = vmul.f32 1.442695, %v2734_v7  ;;  %v2736_v31 = vmul.f32 %v8037_v3, %v2550_v18  ;;  %v2554_v59 = vmul.f32 0.6931472, %v6989_v16  ;;  %v8348_v33 = vsub.s32 %v3732_v26, %v8284_v46 }
 0x256   : > { %v6993_v55 = vpop.eup %6992  ;;  %3241 = vadd.xlane.f32.xlu1 %v3240_v57  ;;  %7004 = vpow2.f32 %v2932_v0  ;;  %v2936_v11 = vmul.f32 1.442695, %v2737_v52  ;;  %v2739_v38 = vmul.f32 %v8037_v3, %v2556_v28  ;;  %v2560_v23 = vmul.f32 0.6931472, %v6991_v15 }
 0x257   : > { %v6995_v27 = vpop.eup %6994  ;;  %7006 = vpow2.f32 %v2930_v22  ;;  %v2934_v5 = vmul.f32 1.442695, %v2736_v31  ;;  %v2738_v41 = vmul.f32 %v8037_v3, %v2554_v59  ;;  %v2558_v17 = vmul.f32 0.6931472, %v6993_v55 }
 0x258   : > { %v6997_v29 = vpop.eup %6996  ;;  %3238 = vadd.xlane.f32.xlu0 %v3237_v32  ;;  %7008 = vpow2.f32 %v2936_v11  ;;  %v2940_v36 = vmul.f32 1.442695, %v2739_v38  ;;  %v2741_v42 = vmul.f32 %v8037_v3, %v2560_v23  ;;  %v2564_v53 = vmul.f32 0.6931472, %v6995_v27 }
 0x259   : > { %7010 = vpow2.f32 %v2934_v5  ;;  %v2938_v12 = vmul.f32 1.442695, %v2738_v41  ;;  %v2740_v58 = vmul.f32 %v8037_v3, %v2558_v17  ;;  %v2562_v8 = vmul.f32 0.6931472, %v6997_v29 }
 0x25a   : > { %3247 = vadd.xlane.f32.xlu1 %v3246_v1  ;;  %7012 = vpow2.f32 %v2940_v36  ;;  %v2944_v20 = vmul.f32 1.442695, %v2741_v42  ;;  %v2743_v56 = vmul.f32 %v8037_v3, %v2564_v53  ;;  %v2361_v50 = vmax.f32 %v6425_v61, 1e-06 }
 0x25b   : > { %v6999_v13 = vpop.eup %6998  ;;  %7014 = vpow2.f32 %v2938_v12  ;;  %v2942_v34 = vmul.f32 1.442695, %v2740_v58  ;;  %v2742_v45 = vmul.f32 %v8037_v3, %v2562_v8  ;;  %v3249_v32 = vsel %vm3050_vm7, %v8312_v30, 0.0 }
 0x25c   : > { %v7001_v57 = vpop.eup %7000  ;;  %3244 = vadd.xlane.f32.xlu0 %v3243_v6  ;;  %7016 = vpow2.f32 %v2944_v20  ;;  %v2948_v60 = vmul.f32 1.442695, %v2743_v56  ;;  %v2568_v44 = vmul.f32 0.6931472, %v6999_v13  ;;  %v8358_v21 = vsub.s32 %v3753_v48, %v8284_v46 }
 0x25d   : > { %7018 = vpow2.f32 %v2942_v34  ;;  %v2946_v1 = vmul.f32 1.442695, %v2742_v45  ;;  %v2566_v19 = vmul.f32 0.6931472, %v7001_v57  ;;  %v6457_v26 = vunpack.c.l.bf16 %v8351_v10 }
 0x25e   : > { %3253 = vadd.xlane.f32.xlu1 %v3252_v35  ;;  %7020 = vpow2.f32 %v2948_v60  ;;  %v2745_v49 = vmul.f32 %v8037_v3, %v2568_v44  ;;  %v7003_v2 = vpop.eup %7002  ;;  %v3746_v6 = vadd.s32 4294967232, %v8274_v40  ;;  %v6429_v47 = vunpack.c.l.bf16 %v6622_v37  ;;  %v6637_v60 = vld [vmem:[%s8017_s17 + $0x1c00] sm:$0xff]   ;;  %v8396_v44 = vld [vmem:[%s8017_s17 + $0x1808] sm:$0xff]  }
 0x25f   : > { %7022 = vpow2.f32 %v2946_v1  ;;  %v2744_v4 = vmul.f32 %v8037_v3, %v2566_v19  ;;  %v2572_v51 = vmul.f32 0.6931472, %v7003_v2  ;;  %v2377_v35 = vmax.f32 %v6457_v26, 1e-06  ;;  %v8401_v19 = vld [vmem:[%s8017_s17 + $0x1410] sm:$0xff]  }
 0x260   : > { %v7005_v30 = vpop.eup %7004  ;;  %3250 = vadd.xlane.f32.xlu0 %v3249_v32  ;;  %v2952_v14 = vmul.f32 1.442695, %v2745_v49  ;;  %7024 = vlog2.f32 %v2361_v50  ;;  %v3767_v16 = vadd.s32 4294967208, %v8274_v40  ;;  %v2363_v0 = vmax.f32 %v6429_v47, 1e-06  ;;  %v8413_v47 = vld [vmem:[%s8017_s17 + $0x1c08] sm:$0xff]  }
 0x261   : > { %v7007_v7 = vpop.eup %7006  ;;  %v3258_v18 = vsel %vm3050_vm7, %v7005_v30, 0.0  ;;  %v2950_v39 = vmul.f32 1.442695, %v2744_v4  ;;  %v2747_v61 = vmul.f32 %v8037_v3, %v2572_v51  ;;  %v3760_v15 = vadd.s32 4294967216, %v8274_v40 }
 0x262   : > { %v7009_v52 = vpop.eup %7008  ;;  %3259 = vadd.xlane.f32.xlu1 %v3258_v18  ;;  %v3255_v28 = vsel %vm3050_vm7, %v7007_v7, 0.0  ;;  %7026 = vpow2.f32 %v2952_v14  ;;  %v8370_v59 = vsub.s32 %v3746_v6, %v8284_v46  ;;  %v3781_v55 = vadd.s32 4294967192, %v8274_v40 }
 0x263   : > { %v7011_v22 = vpop.eup %7010  ;;  %v3264_v31 = vsel %vm3050_vm7, %v7009_v52, 0.0  ;;  %7028 = vpow2.f32 %v2950_v39  ;;  %v2956_v38 = vmul.f32 1.442695, %v2747_v61  ;;  %v3774_v23 = vadd.s32 4294967200, %v8274_v40 }
 0x264   : > { %v7013_v11 = vpop.eup %7012  ;;  %3256 = vadd.xlane.f32.xlu0 %v3255_v28  ;;  %7030 = vlog2.f32 %v2377_v35  ;;  %v6430_v27 = vunpack.c.h.bf16 %v6622_v37  ;;  %v3261_v41 = vsel %vm3050_vm7, %v7011_v22, 0.0  ;;  %v8376_v17 = vsub.s32 %v3767_v16, %v8284_v46 }
 0x265   : > { %v7015_v5 = vpop.eup %7014  ;;  %7032 = vlog2.f32 %v2363_v0  ;;  %v6458_v29 = vunpack.c.h.bf16 %v8351_v10  ;;  %v8380_v42 = vsub.s32 %v3760_v15, %v8284_v46  ;;  %v3795_v12 = vadd.s32 4294967176, %v8274_v40 }
 0x266   : > { %v7017_v36 = vpop.eup %7016  ;;  %3265 = vadd.xlane.f32.xlu1 %v3264_v31  ;;  %7034 = vpow2.f32 %v2956_v38  ;;  %v2364_v53 = vmax.f32 %v6430_v27, 1e-06  ;;  %v3270_v20 = vsel %vm3050_vm7, %v7013_v11, 0.0  ;;  %v8385_v56 = vsub.s32 %v3781_v55, %v8284_v46 }
 0x267   : > { %v7019_v58 = vpop.eup %7018  ;;  %v3059_v8 = vpop.xlane.xlu1 %3058  ;;  %v2378_v48 = vmax.f32 %v6458_v29, 1e-06  ;;  %v3788_v13 = vadd.s32 4294967184, %v8274_v40  ;;  %v3267_v37 = vsel %vm3050_vm7, %v7015_v5, 0.0  ;;  %v8392_v57 = vsub.s32 %v3774_v23, %v8284_v46 }
 0x268   : > { %v7021_v34 = vpop.eup %7020  ;;  %3262 = vadd.xlane.f32.xlu0 %v3261_v41  ;;  %v8388_v45 = vmul.f32 0.020408163, %v3059_v8  ;;  %v3053_v10 = vpop.xlane.xlu0 %3052  ;;  %7036 = vlog2.f32 %v2364_v53  ;;  %v3276_v40 = vsel %vm3050_vm7, %v7017_v36, 0.0  ;;  %v3273_v1 = vsel %vm3050_vm7, %v7019_v58, 0.0 }
 0x269   : > { %v7023_v50 = vpop.eup %7022  ;;  %v3435_v32 = vmul.f32 0.020408163, %v3053_v10  ;;  %7038 = vlog2.f32 %v2378_v48  ;;  %v3282_v2 = vsel %vm3050_vm7, %v7021_v34, 0.0  ;;  %v8407_v4 = vsub.s32 %v3795_v12, %v8284_v46 }
 0x26a   : > { %v7025_v49 = vpop.eup %7024  ;;  %v3708_v26 = vrot.slane %v8388_v45, %v8301_v63  ;;  %3271 = vadd.xlane.f32.xlu1 %v3270_v20  ;;  %v8410_v6 = vsub.s32 %v3788_v13, %v8284_v46  ;;  %v3279_v14 = vsel %vm3050_vm7, %v7023_v50, 0.0  ;;  %v6489_v35 = vunpack.c.l.bf16 %v6637_v60 }
 0x26b   : > { %v3062_v30 = vpop.xlane.xlu1 %3061  ;;  %v2570_v51 = vmul.f32 0.6931472, %v7025_v49  ;;  %v6461_v7 = vunpack.c.l.bf16 %v8396_v44  ;;  %v3696_v39 = vrot.slane %v3435_v32, %v8295_v25  ;;  %v6433_v52 = vunpack.c.l.bf16 %v8401_v19 }
 0x26c   : > { %v7027_v18 = vpop.eup %7026  ;;  %3268 = vadd.xlane.f32.xlu0 %v3267_v37  ;;  %v3438_v16 = vmul.f32 0.020408163, %v3062_v30  ;;  %v3056_v0 = vpop.xlane.xlu0 %3055  ;;  %v6490_v46 = vunpack.c.h.bf16 %v6637_v60  ;;  %v2393_v22 = vmax.f32 %v6489_v35, 1e-06  ;;  %v6493_v31 = vunpack.c.l.bf16 %v8413_v47 }
 0x26d   : > { %v7029_v28 = vpop.eup %7028  ;;  %v3436_v61 = vmul.f32 0.020408163, %v3056_v0  ;;  %v2746_v15 = vmul.f32 %v8037_v3, %v2570_v51  ;;  %v3288_v38 = vsel %vm3050_vm7, %v7027_v18, 0.0  ;;  %v2379_v23 = vmax.f32 %v6461_v7, 1e-06 }
 0x26e   : > { %v7031_v55 = vpop.eup %7030  ;;  %v3715_v11 = vrot.slane %v3438_v16, %v8305_v9  ;;  %3277 = vadd.xlane.f32.xlu1 %v3276_v40  ;;  %v2365_v27 = vmax.f32 %v6433_v52, 1e-06  ;;  %7040 = vlog2.f32 %v2393_v22  ;;  %v3285_v8 = vsel %vm3050_vm7, %v7029_v28, 0.0  ;;  %v8435_v52 = vld [vmem:[%s8017_s17 + $0x1810] sm:$0xff]  }
 0x26f   : > { %v7033_v5 = vpop.eup %7032  ;;  %v3701_v41 = vrot.slane %v3436_v61, %v8308_v43  ;;  %v3068_v29 = vpop.xlane.xlu1 %3067  ;;  %v2954_v36 = vmul.f32 1.442695, %v2746_v15  ;;  %v2602_v53 = vmul.f32 0.6931472, %v7031_v55  ;;  %7042 = vlog2.f32 %v2379_v23 }
 0x270   : > { %v7035_v12 = vpop.eup %7034  ;;  %3274 = vadd.xlane.f32.xlu0 %v3273_v1  ;;  %v3065_v58 = vpop.xlane.xlu0 %3064  ;;  %v2574_v20 = vmul.f32 0.6931472, %v7033_v5  ;;  %v2394_v48 = vmax.f32 %v6490_v46, 1e-06  ;;  %v3440_v34 = vmul.f32 0.020408163, %v3068_v29  ;;  %v6465_v5 = vunpack.c.l.bf16 %v8435_v52 }
 0x271   : > { %v3703_v13 = vsel %vm3702_vm8, %v3701_v41, %v3696_v39  ;;  %v3439_v45 = vmul.f32 0.020408163, %v3065_v58  ;;  %7044 = vpow2.f32 %v2954_v36  ;;  %v3294_v60 = vsel %vm3050_vm7, %v7035_v12, 0.0 }
 0x272   : > { %v7037_v10 = vpop.eup %7036  ;;  %v3710_v37 = vsel %vm3709_vm10, %v3708_v26, %v3703_v13  ;;  %3283 = vadd.xlane.f32.xlu1 %v3282_v2  ;;  %v2762_v50 = vmul.f32 %v8037_v3, %v2602_v53  ;;  %v2748_v32 = vmul.f32 %v8037_v3, %v2574_v20  ;;  %7046 = vlog2.f32 %v2365_v27 }
 0x273   : > { %v7039_v40 = vpop.eup %7038  ;;  %v3717_v1 = vsel %vm3716_vm11, %v3715_v11, %v3710_v37  ;;  %v3722_v49 = vrot.slane %v3439_v45, %v8324_v54  ;;  %v3074_v30 = vpop.xlane.xlu1 %3073  ;;  %v2576_v51 = vmul.f32 0.6931472, %v7037_v10  ;;  %7048 = vlog2.f32 %v2394_v48 }
 0x274   : > { %3280 = vadd.xlane.f32.xlu0 %v3279_v14  ;;  %v3442_v26 = vmul.f32 0.020408163, %v3074_v30  ;;  %v3071_v2 = vpop.xlane.xlu0 %3070  ;;  %v2986_v35 = vmul.f32 1.442695, %v2762_v50  ;;  %v2958_v7 = vmul.f32 1.442695, %v2748_v32  ;;  %v3729_v18 = vrot.slane %v3440_v34, %v8317_v24 }
 0x275   : > { %v3441_v39 = vmul.f32 0.020408163, %v3071_v2  ;;  %v2749_v16 = vmul.f32 %v8037_v3, %v2576_v51  ;;  %v2604_v0 = vmul.f32 0.6931472, %v7039_v40  ;;  %v3724_v46 = vsel %vm3723_vm12, %v3722_v49, %v3717_v1  ;;  %v8452_v49 = vld [vmem:[%s8017_s17 + $0x1418] sm:$0xff]  }
 0x276   : > { %v3743_v28 = vrot.slane %v3442_v26, %v8329_v62  ;;  %3289 = vadd.xlane.f32.xlu1 %v3288_v38  ;;  %7050 = vpow2.f32 %v2986_v35  ;;  %v2395_v14 = vmax.f32 %v6493_v31, 1e-06  ;;  %v6462_v27 = vunpack.c.h.bf16 %v8396_v44 }
 0x277   : > { %v3736_v61 = vrot.slane %v3441_v39, %v8348_v33  ;;  %v3080_v15 = vpop.xlane.xlu1 %3079  ;;  %7052 = vpow2.f32 %v2958_v7  ;;  %v2960_v22 = vmul.f32 1.442695, %v2749_v16  ;;  %v2763_v55 = vmul.f32 %v8037_v3, %v2604_v0 }
 0x278   : > { %3286 = vadd.xlane.f32.xlu0 %v3285_v8  ;;  %v3444_v11 = vmul.f32 0.020408163, %v3080_v15  ;;  %v3077_v23 = vpop.xlane.xlu0 %3076  ;;  %7054 = vlog2.f32 %v2395_v14  ;;  %v7041_v38 = vpop.eup %7040  ;;  %v3731_v41 = vsel %vm3730_vm13, %v3729_v18, %v3724_v46  ;;  %v2380_v8 = vmax.f32 %v6462_v27, 1e-06 }
 0x279   : > { %v3443_v31 = vmul.f32 0.020408163, %v3077_v23  ;;  %7056 = vpow2.f32 %v2960_v22  ;;  %v2988_v29 = vmul.f32 1.442695, %v2763_v55  ;;  %v7043_v36 = vpop.eup %7042  ;;  %v3738_v53 = vsel %vm3737_vm14, %v3736_v61, %v3731_v41 }
 0x27a   : > { %v3757_v12 = vrot.slane %v3444_v11, %v8358_v21  ;;  %3295 = vadd.xlane.f32.xlu1 %v3294_v60  ;;  %v2634_v58 = vmul.f32 0.6931472, %v7041_v38  ;;  %v2606_v13 = vmul.f32 0.6931472, %v7043_v36  ;;  %v2381_v34 = vmax.f32 %v6465_v5, 1e-06 }
 0x27b   : > { %v7045_v20 = vpop.eup %7044  ;;  %v3750_v44 = vrot.slane %v3443_v31, %v8370_v59  ;;  %v3086_v48 = vpop.xlane.xlu1 %3085  ;;  %7058 = vpow2.f32 %v2988_v29  ;;  %v3745_v32 = vsel %vm3744_vm15, %v3743_v28, %v3738_v53  ;;  %v6434_v0 = vunpack.c.h.bf16 %v8401_v19 }
 0x27c   : > { %v3291_v45 = vsel %vm3050_vm7, %v7045_v20, 0.0  ;;  %v3446_v10 = vmul.f32 0.020408163, %v3086_v48  ;;  %v3083_v37 = vpop.xlane.xlu0 %3082  ;;  %v2778_v50 = vmul.f32 %v8037_v3, %v2634_v58  ;;  %7060 = vlog2.f32 %v2380_v8  ;;  %v7047_v60 = vpop.eup %7046 }
 0x27d   : > { %3292 = vadd.xlane.f32.xlu0 %v3291_v45  ;;  %v3445_v40 = vmul.f32 0.020408163, %v3083_v37  ;;  %v2764_v1 = vmul.f32 %v8037_v3, %v2606_v13  ;;  %7062 = vlog2.f32 %v2381_v34  ;;  %v7049_v30 = vpop.eup %7048  ;;  %v3752_v51 = vsel %vm9470_vm0, %v3750_v44, %v3745_v32 }
 0x27e   : > { %v3771_v26 = vrot.slane %v3446_v10, %v8376_v17  ;;  %v3018_v2 = vmul.f32 1.442695, %v2778_v50  ;;  %v2578_v35 = vmul.f32 0.6931472, %v7047_v60  ;;  %v2636_v16 = vmul.f32 0.6931472, %v7049_v30 }
 0x27f   : > { %v3764_v7 = vrot.slane %v3445_v40, %v8380_v42  ;;  %v3092_v18 = vpop.xlane.xlu1 %3091  ;;  %v2990_v39 = vmul.f32 1.442695, %v2764_v1  ;;  %v6437_v15 = vunpack.c.l.bf16 %v8452_v49  ;;  %v3759_v55 = vsel %vm3758_vm9, %v3757_v12, %v3752_v51  ;;  %v8474_v1 = vld [vmem:[%s8017_s17 + $0x1c10] sm:$0xff]  }
 0x280   : > { %v7051_v46 = vpop.eup %7050  ;;  %v3448_v28 = vmul.f32 0.020408163, %v3092_v18  ;;  %v3089_v14 = vpop.xlane.xlu0 %3088  ;;  %7064 = vpow2.f32 %v3018_v2  ;;  %v2750_v61 = vmul.f32 %v8037_v3, %v2578_v35  ;;  %v2779_v53 = vmul.f32 %v8037_v3, %v2636_v16 }
 0x281   : > { %v7053_v22 = vpop.eup %7052  ;;  %v3339_v11 = vsel %vm3050_vm7, %v7051_v46, 0.0  ;;  %v3447_v23 = vmul.f32 0.020408163, %v3089_v14  ;;  %7066 = vpow2.f32 %v2990_v39  ;;  %v3766_v5 = vsel %vm3765_vm1, %v3764_v7, %v3759_v55 }
 0x282   : > { %v7055_v27 = vpop.eup %7054  ;;  %3340 = vadd.xlane.f32.xlu1 %v3339_v11  ;;  %v3297_v19 = vsel %vm3050_vm7, %v7053_v22, 0.0  ;;  %v3785_v38 = vrot.slane %v3448_v28, %v8385_v56  ;;  %v2962_v41 = vmul.f32 1.442695, %v2750_v61  ;;  %v2366_v58 = vmax.f32 %v6434_v0, 1e-06  ;;  %v8485_v11 = vld [vmem:[%s8017_s17 + $0x1818] sm:$0xff]  }
 0x283   : > { %v7057_v31 = vpop.eup %7056  ;;  %3298 = vadd.xlane.f32.xlu0 %v3297_v19  ;;  %v3778_v29 = vrot.slane %v3447_v23, %v8392_v57  ;;  %v3098_v36 = vpop.xlane.xlu1 %3097  ;;  %v2638_v12 = vmul.f32 0.6931472, %v7055_v27  ;;  %v2367_v48 = vmax.f32 %v6437_v15, 1e-06  ;;  %v3773_v34 = vsel %vm3772_vm2, %v3771_v26, %v3766_v5 }
 0x284   : > { %v3300_v8 = vsel %vm3050_vm7, %v7057_v31, 0.0  ;;  %v3450_v20 = vmul.f32 0.020408163, %v3098_v36  ;;  %v3095_v44 = vpop.xlane.xlu0 %3094  ;;  %7068 = vpow2.f32 %v2962_v41  ;;  %v3020_v10 = vmul.f32 1.442695, %v2779_v53 }
 0x285   : > { %v7059_v13 = vpop.eup %7058  ;;  %v3449_v45 = vmul.f32 0.020408163, %v3095_v44  ;;  %v2780_v37 = vmul.f32 %v8037_v3, %v2638_v12  ;;  %v3780_v60 = vsel %vm3779_vm3, %v3778_v29, %v3773_v34  ;;  %7070 = vlog2.f32 %v2366_v58 }
 0x286   : > { %v7061_v50 = vpop.eup %7060  ;;  %3301 = vadd.xlane.f32.xlu1 %v3300_v8  ;;  %v3342_v32 = vsel %vm3050_vm7, %v7059_v13, 0.0  ;;  %v3799_v40 = vrot.slane %v3450_v20, %v8407_v4  ;;  %7072 = vpow2.f32 %v3020_v10  ;;  %v6494_v39 = vunpack.c.h.bf16 %v8413_v47  ;;  %v8497_v13 = vld [vmem:[%s8017_s17 + $0x1420] sm:$0xff]  }
 0x287   : > { %v7063_v30 = vpop.eup %7062  ;;  %3343 = vadd.xlane.f32.xlu0 %v3342_v32  ;;  %v3792_v51 = vrot.slane %v3449_v45, %v8410_v6  ;;  %v3104_v26 = vpop.xlane.xlu1 %3103  ;;  %v3022_v2 = vmul.f32 1.442695, %v2780_v37  ;;  %v2608_v35 = vmul.f32 0.6931472, %v7061_v50  ;;  %7074 = vlog2.f32 %v2367_v48 }
 0x288   : > { %v3452_v7 = vmul.f32 0.020408163, %v3104_v26  ;;  %v2610_v18 = vmul.f32 0.6931472, %v7063_v30  ;;  %v3787_v16 = vsel %vm3786_vm4, %v3785_v38, %v3780_v60  ;;  %v6497_v28 = vunpack.c.l.bf16 %v8474_v1 }
 0x289   : > { %v3101_v0 = vpop.xlane.xlu0 %3100  ;;  %7076 = vpow2.f32 %v3022_v2  ;;  %v2765_v46 = vmul.f32 %v8037_v3, %v2608_v35  ;;  %v3794_v61 = vsel %vm3793_vm5, %v3792_v51, %v3787_v16  ;;  %v2396_v19 = vmax.f32 %v6494_v39, 1e-06 }
 0x28a   : > { %v7065_v14 = vpop.eup %7064  ;;  %v3809_v15 = vrot.slane %v3452_v7, %v8308_v43  ;;  %v3451_v22 = vmul.f32 0.020408163, %v3101_v0  ;;  %v2766_v55 = vmul.f32 %v8037_v3, %v2610_v18  ;;  %v6466_v38 = vunpack.c.h.bf16 %v8435_v52 }
 0x28b   : > { %v7067_v23 = vpop.eup %7066  ;;  %v3387_v47 = vsel %vm3050_vm7, %v7065_v14, 0.0  ;;  %v3110_v27 = vpop.xlane.xlu1 %3109  ;;  %v2992_v5 = vmul.f32 1.442695, %v2765_v46  ;;  %v2397_v12 = vmax.f32 %v6497_v28, 1e-06  ;;  %v6469_v8 = vunpack.c.l.bf16 %v8485_v11 }
 0x28c   : > { %3388 = vadd.xlane.f32.xlu1 %v3387_v47  ;;  %v3345_v41 = vsel %vm3050_vm7, %v7067_v23, 0.0  ;;  %v3805_v31 = vrot.slane %v3451_v22, %v8295_v25  ;;  %v3454_v29 = vmul.f32 0.020408163, %v3110_v27  ;;  %v2994_v36 = vmul.f32 1.442695, %v2766_v55  ;;  %v8512_v23 = vld [vmem:[%s8017_s17 + $0x1c18] sm:$0xff]  }
 0x28d   : > { %3346 = vadd.xlane.f32.xlu0 %v3345_v41  ;;  %v3107_v53 = vpop.xlane.xlu0 %3106  ;;  %7078 = vpow2.f32 %v2992_v5  ;;  %v2382_v58 = vmax.f32 %v6466_v38, 1e-06  ;;  %v8493_v44 = vsel %vm3800_vm6, %v3799_v40, %v3794_v61  ;;  %v2383_v10 = vmax.f32 %v6469_v8, 1e-06 }
 0x28e   : > { %v7069_v20 = vpop.eup %7068  ;;  %v3810_v52 = vsel %vm3702_vm8, %v3809_v15, %v3805_v31  ;;  %v3453_v48 = vmul.f32 0.020408163, %v3107_v53  ;;  %7080 = vpow2.f32 %v2994_v36  ;;  %v6438_v37 = vunpack.c.h.bf16 %v8452_v49 }
 0x28f   : > { %v3303_v34 = vsel %vm3050_vm7, %v7069_v20, 0.0  ;;  %v3116_v45 = vpop.xlane.xlu1 %3115  ;;  %7082 = vlog2.f32 %v2396_v19  ;;  %v7071_v50 = vpop.eup %7070  ;;  %v3819_v60 = vrot.slane %v3454_v29, %v8305_v9  ;;  %v6441_v35 = vunpack.c.l.bf16 %v8497_v13 }
 0x290   : > { %3304 = vadd.xlane.f32.xlu1 %v3303_v34  ;;  %v3814_v32 = vrot.slane %v3453_v48, %v8301_v63  ;;  %v3456_v40 = vmul.f32 0.020408163, %v3116_v45  ;;  %7084 = vlog2.f32 %v2397_v12  ;;  %v7073_v30 = vpop.eup %7072  ;;  %v2580_v26 = vmul.f32 0.6931472, %v7071_v50 }
 0x291   : > { %v3113_v51 = vpop.xlane.xlu0 %3112  ;;  %7086 = vlog2.f32 %v2382_v58  ;;  %v2368_v2 = vmax.f32 %v6438_v37, 1e-06  ;;  %v7075_v7 = vpop.eup %7074  ;;  %v3390_v18 = vsel %vm3050_vm7, %v7073_v30, 0.0  ;;  %v6498_v16 = vunpack.c.h.bf16 %v8474_v1 }
 0x292   : > { %v3815_v49 = vsel %vm3709_vm10, %v3814_v32, %v3810_v52  ;;  %v3455_v39 = vmul.f32 0.020408163, %v3113_v51  ;;  %3391 = vadd.xlane.f32.xlu0 %v3390_v18  ;;  %v3829_v46 = vrot.slane %v3456_v40, %v8317_v24  ;;  %v2751_v28 = vmul.f32 %v8037_v3, %v2580_v26 }
 0x293   : > { %v7077_v0 = vpop.eup %7076  ;;  %v3122_v14 = vpop.xlane.xlu1 %3121  ;;  %v2582_v61 = vmul.f32 0.6931472, %v7075_v7  ;;  %7088 = vlog2.f32 %v2383_v10  ;;  %v3820_v1 = vsel %vm3716_vm11, %v3819_v60, %v3815_v49  ;;  %v2369_v19 = vmax.f32 %v6441_v35, 1e-06 }
 0x294   : > { %v3393_v15 = vsel %vm3050_vm7, %v7077_v0, 0.0  ;;  %v3824_v22 = vrot.slane %v3455_v39, %v8324_v54  ;;  %v3458_v55 = vmul.f32 0.020408163, %v3122_v14  ;;  %7090 = vlog2.f32 %v2368_v2  ;;  %v8527_v2 = vld [vmem:[%s8017_s17 + $0x1820] sm:$0xff]  }
 0x295   : > { %3394 = vadd.xlane.f32.xlu1 %v3393_v15  ;;  %v2964_v47 = vmul.f32 1.442695, %v2751_v28  ;;  %v3119_v27 = vpop.xlane.xlu0 %3118  ;;  %v2752_v5 = vmul.f32 %v8037_v3, %v2582_v61  ;;  %v2398_v29 = vmax.f32 %v6498_v16, 1e-06  ;;  %v6501_v8 = vunpack.c.l.bf16 %v8512_v23 }
 0x296   : > { %v3825_v38 = vsel %vm3723_vm12, %v3824_v22, %v3820_v1  ;;  %v3839_v41 = vrot.slane %v3458_v55, %v8329_v62  ;;  %v3457_v31 = vmul.f32 0.020408163, %v3119_v27  ;;  %v6470_v60 = vunpack.c.h.bf16 %v8485_v11 }
 0x297   : > { %v7079_v36 = vpop.eup %7078  ;;  %7092 = vpow2.f32 %v2964_v47  ;;  %v3830_v53 = vsel %vm3730_vm13, %v3829_v46, %v3825_v38  ;;  %v2966_v12 = vmul.f32 1.442695, %v2752_v5  ;;  %v3128_v58 = vpop.xlane.xlu1 %3127  ;;  %v2399_v50 = vmax.f32 %v6501_v8, 1e-06 }
 0x298   : > { %v7081_v20 = vpop.eup %7080  ;;  %v3348_v52 = vsel %vm3050_vm7, %v7079_v36, 0.0  ;;  %v3834_v48 = vrot.slane %v3457_v31, %v8348_v33  ;;  %v3460_v34 = vmul.f32 0.020408163, %v3128_v58  ;;  %7094 = vlog2.f32 %v2369_v19 }
 0x299   : > { %v7083_v45 = vpop.eup %7082  ;;  %3349 = vadd.xlane.f32.xlu0 %v3348_v52  ;;  %v3351_v10 = vsel %vm3050_vm7, %v7081_v20, 0.0  ;;  %7096 = vpow2.f32 %v2966_v12  ;;  %v3125_v37 = vpop.xlane.xlu0 %3124  ;;  %v8530_v39 = vmax.f32 %v6470_v60, 1e-06  ;;  %v6473_v15 = vunpack.c.l.bf16 %v8527_v2 }
 0x29a   : > { %v7085_v32 = vpop.eup %7084  ;;  %3352 = vadd.xlane.f32.xlu1 %v3351_v10  ;;  %v3835_v40 = vsel %vm3737_vm14, %v3834_v48, %v3830_v53  ;;  %v2640_v30 = vmul.f32 0.6931472, %v7083_v45  ;;  %v3849_v51 = vrot.slane %v3460_v34, %v8358_v21  ;;  %v3459_v26 = vmul.f32 0.020408163, %v3125_v37 }
 0x29b   : > { %v7087_v35 = vpop.eup %7086  ;;  %v3840_v7 = vsel %vm3744_vm15, %v3839_v41, %v3835_v40  ;;  %v2642_v18 = vmul.f32 0.6931472, %v7085_v32  ;;  %v3134_v49 = vpop.xlane.xlu1 %3133  ;;  %7098 = vlog2.f32 %v2398_v29  ;;  %v6442_v22 = vunpack.c.h.bf16 %v8497_v13 }
 0x29c   : > { %v2781_v11 = vmul.f32 %v8037_v3, %v2640_v30  ;;  %v3844_v16 = vrot.slane %v3459_v26, %v8370_v59  ;;  %v2612_v0 = vmul.f32 0.6931472, %v7087_v35  ;;  %v3462_v46 = vmul.f32 0.020408163, %v3134_v49 }
 0x29d   : > { %v7089_v28 = vpop.eup %7088  ;;  %v2782_v14 = vmul.f32 %v8037_v3, %v2642_v18  ;;  %v3131_v61 = vpop.xlane.xlu0 %3130  ;;  %7100 = vlog2.f32 %v2399_v50  ;;  %v2385_v52 = vmax.f32 %v6473_v15, 1e-06  ;;  %v8550_v18 = vld [vmem:[%s8017_s17 + $0x1428] sm:$0xff]  }
 0x29e   : > { %v7091_v55 = vpop.eup %7090  ;;  %v3024_v1 = vmul.f32 1.442695, %v2781_v11  ;;  %v3845_v47 = vsel %vm9470_vm0, %v3844_v16, %v3840_v7  ;;  %v2767_v27 = vmul.f32 %v8037_v3, %v2612_v0  ;;  %v3859_v5 = vrot.slane %v3462_v46, %v8376_v17 }
 0x29f   : > { %v3026_v19 = vmul.f32 1.442695, %v2782_v14  ;;  %v3850_v38 = vsel %vm3758_vm9, %v3849_v51, %v3845_v47  ;;  %v3461_v41 = vmul.f32 0.020408163, %v3131_v61  ;;  %v2614_v31 = vmul.f32 0.6931472, %v7089_v28  ;;  %v3140_v29 = vpop.xlane.xlu1 %3139 }
 0x2a0   : > { %7102 = vpow2.f32 %v3024_v1  ;;  %v2996_v36 = vmul.f32 1.442695, %v2767_v27  ;;  %v2584_v53 = vmul.f32 0.6931472, %v7091_v55  ;;  %v3464_v12 = vmul.f32 0.020408163, %v3140_v29 }
 0x2a1   : > { %v7093_v58 = vpop.eup %7092  ;;  %7104 = vpow2.f32 %v3026_v19  ;;  %v3854_v13 = vrot.slane %v3461_v41, %v8380_v42  ;;  %v2768_v8 = vmul.f32 %v8037_v3, %v2614_v31  ;;  %v3137_v20 = vpop.xlane.xlu0 %3136  ;;  %vm4355_vm0 = vcmask 1041409  }
 0x2a2   : > { %v7095_v48 = vpop.eup %7094  ;;  %v3306_v34 = vsel %vm3050_vm7, %v7093_v58, 0.0  ;;  %7106 = vpow2.f32 %v2996_v36  ;;  %v2753_v45 = vmul.f32 %v8037_v3, %v2584_v53  ;;  %v3869_v10 = vrot.slane %v3464_v12, %v8385_v56 }
 0x2a3   : > { %v7097_v37 = vpop.eup %7096  ;;  %3307 = vadd.xlane.f32.xlu0 %v3306_v34  ;;  %v3855_v50 = vsel %vm3765_vm1, %v3854_v13, %v3850_v38  ;;  %v2998_v60 = vmul.f32 1.442695, %v2768_v8  ;;  %v3463_v32 = vmul.f32 0.020408163, %v3137_v20  ;;  %v2586_v40 = vmul.f32 0.6931472, %v7095_v48  ;;  %v3146_v30 = vpop.xlane.xlu1 %3145 }
 0x2a4   : > { %v3309_v51 = vsel %vm3050_vm7, %v7097_v37, 0.0  ;;  %v2968_v26 = vmul.f32 1.442695, %v2753_v45  ;;  %v3860_v35 = vsel %vm3772_vm2, %v3859_v5, %v3855_v50  ;;  %v3466_v7 = vmul.f32 0.020408163, %v3146_v30 }
 0x2a5   : > { %v7099_v49 = vpop.eup %7098  ;;  %3310 = vadd.xlane.f32.xlu1 %v3309_v51  ;;  %7108 = vpow2.f32 %v2998_v60  ;;  %v3864_v11 = vrot.slane %v3463_v32, %v8392_v57  ;;  %v2754_v16 = vmul.f32 %v8037_v3, %v2586_v40  ;;  %v3143_v0 = vpop.xlane.xlu0 %3142  ;;  %v2370_v46 = vmax.f32 %v6442_v22, 1e-06 }
 0x2a6   : > { %7110 = vpow2.f32 %v2968_v26  ;;  %v2644_v28 = vmul.f32 0.6931472, %v7099_v49  ;;  %v3879_v14 = vrot.slane %v3466_v7, %v8407_v4  ;;  %v3465_v61 = vmul.f32 0.020408163, %v3143_v0  ;;  %v8579_v7 = vld [vmem:[%s8017_s17 + $0x1828] sm:$0xff]  }
 0x2a7   : > { %v7101_v15 = vpop.eup %7100  ;;  %v3865_v55 = vsel %vm3779_vm3, %v3864_v11, %v3860_v35  ;;  %v2970_v1 = vmul.f32 1.442695, %v2754_v16  ;;  %7112 = vlog2.f32 %v8530_v39  ;;  %v3152_v47 = vpop.xlane.xlu1 %3151  ;;  %v6445_v27 = vunpack.c.l.bf16 %v8550_v18 }
 0x2a8   : > { %v2783_v5 = vmul.f32 %v8037_v3, %v2644_v28  ;;  %v3870_v19 = vsel %vm3786_vm4, %v3869_v10, %v3865_v55  ;;  %v3874_v22 = vrot.slane %v3465_v61, %v8410_v6  ;;  %v2646_v38 = vmul.f32 0.6931472, %v7101_v15  ;;  %v8568_v10 = vld [vmem:[%s8017_s17 + $0x1c20] sm:$0xff]  }
 0x2a9   : > { %7114 = vpow2.f32 %v2970_v1  ;;  %v3468_v41 = vmul.f32 0.020408163, %v3152_v47  ;;  %v3149_v31 = vpop.xlane.xlu0 %3148  ;;  %v2371_v29 = vmax.f32 %v6445_v27, 1e-06  ;;  %v6502_v36 = vunpack.c.h.bf16 %v8512_v23 }
 0x2aa   : > { %v7103_v53 = vpop.eup %7102  ;;  %v3028_v12 = vmul.f32 1.442695, %v2783_v5  ;;  %v3875_v39 = vsel %vm3793_vm5, %v3874_v22, %v3870_v19  ;;  %v2784_v58 = vmul.f32 %v8037_v3, %v2646_v38  ;;  %v3467_v13 = vmul.f32 0.020408163, %v3149_v31 }
 0x2ab   : > { %v7105_v8 = vpop.eup %7104  ;;  %v3396_v20 = vsel %vm3050_vm7, %v7103_v53, 0.0  ;;  %v3880_v48 = vsel %vm3800_vm6, %v3879_v14, %v3875_v39  ;;  %v3888_v34 = vrot.slane %v3468_v41, %v8308_v43  ;;  %7116 = vlog2.f32 %v2385_v52  ;;  %v3158_v45 = vpop.xlane.xlu1 %3157  ;;  %v8591_v41 = vld [vmem:[%s8017_s17 + $0x1430] sm:$0xff]  }
 0x2ac   : > { %v7107_v37 = vpop.eup %7106  ;;  %3397 = vadd.xlane.f32.xlu0 %v3396_v20  ;;  %v3399_v23 = vsel %vm3050_vm7, %v7105_v8, 0.0  ;;  %7118 = vpow2.f32 %v3028_v12  ;;  %v8573_v50 = vsel %vm4355_vm0, %v3880_v48, %v8493_v44  ;;  %v3030_v60 = vmul.f32 1.442695, %v2784_v58 }
 0x2ad   : > { %3400 = vadd.xlane.f32.xlu1 %v3399_v23  ;;  %v3354_v32 = vsel %vm3050_vm7, %v7107_v37, 0.0  ;;  %v3884_v40 = vrot.slane %v3467_v13, %v8295_v25  ;;  %7120 = vlog2.f32 %v2370_v46  ;;  %v3470_v52 = vmul.f32 0.020408163, %v3158_v45  ;;  %v3155_v30 = vpop.xlane.xlu0 %3154 }
 0x2ae   : > { %7122 = vpow2.f32 %v3030_v60  ;;  %v3469_v51 = vmul.f32 0.020408163, %v3155_v30  ;;  %v2400_v26 = vmax.f32 %v6502_v36, 1e-06  ;;  %v6505_v35 = vunpack.c.l.bf16 %v8568_v10 }
 0x2af   : > { %v7109_v49 = vpop.eup %7108  ;;  %v3889_v44 = vsel %vm3702_vm8, %v3888_v34, %v3884_v40  ;;  %v3898_v11 = vrot.slane %v3470_v52, %v8305_v9  ;;  %7124 = vlog2.f32 %v2371_v29  ;;  %v3164_v16 = vpop.xlane.xlu1 %3163  ;;  %v6474_v0 = vunpack.c.h.bf16 %v8527_v2 }
 0x2b0   : > { %v7111_v28 = vpop.eup %7110  ;;  %3355 = vadd.xlane.f32.xlu0 %v3354_v32  ;;  %v3357_v46 = vsel %vm3050_vm7, %v7109_v49, 0.0  ;;  %v3893_v14 = vrot.slane %v3469_v51, %v8301_v63  ;;  %7126 = vlog2.f32 %v2400_v26  ;;  %v3472_v61 = vmul.f32 0.020408163, %v3164_v16 }
 0x2b1   : > { %v7113_v15 = vpop.eup %7112  ;;  %3358 = vadd.xlane.f32.xlu1 %v3357_v46  ;;  %v3312_v55 = vsel %vm3050_vm7, %v7111_v28, 0.0  ;;  %v3161_v1 = vpop.xlane.xlu0 %3160  ;;  %v2401_v47 = vmax.f32 %v6505_v35, 1e-06  ;;  %v2386_v27 = vmax.f32 %v6474_v0, 1e-06  ;;  %v6477_v5 = vunpack.c.l.bf16 %v8579_v7 }
 0x2b2   : > { %v2616_v19 = vmul.f32 0.6931472, %v7113_v15  ;;  %v3894_v2 = vsel %vm3709_vm10, %v3893_v14, %v3889_v44  ;;  %v3908_v22 = vrot.slane %v3472_v61, %v8317_v24  ;;  %v3471_v38 = vmul.f32 0.020408163, %v3161_v1 }
 0x2b3   : > { %v7115_v31 = vpop.eup %7114  ;;  %v3899_v29 = vsel %vm3716_vm11, %v3898_v11, %v3894_v2  ;;  %7128 = vlog2.f32 %v2401_v47  ;;  %v3170_v36 = vpop.xlane.xlu1 %3169  ;;  %v2387_v53 = vmax.f32 %v6477_v5, 1e-06  ;;  %v6446_v12 = vunpack.c.h.bf16 %v8550_v18 }
 0x2b4   : > { %3313 = vadd.xlane.f32.xlu0 %v3312_v55  ;;  %v3315_v39 = vsel %vm3050_vm7, %v7115_v31, 0.0  ;;  %v2769_v58 = vmul.f32 %v8037_v3, %v2616_v19  ;;  %v3903_v13 = vrot.slane %v3471_v38, %v8324_v54  ;;  %7130 = vlog2.f32 %v2386_v27 }
 0x2b5   : > { %v7117_v8 = vpop.eup %7116  ;;  %3316 = vadd.xlane.f32.xlu1 %v3315_v39  ;;  %v3474_v20 = vmul.f32 0.020408163, %v3170_v36  ;;  %v3167_v48 = vpop.xlane.xlu0 %3166  ;;  %7132 = vlog2.f32 %v2387_v53  ;;  %v2372_v34 = vmax.f32 %v6446_v12, 1e-06  ;;  %v6449_v45 = vunpack.c.l.bf16 %v8591_v41 }
 0x2b6   : > { %v7119_v37 = vpop.eup %7118  ;;  %v3000_v23 = vmul.f32 1.442695, %v2769_v58  ;;  %v2618_v60 = vmul.f32 0.6931472, %v7117_v8  ;;  %v3904_v18 = vsel %vm3723_vm12, %v3903_v13, %v3899_v29  ;;  %v3473_v32 = vmul.f32 0.020408163, %v3167_v48 }
 0x2b7   : > { %v7121_v40 = vpop.eup %7120  ;;  %v3402_v52 = vsel %vm3050_vm7, %v7119_v37, 0.0  ;;  %v3918_v30 = vrot.slane %v3474_v20, %v8329_v62  ;;  %v3909_v51 = vsel %vm3730_vm13, %v3908_v22, %v3904_v18  ;;  %7134 = vlog2.f32 %v2372_v34  ;;  %v3176_v26 = vpop.xlane.xlu1 %3175 }
 0x2b8   : > { %v7123_v35 = vpop.eup %7122  ;;  %3403 = vadd.xlane.f32.xlu0 %v3402_v52  ;;  %7136 = vpow2.f32 %v3000_v23  ;;  %v2770_v49 = vmul.f32 %v8037_v3, %v2618_v60  ;;  %v2588_v44 = vmul.f32 0.6931472, %v7121_v40  ;;  %v3913_v11 = vrot.slane %v3473_v32, %v8348_v33  ;;  %v8616_v60 = vld [vmem:[%s8017_s17 + $0x1c28] sm:$0xff]  }
 0x2b9   : > { %v7125_v16 = vpop.eup %7124  ;;  %v3405_v0 = vsel %vm3050_vm7, %v7123_v35, 0.0  ;;  %v3476_v28 = vmul.f32 0.020408163, %v3176_v26  ;;  %v3173_v46 = vpop.xlane.xlu0 %3172  ;;  %v2373_v14 = vmax.f32 %v6449_v45, 1e-06  ;;  %v6506_v61 = vunpack.c.h.bf16 %v8568_v10 }
 0x2ba   : > { %v7127_v15 = vpop.eup %7126  ;;  %3406 = vadd.xlane.f32.xlu1 %v3405_v0  ;;  %v3002_v55 = vmul.f32 1.442695, %v2770_v49  ;;  %v2755_v1 = vmul.f32 %v8037_v3, %v2588_v44  ;;  %v2590_v47 = vmul.f32 0.6931472, %v7125_v16  ;;  %v3914_v27 = vsel %vm3737_vm14, %v3913_v11, %v3909_v51 }
 0x2bb   : > { %v2648_v5 = vmul.f32 0.6931472, %v7127_v15  ;;  %v3928_v19 = vrot.slane %v3476_v28, %v8358_v21  ;;  %v3919_v2 = vsel %vm3744_vm15, %v3918_v30, %v3914_v27  ;;  %v3475_v22 = vmul.f32 0.020408163, %v3173_v46  ;;  %v3182_v38 = vpop.xlane.xlu1 %3181 }
 0x2bc   : > { %7138 = vpow2.f32 %v3002_v55  ;;  %v2972_v31 = vmul.f32 1.442695, %v2755_v1  ;;  %v2756_v29 = vmul.f32 %v8037_v3, %v2590_v47  ;;  %v2402_v10 = vmax.f32 %v6506_v61, 1e-06  ;;  %v8629_v55 = vld [vmem:[%s8017_s17 + $0x1830] sm:$0xff]  }
 0x2bd   : > { %v7129_v36 = vpop.eup %7128  ;;  %v2785_v53 = vmul.f32 %v8037_v3, %v2648_v5  ;;  %v3923_v12 = vrot.slane %v3475_v22, %v8370_v59  ;;  %7140 = vlog2.f32 %v2373_v14  ;;  %v3478_v39 = vmul.f32 0.020408163, %v3182_v38  ;;  %v3179_v58 = vpop.xlane.xlu0 %3178 }
 0x2be   : > { %v7131_v13 = vpop.eup %7130  ;;  %7142 = vpow2.f32 %v2972_v31  ;;  %v2974_v8 = vmul.f32 1.442695, %v2756_v29  ;;  %v2650_v20 = vmul.f32 0.6931472, %v7129_v36  ;;  %v3477_v48 = vmul.f32 0.020408163, %v3179_v58 }
 0x2bf   : > { %v7133_v34 = vpop.eup %7132  ;;  %v3032_v45 = vmul.f32 1.442695, %v2785_v53  ;;  %v2620_v37 = vmul.f32 0.6931472, %v7131_v13  ;;  %vm9476_vm0 = vcmask 589312   ;;  %7144 = vlog2.f32 %v2402_v10  ;;  %v3188_v18 = vpop.xlane.xlu1 %3187 }
 0x2c0   : > { %v3924_v23 = vsel %vm9476_vm0, %v3923_v12, %v3919_v2  ;;  %7146 = vpow2.f32 %v2974_v8  ;;  %v2786_v32 = vmul.f32 %v8037_v3, %v2650_v20  ;;  %v2622_v40 = vmul.f32 0.6931472, %v7133_v34 }
 0x2c1   : > { %v3938_v52 = vrot.slane %v3478_v39, %v8376_v17  ;;  %v7135_v30 = vpop.eup %7134  ;;  %7148 = vpow2.f32 %v3032_v45  ;;  %v2771_v51 = vmul.f32 %v8037_v3, %v2620_v37  ;;  %v3929_v26 = vsel %vm3758_vm9, %v3928_v19, %v3924_v23  ;;  %v3185_v49 = vpop.xlane.xlu0 %3184 }
 0x2c2   : > { %v3933_v35 = vrot.slane %v3477_v48, %v8380_v42  ;;  %v7137_v44 = vpop.eup %7136  ;;  %v3034_v11 = vmul.f32 1.442695, %v2786_v32  ;;  %v2772_v16 = vmul.f32 %v8037_v3, %v2622_v40  ;;  %v2592_v0 = vmul.f32 0.6931472, %v7135_v30  ;;  %v8642_v30 = vld [vmem:[%s8017_s17 + $0x1438] sm:$0xff]  }
 0x2c3   : > { %v6509_v28 = vunpack.c.l.bf16 %v8616_v60  ;;  %v3360_v46 = vsel %vm3050_vm7, %v7137_v44, 0.0  ;;  %v3004_v14 = vmul.f32 1.442695, %v2771_v51  ;;  %v6478_v15 = vunpack.c.h.bf16 %v8579_v7  ;;  %v3194_v1 = vpop.xlane.xlu1 %3193  ;;  %v8648_v44 = vld [vmem:[%s8017_s17 + $0x1c30] sm:$0xff]  }
 0x2c4   : > { %v3934_v61 = vsel %vm3765_vm1, %v3933_v35, %v3929_v26  ;;  %3361 = vadd.xlane.f32.xlu0 %v3360_v46  ;;  %7150 = vpow2.f32 %v3034_v11  ;;  %v3006_v47 = vmul.f32 1.442695, %v2772_v16  ;;  %v2757_v27 = vmul.f32 %v8037_v3, %v2592_v0 }
 0x2c5   : > { %v2403_v5 = vmax.f32 %v6509_v28, 1e-06  ;;  %7152 = vpow2.f32 %v3004_v14  ;;  %v2388_v19 = vmax.f32 %v6478_v15, 1e-06  ;;  %v3480_v2 = vmul.f32 0.020408163, %v3188_v18  ;;  %v3191_v38 = vpop.xlane.xlu0 %3190 }
 0x2c6   : > { %v3939_v22 = vsel %vm3772_vm2, %v3938_v52, %v3934_v61  ;;  %v7139_v31 = vpop.eup %7138  ;;  %7154 = vpow2.f32 %v3006_v47  ;;  %v2976_v29 = vmul.f32 1.442695, %v2757_v27  ;;  %v3479_v10 = vmul.f32 0.020408163, %v3185_v49 }
 0x2c7   : > { %v6481_v7 = vunpack.c.l.bf16 %v8629_v55  ;;  %v7141_v36 = vpop.eup %7140  ;;  %v3363_v53 = vsel %vm3050_vm7, %v7139_v31, 0.0  ;;  %7156 = vlog2.f32 %v2403_v5  ;;  %v3948_v12 = vrot.slane %v3480_v2, %v8385_v56  ;;  %v3200_v58 = vpop.xlane.xlu1 %3199 }
 0x2c8   : > { %v6450_v39 = vunpack.c.h.bf16 %v8591_v41  ;;  %v7143_v13 = vpop.eup %7142  ;;  %3364 = vadd.xlane.f32.xlu1 %v3363_v53  ;;  %7158 = vpow2.f32 %v2976_v29  ;;  %v2594_v8 = vmul.f32 0.6931472, %v7141_v36  ;;  %v3943_v20 = vrot.slane %v3479_v10, %v8392_v57 }
 0x2c9   : > { %v2389_v48 = vmax.f32 %v6481_v7, 1e-06  ;;  %v7145_v34 = vpop.eup %7144  ;;  %v3318_v45 = vsel %vm3050_vm7, %v7143_v13, 0.0  ;;  %7160 = vlog2.f32 %v2388_v19  ;;  %v3482_v23 = vmul.f32 0.020408163, %v3194_v1  ;;  %v3197_v18 = vpop.xlane.xlu0 %3196 }
 0x2ca   : > { %v2374_v37 = vmax.f32 %v6450_v39, 1e-06  ;;  %v7147_v32 = vpop.eup %7146  ;;  %3319 = vadd.xlane.f32.xlu0 %v3318_v45  ;;  %v2758_v41 = vmul.f32 %v8037_v3, %v2594_v8  ;;  %v2652_v40 = vmul.f32 0.6931472, %v7145_v34  ;;  %v3944_v52 = vsel %vm3779_vm3, %v3943_v20, %v3939_v22 }
 0x2cb   : > { %7162 = vlog2.f32 %v2389_v48  ;;  %v7149_v51 = vpop.eup %7148  ;;  %v3321_v26 = vsel %vm3050_vm7, %v7147_v32, 0.0  ;;  %v3958_v35 = vrot.slane %v3482_v23, %v8407_v4  ;;  %v3949_v49 = vsel %vm3786_vm4, %v3948_v12, %v3944_v52  ;;  %v3206_v11 = vpop.xlane.xlu1 %3205 }
 0x2cc   : > { %7164 = vlog2.f32 %v2374_v37  ;;  %3322 = vadd.xlane.f32.xlu1 %v3321_v26  ;;  %v3408_v16 = vsel %vm3050_vm7, %v7149_v51, 0.0  ;;  %v2978_v0 = vmul.f32 1.442695, %v2758_v41  ;;  %v2787_v28 = vmul.f32 %v8037_v3, %v2652_v40  ;;  %v6636_v37 = vld [vmem:[%s8017_s17 + $0x1838] sm:$0xff]  }
 0x2cd   : > { %vm4357_vm0 = vcmask 1042434   ;;  %v3481_v46 = vmul.f32 0.020408163, %v3191_v38  ;;  %v6453_v14 = vunpack.c.l.bf16 %v8642_v30  ;;  %v6510_v61 = vunpack.c.h.bf16 %v8616_v60  ;;  %v3203_v1 = vpop.xlane.xlu0 %3202 }
 0x2ce   : > { %v3484_v15 = vmul.f32 0.020408163, %v3200_v58  ;;  %v7151_v47 = vpop.eup %7150  ;;  %3409 = vadd.xlane.f32.xlu0 %v3408_v16  ;;  %7166 = vpow2.f32 %v2978_v0  ;;  %v3036_v27 = vmul.f32 1.442695, %v2787_v28  ;;  %v3483_v5 = vmul.f32 0.020408163, %v3197_v18 }
 0x2cf   : > { %v6513_v19 = vunpack.c.l.bf16 %v8648_v44  ;;  %v7153_v2 = vpop.eup %7152  ;;  %v3411_v22 = vsel %vm3050_vm7, %v7151_v47, 0.0  ;;  %v3953_v31 = vrot.slane %v3481_v46, %v8410_v6  ;;  %v2375_v29 = vmax.f32 %v6453_v14, 1e-06  ;;  %v3212_v10 = vpop.xlane.xlu1 %3211 }
 0x2d0   : > { %v2404_v38 = vmax.f32 %v6510_v61, 1e-06  ;;  %v7155_v7 = vpop.eup %7154  ;;  %3412 = vadd.xlane.f32.xlu1 %v3411_v22  ;;  %v3366_v60 = vsel %vm3050_vm7, %v7153_v2, 0.0  ;;  %7168 = vpow2.f32 %v3036_v27  ;;  %v3967_v36 = vrot.slane %v3484_v15, %v8308_v43 }
 0x2d1   : > { %v3963_v53 = vrot.slane %v3483_v5, %v8295_v25  ;;  %v7157_v12 = vpop.eup %7156  ;;  %v3369_v39 = vsel %vm3050_vm7, %v7155_v7, 0.0  ;;  %v3954_v58 = vsel %vm3793_vm5, %v3953_v31, %v3949_v49  ;;  %7170 = vlog2.f32 %v2375_v29  ;;  %v3209_v8 = vpop.xlane.xlu0 %3208 }
 0x2d2   : > { %v2405_v13 = vmax.f32 %v6513_v19, 1e-06  ;;  %v7159_v20 = vpop.eup %7158  ;;  %3367 = vadd.xlane.f32.xlu0 %v3366_v60  ;;  %v2654_v48 = vmul.f32 0.6931472, %v7157_v12  ;;  %v3959_v34 = vsel %vm3800_vm6, %v3958_v35, %v3954_v58  ;;  %7172 = vlog2.f32 %v2404_v38 }
 0x2d3   : > { %v3968_v45 = vsel %vm3702_vm8, %v3967_v36, %v3963_v53  ;;  %v7161_v23 = vpop.eup %7160  ;;  %v3324_v18 = vsel %vm3050_vm7, %v7159_v20, 0.0  ;;  %v8668_v32 = vsel %vm4357_vm0, %v3959_v34, %v8573_v50  ;;  %v6482_v41 = vunpack.c.h.bf16 %v8629_v55  ;;  %v3218_v40 = vpop.xlane.xlu1 %3217 }
 0x2d4   : > { %7174 = vlog2.f32 %v2405_v13  ;;  %3370 = vadd.xlane.f32.xlu1 %v3369_v39  ;;  %v2788_v51 = vmul.f32 %v8037_v3, %v2654_v48  ;;  %v2624_v26 = vmul.f32 0.6931472, %v7161_v23  ;;  %v3486_v35 = vmul.f32 0.020408163, %v3206_v11 }
 0x2d5   : > { %v7163_v52 = vpop.eup %7162  ;;  %v3485_v49 = vmul.f32 0.020408163, %v3203_v1  ;;  %v2390_v28 = vmax.f32 %v6482_v41, 1e-06  ;;  %v6485_v46 = vunpack.c.l.bf16 %v6636_v37  ;;  %v6454_v14 = vunpack.c.h.bf16 %v8642_v30  ;;  %v3215_v61 = vpop.xlane.xlu0 %3214 }
 0x2d6   : > { %v7165_v16 = vpop.eup %7164  ;;  %v2626_v0 = vmul.f32 0.6931472, %v7163_v52  ;;  %3325 = vadd.xlane.f32.xlu0 %v3324_v18  ;;  %v3038_v50 = vmul.f32 1.442695, %v2788_v51  ;;  %v2773_v15 = vmul.f32 %v8037_v3, %v2624_v26  ;;  %v3977_v47 = vrot.slane %v3486_v35, %v8305_v9  ;;  %v6644_v26 = vld [vmem:[%s8017_s17 + $0x1c38] sm:$0xff]  }
 0x2d7   : > { %v2596_v55 = vmul.f32 0.6931472, %v7165_v16  ;;  %7176 = vlog2.f32 %v2390_v28  ;;  %v3972_v11 = vrot.slane %v3485_v49, %v8301_v63  ;;  %v2391_v1 = vmax.f32 %v6485_v46, 1e-06  ;;  %v8677_v5 = vpop.xlane.xlu1 %3223 }
 0x2d8   : > { %v2774_v27 = vmul.f32 %v8037_v3, %v2626_v0  ;;  %v7167_v19 = vpop.eup %7166  ;;  %7178 = vpow2.f32 %v3038_v50  ;;  %v3008_v2 = vmul.f32 1.442695, %v2773_v15  ;;  %v2376_v22 = vmax.f32 %v6454_v14, 1e-06 }
 0x2d9   : > { %v2759_v30 = vmul.f32 %v8037_v3, %v2596_v55  ;;  %v3327_v31 = vsel %vm3050_vm7, %v7167_v19, 0.0  ;;  %v3973_v38 = vsel %vm3709_vm10, %v3972_v11, %v3968_v45  ;;  %7180 = vlog2.f32 %v2391_v1  ;;  %v8682_v7 = vpop.xlane.xlu0 %3220 }
 0x2da   : > { %v3010_v29 = vmul.f32 1.442695, %v2774_v27  ;;  %v7169_v60 = vpop.eup %7168  ;;  %3328 = vadd.xlane.f32.xlu1 %v3327_v31  ;;  %7182 = vpow2.f32 %v3008_v2  ;;  %v3488_v53 = vmul.f32 0.020408163, %v3212_v10  ;;  %v3978_v12 = vsel %vm3716_vm11, %v3977_v47, %v3973_v38 }
 0x2db   : > { %v2980_v36 = vmul.f32 1.442695, %v2759_v30  ;;  %v7171_v39 = vpop.eup %7170  ;;  %v3414_v58 = vsel %vm3050_vm7, %v7169_v60, 0.0  ;;  %v3487_v13 = vmul.f32 0.020408163, %v3209_v8  ;;  %v6486_v20 = vunpack.c.h.bf16 %v6636_v37  ;;  %v8686_v48 = vpop.xlane.xlu1 %3229 }
 0x2dc   : > { %7184 = vpow2.f32 %v3010_v29  ;;  %v7173_v34 = vpop.eup %7172  ;;  %3415 = vadd.xlane.f32.xlu0 %v3414_v58  ;;  %v2598_v45 = vmul.f32 0.6931472, %v7171_v39  ;;  %v3987_v23 = vrot.slane %v3488_v53, %v8317_v24  ;;  %v6514_v18 = vunpack.c.h.bf16 %v8648_v44 }
 0x2dd   : > { %7186 = vpow2.f32 %v2980_v36  ;;  %v2656_v41 = vmul.f32 0.6931472, %v7173_v34  ;;  %v3982_v52 = vrot.slane %v3487_v13, %v8324_v54  ;;  %v2392_v51 = vmax.f32 %v6486_v20, 1e-06  ;;  %v3227_v35 = vpop.xlane.xlu0 %3226 }
 0x2de   : > { %v7175_v10 = vpop.eup %7174  ;;  %7188 = vlog2.f32 %v2376_v22  ;;  %v2760_v8 = vmul.f32 %v8037_v3, %v2598_v45  ;;  %v2406_v49 = vmax.f32 %v6514_v18, 1e-06  ;;  %v3490_v16 = vmul.f32 0.020408163, %v3218_v40 }
 0x2df   : > { %v2658_v37 = vmul.f32 0.6931472, %v7175_v10  ;;  %v2789_v0 = vmul.f32 %v8037_v3, %v2656_v41  ;;  %v3983_v28 = vsel %vm3723_vm12, %v3982_v52, %v3978_v12  ;;  %7190 = vlog2.f32 %v2392_v51  ;;  %v3236_v44 = vpop.xlane.xlu1 %3235 }
 0x2e0   : > { %v3489_v46 = vmul.f32 0.020408163, %v3215_v61  ;;  %v2982_v14 = vmul.f32 1.442695, %v2760_v8  ;;  %7192 = vlog2.f32 %v2406_v49  ;;  %v3997_v15 = vrot.slane %v3490_v16, %v8329_v62 }
 0x2e1   : > { %v2790_v50 = vmul.f32 %v8037_v3, %v2658_v37  ;;  %v7177_v55 = vpop.eup %7176  ;;  %v3040_v47 = vmul.f32 1.442695, %v2789_v0  ;;  %v3988_v27 = vsel %vm3730_vm13, %v3987_v23, %v3983_v28  ;;  %v6517_v40 = vunpack.c.l.bf16 %v6644_v26  ;;  %v3233_v1 = vpop.xlane.xlu0 %3232 }
 0x2e2   : > { %v3992_v11 = vrot.slane %v3489_v46, %v8348_v33  ;;  %v7179_v19 = vpop.eup %7178  ;;  %7194 = vpow2.f32 %v2982_v14  ;;  %v2628_v30 = vmul.f32 0.6931472, %v7177_v55  ;;  %v6518_v61 = vunpack.c.h.bf16 %v6644_v26 }
 0x2e3   : > { %v3042_v2 = vmul.f32 1.442695, %v2790_v50  ;;  %v7181_v22 = vpop.eup %7180  ;;  %v3417_v31 = vsel %vm3050_vm7, %v7179_v19, 0.0  ;;  %7196 = vpow2.f32 %v3040_v47  ;;  %v2407_v38 = vmax.f32 %v6517_v40, 1e-06  ;;  %v3242_v60 = vpop.xlane.xlu1 %3241 }
 0x2e4   : > { %v3993_v29 = vsel %vm3737_vm14, %v3992_v11, %v3988_v27  ;;  %v7183_v36 = vpop.eup %7182  ;;  %3418 = vadd.xlane.f32.xlu1 %v3417_v31  ;;  %v2775_v53 = vmul.f32 %v8037_v3, %v2628_v30  ;;  %v2630_v12 = vmul.f32 0.6931472, %v7181_v22  ;;  %v2408_v39 = vmax.f32 %v6518_v61, 1e-06 }
 0x2e5   : > { %7198 = vpow2.f32 %v3042_v2  ;;  %v3372_v13 = vsel %vm3050_vm7, %v7183_v36, 0.0  ;;  %v3492_v20 = vmul.f32 0.020408163, %v8677_v5  ;;  %v3998_v34 = vsel %vm3744_vm15, %v3997_v15, %v3993_v29  ;;  %v8705_v45 = vpop.xlane.xlu0 %3238 }
 0x2e6   : > { %v7185_v58 = vpop.eup %7184  ;;  %7200 = vlog2.f32 %v2407_v38  ;;  %3373 = vadd.xlane.f32.xlu0 %v3372_v13  ;;  %v3012_v10 = vmul.f32 1.442695, %v2775_v53  ;;  %v2776_v41 = vmul.f32 %v8037_v3, %v2630_v12  ;;  %v3491_v8 = vmul.f32 0.020408163, %v8682_v7 }
 0x2e7   : > { %v7187_v23 = vpop.eup %7186  ;;  %v3375_v18 = vsel %vm3050_vm7, %v7185_v58, 0.0  ;;  %7202 = vlog2.f32 %v2408_v39  ;;  %v4007_v26 = vrot.slane %v3492_v20, %v8358_v21  ;;  %v3494_v5 = vmul.f32 0.020408163, %v8686_v48  ;;  %v3248_v37 = vpop.xlane.xlu1 %3247 }
 0x2e8   : > { %v7189_v52 = vpop.eup %7188  ;;  %v3330_v51 = vsel %vm3050_vm7, %v7187_v23, 0.0  ;;  %3376 = vadd.xlane.f32.xlu1 %v3375_v18  ;;  %7204 = vpow2.f32 %v3012_v10  ;;  %v3014_v49 = vmul.f32 1.442695, %v2776_v41  ;;  %v3493_v0 = vmul.f32 0.020408163, %v3227_v35 }
 0x2e9   : > { %v2600_v16 = vmul.f32 0.6931472, %v7189_v52  ;;  %v7191_v28 = vpop.eup %7190  ;;  %v4002_v46 = vrot.slane %v3491_v8, %v8370_v59  ;;  %v4017_v14 = vrot.slane %v3494_v5, %v8376_v17  ;;  %v3496_v50 = vmul.f32 0.020408163, %v3236_v44  ;;  %v3245_v55 = vpop.xlane.xlu0 %3244 }
 0x2ea   : > { %v3495_v15 = vmul.f32 0.020408163, %v3233_v1  ;;  %v7193_v47 = vpop.eup %7192  ;;  %3331 = vadd.xlane.f32.xlu0 %v3330_v51  ;;  %7206 = vpow2.f32 %v3014_v49  ;;  %v2632_v48 = vmul.f32 0.6931472, %v7191_v28  ;;  %v4012_v27 = vrot.slane %v3493_v0, %v8380_v42 }
 0x2eb   : > { %v2761_v7 = vmul.f32 %v8037_v3, %v2600_v16  ;;  %v2660_v11 = vmul.f32 0.6931472, %v7193_v47  ;;  %vm9477_vm0 = vcmask 589312   ;;  %v4027_v35 = vrot.slane %v3496_v50, %v8385_v56  ;;  %v3254_v2 = vpop.xlane.xlu1 %3253 }
 0x2ec   : > { %v4003_v40 = vsel %vm9477_vm0, %v4002_v46, %v3998_v34  ;;  %v4022_v19 = vrot.slane %v3495_v15, %v8392_v57  ;;  %v7195_v30 = vpop.eup %7194  ;;  %v2777_v1 = vmul.f32 %v8037_v3, %v2632_v48  ;;  %v3498_v22 = vmul.f32 0.020408163, %v3242_v60 }
 0x2ed   : > { %v2984_v44 = vmul.f32 1.442695, %v2761_v7  ;;  %v4008_v61 = vsel %vm3758_vm9, %v4007_v26, %v4003_v40  ;;  %v7197_v31 = vpop.eup %7196  ;;  %v3333_v29 = vsel %vm3050_vm7, %v7195_v30, 0.0  ;;  %v2791_v38 = vmul.f32 %v8037_v3, %v2660_v11  ;;  %v3251_v53 = vpop.xlane.xlu0 %3250 }
 0x2ee   : > { %v4013_v36 = vsel %vm3765_vm1, %v4012_v27, %v4008_v61  ;;  %vm4359_vm0 = vcmask 1043459   ;;  %3334 = vadd.xlane.f32.xlu1 %v3333_v29  ;;  %v3420_v39 = vsel %vm3050_vm7, %v7197_v31, 0.0  ;;  %v3016_v58 = vmul.f32 1.442695, %v2777_v1 }
 0x2ef   : > { %v7199_v12 = vpop.eup %7198  ;;  %7208 = vpow2.f32 %v2984_v44  ;;  %v4018_v13 = vsel %vm3772_vm2, %v4017_v14, %v4013_v36  ;;  %3421 = vadd.xlane.f32.xlu0 %v3420_v39  ;;  %v3044_v34 = vmul.f32 1.442695, %v2791_v38  ;;  %v4037_v18 = vrot.slane %v3498_v22, %v8407_v4  ;;  %v3260_v10 = vpop.xlane.xlu1 %3259 }
 0x2f0   : > { %v7201_v20 = vpop.eup %7200  ;;  %v3423_v60 = vsel %vm3050_vm7, %v7199_v12, 0.0  ;;  %v4023_v23 = vsel %vm3779_vm3, %v4022_v19, %v4018_v13  ;;  %7210 = vpow2.f32 %v3016_v58  ;;  %v3497_v26 = vmul.f32 0.020408163, %v8705_v45 }
 0x2f1   : > { %v7203_v41 = vpop.eup %7202  ;;  %v2662_v52 = vmul.f32 0.6931472, %v7201_v20  ;;  %v4028_v51 = vsel %vm3786_vm4, %v4027_v35, %v4023_v23  ;;  %7212 = vpow2.f32 %v3044_v34  ;;  %v3500_v5 = vmul.f32 0.020408163, %v3248_v37  ;;  %v3257_v16 = vpop.xlane.xlu0 %3256 }
 0x2f2   : > { %v2664_v8 = vmul.f32 0.6931472, %v7203_v41  ;;  %v3499_v49 = vmul.f32 0.020408163, %v3245_v55  ;;  %v7205_v0 = vpop.eup %7204  ;;  %3424 = vadd.xlane.f32.xlu1 %v3423_v60  ;;  %v4032_v46 = vrot.slane %v3497_v26, %v8410_v6  ;;  %v3502_v14 = vmul.f32 0.020408163, %v3254_v2 }
 0x2f3   : > { %v2792_v28 = vmul.f32 %v8037_v3, %v2662_v52  ;;  %v3501_v50 = vmul.f32 0.020408163, %v3251_v53  ;;  %v3378_v15 = vsel %vm3050_vm7, %v7205_v0, 0.0  ;;  %v4046_v7 = vrot.slane %v3500_v5, %v8308_v43  ;;  %v3266_v48 = vpop.xlane.xlu1 %3265 }
 0x2f4   : > { %v2793_v47 = vmul.f32 %v8037_v3, %v2664_v8  ;;  %v4042_v45 = vrot.slane %v3499_v49, %v8295_v25  ;;  %v7207_v37 = vpop.eup %7206  ;;  %3379 = vadd.xlane.f32.xlu0 %v3378_v15  ;;  %v4033_v27 = vsel %vm3793_vm5, %v4032_v46, %v4028_v51  ;;  %v4056_v11 = vrot.slane %v3502_v14, %v8305_v9 }
 0x2f5   : > { %v3046_v55 = vmul.f32 1.442695, %v2792_v28  ;;  %v4051_v40 = vrot.slane %v3501_v50, %v8301_v63  ;;  %v3381_v35 = vsel %vm3050_vm7, %v7207_v37, 0.0  ;;  %v4038_v2 = vsel %vm3800_vm6, %v4037_v18, %v4033_v27  ;;  %v3263_v30 = vpop.xlane.xlu0 %3262 }
 0x2f6   : > { %v3048_v19 = vmul.f32 1.442695, %v2793_v47  ;;  %v4047_v3 = vsel %vm3702_vm8, %v4046_v7, %v4042_v45  ;;  %3382 = vadd.xlane.f32.xlu1 %v3381_v35  ;;  %v8746_v44 = vsel %vm4359_vm0, %v4038_v2, %v8668_v32  ;;  %v3504_v61 = vmul.f32 0.020408163, %v3260_v10 }
 0x2f7   : > { %7214 = vpow2.f32 %v3046_v55  ;;  %v4052_v1 = vsel %vm3709_vm10, %v4051_v40, %v4047_v3  ;;  %v3503_v31 = vmul.f32 0.020408163, %v3257_v16  ;;  %v3506_v29 = vmul.f32 0.020408163, %v3266_v48  ;;  %v3272_v38 = vpop.xlane.xlu1 %3271 }
 0x2f8   : > { %7216 = vpow2.f32 %v3048_v19  ;;  %v4057_v22 = vsel %vm3716_vm11, %v4056_v11, %v4052_v1  ;;  %v4066_v53 = vrot.slane %v3504_v61, %v8317_v24  ;;  %v3505_v12 = vmul.f32 0.020408163, %v3263_v30 }
 0x2f9   : > { %v7209_v36 = vpop.eup %7208  ;;  %v3508_v39 = vmul.f32 0.020408163, %v3272_v38  ;;  %v4061_v13 = vrot.slane %v3503_v31, %v8324_v54  ;;  %v3269_v32 = vpop.xlane.xlu0 %3268  ;;  %v4076_v60 = vrot.slane %v3506_v29, %v8329_v62  ;;  %vm9478_vm0 = vcmask 589312  }
 0x2fa   : > { %v3336_v58 = vsel %vm3050_vm7, %v7209_v36, 0.0  ;;  %v7211_v20 = vpop.eup %7210  ;;  %v4071_v34 = vrot.slane %v3505_v12, %v8348_v33  ;;  %v3507_v23 = vmul.f32 0.020408163, %v3269_v32 }
 0x2fb   : > { %3337 = vadd.xlane.f32.xlu0 %v3336_v58  ;;  %v7213_v18 = vpop.eup %7212  ;;  %v3384_v10 = vsel %vm3050_vm7, %v7211_v20, 0.0  ;;  %v4062_v41 = vsel %vm3723_vm12, %v4061_v13, %v4057_v22  ;;  %v4086_v52 = vrot.slane %v3508_v39, %v8358_v21  ;;  %v3278_v51 = vpop.xlane.xlu1 %3277 }
 0x2fc   : > { %3385 = vadd.xlane.f32.xlu1 %v3384_v10  ;;  %v3426_v26 = vsel %vm3050_vm7, %v7213_v18, 0.0  ;;  %v4067_v8 = vsel %vm3730_vm13, %v4066_v53, %v4062_v41  ;;  %v4081_v5 = vrot.slane %v3507_v23, %v8370_v59  ;;  %v3510_v49 = vmul.f32 0.020408163, %v3278_v51 }
 0x2fd   : > { %v4072_v16 = vsel %vm3737_vm14, %v4071_v34, %v4067_v8  ;;  %v3275_v0 = vpop.xlane.xlu0 %3274 }
 0x2fe   : > { %v4077_v28 = vsel %vm3744_vm15, %v4076_v60, %v4072_v16  ;;  %v3509_v46 = vmul.f32 0.020408163, %v3275_v0  ;;  %v4096_v50 = vrot.slane %v3510_v49, %v8376_v17 }
 0x2ff   : > { %3427 = vadd.xlane.f32.xlu0 %v3426_v26  ;;  %v4082_v14 = vsel %vm9478_vm0, %v4081_v5, %v4077_v28  ;;  %v3284_v15 = vpop.xlane.xlu1 %3283 }
 0x300   : > { %v4087_v7 = vsel %vm3758_vm9, %v4086_v52, %v4082_v14  ;;  %v4091_v45 = vrot.slane %v3509_v46, %v8380_v42  ;;  %v3512_v48 = vmul.f32 0.020408163, %v3284_v15 }
 0x301   : > { %v7215_v47 = vpop.eup %7214  ;;  %v3281_v27 = vpop.xlane.xlu0 %3280 }
 0x302   : > { %v7217_v37 = vpop.eup %7216  ;;  %v3429_v55 = vsel %vm3050_vm7, %v7215_v47, 0.0  ;;  %v4092_v40 = vsel %vm3765_vm1, %v4091_v45, %v4087_v7  ;;  %v3511_v35 = vmul.f32 0.020408163, %v3281_v27  ;;  %v4106_v19 = vrot.slane %v3512_v48, %v8385_v56 }
 0x303   : > { %3430 = vadd.xlane.f32.xlu0 %v3429_v55  ;;  %v3432_v11 = vsel %vm3050_vm7, %v7217_v37, 0.0  ;;  %v4097_v2 = vsel %vm3772_vm2, %v4096_v50, %v4092_v40  ;;  %v3290_v3 = vpop.xlane.xlu1 %3289  ;;  %vm4361_vm7 = vcmask 1044484  }
 0x304   : > { %3433 = vadd.xlane.f32.xlu1 %v3432_v11  ;;  %v4101_v30 = vrot.slane %v3511_v35, %v8392_v57  ;;  %v3514_v1 = vmul.f32 0.020408163, %v3290_v3 }
 0x305   : > { %v3287_v61 = vpop.xlane.xlu0 %3286 }
 0x306   : > { %v4102_v22 = vsel %vm3779_vm3, %v4101_v30, %v4097_v2  ;;  %v3513_v31 = vmul.f32 0.020408163, %v3287_v61  ;;  %v4116_v29 = vrot.slane %v3514_v1, %v8407_v4 }
 0x307   : > { %v4107_v38 = vsel %vm3786_vm4, %v4106_v19, %v4102_v22  ;;  %v3296_v36 = vpop.xlane.xlu1 %3295 }
 0x308   : > { %v4111_v53 = vrot.slane %v3513_v31, %v8410_v6  ;;  %v3516_v12 = vmul.f32 0.020408163, %v3296_v36 }
 0x30a   : > { %v4112_v39 = vsel %vm3793_vm5, %v4111_v53, %v4107_v38  ;;  %v3293_v58 = vpop.xlane.xlu0 %3292  ;;  %v4125_v32 = vrot.slane %v3516_v12, %v8308_v43 }
 0x30b   : > { %v4117_v13 = vsel %vm3800_vm6, %v4116_v29, %v4112_v39  ;;  %v3515_v20 = vmul.f32 0.020408163, %v3293_v58 }
 0x30c   : > { %v8781_v60 = vsel %vm4361_vm7, %v4117_v13, %v8746_v44 }
 0x30d   : > { %v4121_v34 = vrot.slane %v3515_v20, %v8295_v25 }
 0x30f   : > { %v4126_v23 = vsel %vm3702_vm8, %v4125_v32, %v4121_v34  ;;  %v3341_v18 = vpop.xlane.xlu1 %3340 }
 0x310   : > { %v3299_v10 = vpop.xlane.xlu0 %3298  ;;  %v3531_v52 = vmul.f32 0.020408163, %v3341_v18 }
 0x311   : > { %v3517_v41 = vmul.f32 0.020408163, %v3299_v10 }
 0x312   : > { %v4200_v44 = vrot.slane %v3531_v52, %v8295_v25 }
 0x313   : > { %v4130_v51 = vrot.slane %v3517_v41, %v8301_v63  ;;  %v3302_v26 = vpop.xlane.xlu1 %3301 }
 0x314   : > { %v3518_v8 = vmul.f32 0.020408163, %v3302_v26  ;;  %v3344_v5 = vpop.xlane.xlu0 %3343 }
 0x315   : > { %v4131_v49 = vsel %vm3709_vm10, %v4130_v51, %v4126_v23  ;;  %v3532_v16 = vmul.f32 0.020408163, %v3344_v5 }
 0x316   : > { %v4135_v0 = vrot.slane %v3518_v8, %v8305_v9 }
 0x317   : > { %v4204_v28 = vrot.slane %v3532_v16, %v8308_v43 }
 0x318   : > { %v4136_v46 = vsel %vm3716_vm11, %v4135_v0, %v4131_v49 }
 0x319   : > { %v4205_v14 = vsel %vm3702_vm8, %v4204_v28, %v4200_v44  ;;  %v3389_v7 = vpop.xlane.xlu1 %3388 }
 0x31a   : > { %v3347_v50 = vpop.xlane.xlu0 %3346  ;;  %v3547_v10 = vmul.f32 0.020408163, %v3389_v7 }
 0x31b   : > { %v3533_v15 = vmul.f32 0.020408163, %v3347_v50 }
 0x31c   : > { %v4279_v0 = vrot.slane %v3547_v10, %v8295_v25 }
 0x31d   : > { %v4209_v47 = vrot.slane %v3533_v15, %v8301_v63  ;;  %v3305_v48 = vpop.xlane.xlu1 %3304 }
 0x31e   : > { %v3519_v23 = vmul.f32 0.020408163, %v3305_v48 }
 0x31f   : > { %v4210_v45 = vsel %vm3709_vm10, %v4209_v47, %v4205_v14  ;;  %v3392_v37 = vpop.xlane.xlu0 %3391 }
 0x320   : > { %v3548_v18 = vmul.f32 0.020408163, %v3392_v37  ;;  %v4140_v26 = vrot.slane %v3519_v23, %v8324_v54 }
 0x322   : > { %v3395_v55 = vpop.xlane.xlu1 %3394  ;;  %v4283_v5 = vrot.slane %v3548_v18, %v8308_v43  ;;  %v4141_v37 = vsel %vm3723_vm12, %v4140_v26, %v4136_v46 }
 0x323   : > { %v3549_v41 = vmul.f32 0.020408163, %v3395_v55 }
 0x324   : > { %v4284_v43 = vsel %vm3702_vm8, %v4283_v5, %v4279_v0  ;;  %vm9479_vm8 = vmmov %vm9478_vm0 }
 0x325   : > { %v4288_v44 = vrot.slane %v3549_v41, %v8301_v63 }
 0x326   : > { %v3350_v27 = vpop.xlane.xlu0 %3349 }
 0x327   : > { %v3353_v11 = vpop.xlane.xlu1 %3352  ;;  %v3534_v51 = vmul.f32 0.020408163, %v3350_v27 }
 0x328   : > { %v3535_v49 = vmul.f32 0.020408163, %v3353_v11 }
 0x329   : > { %v4214_v15 = vrot.slane %v3534_v51, %v8305_v9 }
 0x32a   : > { %v4219_v11 = vrot.slane %v3535_v49, %v8324_v54 }
 0x330   : > { %v3308_v40 = vpop.xlane.xlu0 %3307 }
 0x331   : > { %v3520_v16 = vmul.f32 0.020408163, %v3308_v40  ;;  %v4289_v40 = vsel %vm3709_vm10, %v4288_v44, %v4284_v43  ;;  %vm4363_vm10 = vcmask 1045509  }
 0x332   : > { %v3311_v35 = vpop.xlane.xlu1 %3310 }
 0x333   : > { %v3521_v28 = vmul.f32 0.020408163, %v3311_v35  ;;  %v4145_v25 = vrot.slane %v3520_v16, %v8317_v24 }
 0x335   : > { %v4150_v35 = vrot.slane %v3521_v28, %v8348_v33 }
 0x339   : > { %v3398_v19 = vpop.xlane.xlu0 %3397 }
 0x33a   : > { %v3401_v2 = vpop.xlane.xlu1 %3400  ;;  %v3550_v14 = vmul.f32 0.020408163, %v3398_v19 }
 0x33b   : > { %v3551_v47 = vmul.f32 0.020408163, %v3401_v2 }
 0x33c   : > { %v4293_v19 = vrot.slane %v3550_v14, %v8305_v9  ;;  %v4146_v9 = vsel %vm3730_vm13, %v4145_v25, %v4141_v37 }
 0x33d   : > { %v3356_v3 = vpop.xlane.xlu0 %3355  ;;  %v4298_v46 = vrot.slane %v3551_v47, %v8324_v54  ;;  %v4151_v54 = vsel %vm3737_vm14, %v4150_v35, %v4146_v9 }
 0x33e   : > { %v3359_v30 = vpop.xlane.xlu1 %3358  ;;  %v3536_v7 = vmul.f32 0.020408163, %v3356_v3  ;;  %v4215_v3 = vsel %vm3716_vm11, %v4214_v15, %v4210_v45  ;;  %v4294_v5 = vsel %vm3716_vm11, %v4293_v19, %v4289_v40  ;;  %vm9480_vm11 = vmmov %vm9478_vm0 }
 0x33f   : > { %v3537_v55 = vmul.f32 0.020408163, %v3359_v30  ;;  %v4220_v51 = vsel %vm3723_vm12, %v4219_v11, %v4215_v3  ;;  %v4299_v0 = vsel %vm3723_vm12, %v4298_v46, %v4294_v5  ;;  %vm4365_vm12 = vcmask 1046534  }
 0x340   : > { %v4224_v30 = vrot.slane %v3536_v7, %v8317_v24 }
 0x341   : > { %v3314_v1 = vpop.xlane.xlu0 %3313 }
 0x342   : > { %v3317_v61 = vpop.xlane.xlu1 %3316  ;;  %v3522_v48 = vmul.f32 0.020408163, %v3314_v1 }
 0x343   : > { %v3523_v27 = vmul.f32 0.020408163, %v3317_v61  ;;  %v4229_v61 = vrot.slane %v3537_v55, %v8348_v33 }
 0x344   : > { %v4155_v1 = vrot.slane %v3522_v48, %v8329_v62 }
 0x345   : > { %v3404_v22 = vpop.xlane.xlu0 %3403  ;;  %v4160_v18 = vrot.slane %v3523_v27, %v8370_v59 }
 0x346   : > { %v3552_v63 = vmul.f32 0.020408163, %v3404_v22 }
 0x347   : > { %v3407_v31 = vpop.xlane.xlu1 %3406 }
 0x348   : > { %v3553_v22 = vmul.f32 0.020408163, %v3407_v31  ;;  %v4225_v31 = vsel %vm3730_vm13, %v4224_v30, %v4220_v51 }
 0x349   : > { %v4230_v28 = vsel %vm3737_vm14, %v4229_v61, %v4225_v31 }
 0x351   : > { %v3362_v29 = vpop.xlane.xlu0 %3361 }
 0x352   : > { %v3538_v2 = vmul.f32 0.020408163, %v3362_v29  ;;  %v4303_v29 = vrot.slane %v3552_v63, %v8317_v24 }
 0x354   : > { %v4234_v49 = vrot.slane %v3538_v2, %v8329_v62  ;;  %v4304_v47 = vsel %vm3730_vm13, %v4303_v29, %v4299_v0  ;;  %vm9481_vm13 = vmmov %vm9478_vm0 }
 0x355   : > { %v3365_v38 = vpop.xlane.xlu1 %3364 }
 0x356   : > { %v3539_v10 = vmul.f32 0.020408163, %v3365_v38  ;;  %v4156_v38 = vsel %vm3744_vm15, %v4155_v1, %v4151_v54  ;;  %v4235_v37 = vsel %vm3744_vm15, %v4234_v49, %v4230_v28 }
 0x357   : > { %v3320_v36 = vpop.xlane.xlu0 %3319  ;;  %v4161_v24 = vsel %vm9479_vm8, %v4160_v18, %v4156_v38 }
 0x358   : > { %v3524_v45 = vmul.f32 0.020408163, %v3320_v36  ;;  %v4308_v36 = vrot.slane %v3553_v22, %v8348_v33  ;;  %v4239_v14 = vrot.slane %v3539_v10, %v8370_v59 }
 0x359   : > { %v3323_v53 = vpop.xlane.xlu1 %3322 }
 0x35a   : > { %v3525_v16 = vmul.f32 0.020408163, %v3323_v53  ;;  %v4165_v53 = vrot.slane %v3524_v45, %v8358_v21 }
 0x35b   : > { %v8794_v12 = vpop.xlane.xlu0 %3409 }
 0x35c   : > { %v3554_v33 = vmul.f32 0.020408163, %v8794_v12  ;;  %v4166_v2 = vsel %vm3758_vm9, %v4165_v53, %v4161_v24 }
 0x35d   : > { %v8796_v39 = vpop.xlane.xlu1 %3412 }
 0x35e   : > { %v3555_v11 = vmul.f32 0.020408163, %v8796_v39  ;;  %v4313_v30 = vrot.slane %v3554_v33, %v8329_v62 }
 0x35f   : > { %v3368_v58 = vpop.xlane.xlu0 %3367 }
 0x360   : > { %v3540_v44 = vmul.f32 0.020408163, %v3368_v58  ;;  %v4170_v58 = vrot.slane %v3525_v16, %v8380_v42 }
 0x361   : > { %v8798_v13 = vpop.xlane.xlu1 %3370 }
 0x362   : > { %v3541_v7 = vmul.f32 0.020408163, %v8798_v13  ;;  %v4244_v25 = vrot.slane %v3540_v44, %v8358_v21  ;;  %v4309_v13 = vsel %vm3737_vm14, %v4308_v36, %v4304_v47  ;;  %v4171_v39 = vsel %vm3765_vm1, %v4170_v58, %v4166_v2 }
 0x363   : > { %v8800_v32 = vpop.xlane.xlu0 %3325  ;;  %v4314_v53 = vsel %vm3744_vm15, %v4313_v30, %v4309_v13  ;;  %vm4367_vm14 = vcmask 1047559  }
 0x364   : > { %v3526_v48 = vmul.f32 0.020408163, %v8800_v32  ;;  %v4240_v32 = vsel %vm9480_vm11, %v4239_v14, %v4235_v37 }
 0x365   : > { %v4245_v1 = vsel %vm3758_vm9, %v4244_v25, %v4240_v32 }
 0x367   : > { %v8802_v20 = vpop.xlane.xlu1 %3328 }
 0x368   : > { %v3527_v55 = vmul.f32 0.020408163, %v8802_v20  ;;  %v4249_v20 = vrot.slane %v3541_v7, %v8380_v42 }
 0x369   : > { %v8804_v34 = vpop.xlane.xlu0 %3415 }
 0x36a   : > { %v3556_v18 = vmul.f32 0.020408163, %v8804_v34  ;;  %v4250_v9 = vsel %vm3765_vm1, %v4249_v20, %v4245_v1 }
 0x36c   : > { %v4323_v38 = vrot.slane %v3556_v18, %v8358_v21 }
 0x371   : > { %v8806_v52 = vpop.xlane.xlu1 %3418 }
 0x372   : > { %v3557_v22 = vmul.f32 0.020408163, %v8806_v52 }
 0x373   : > { %v3374_v8 = vpop.xlane.xlu0 %3373 }
 0x374   : > { %v3542_v27 = vmul.f32 0.020408163, %v3374_v8  ;;  %v4175_v8 = vrot.slane %v3526_v48, %v8376_v17  ;;  %v4328_v44 = vrot.slane %v3557_v22, %v8380_v42 }
 0x375   : > { %v3377_v50 = vpop.xlane.xlu1 %3376 }
 0x376   : > { %v3543_v40 = vmul.f32 0.020408163, %v3377_v50  ;;  %v4254_v3 = vrot.slane %v3542_v27, %v8376_v17  ;;  %v4318_v50 = vrot.slane %v3555_v11, %v8370_v59  ;;  %v4176_v29 = vsel %vm3772_vm2, %v4175_v8, %v4171_v39 }
 0x377   : > { %v3332_v23 = vpop.xlane.xlu0 %3331 }
 0x378   : > { %v3528_v63 = vmul.f32 0.020408163, %v3332_v23  ;;  %v4180_v23 = vrot.slane %v3527_v55, %v8392_v57  ;;  %v4259_v10 = vrot.slane %v3543_v40, %v8392_v57  ;;  %v4255_v54 = vsel %vm3772_vm2, %v4254_v3, %v4250_v9 }
 0x379   : > { %v4319_v48 = vsel %vm9481_vm13, %v4318_v50, %v4314_v53 }
 0x37a   : > { %v4185_v61 = vrot.slane %v3528_v63, %v8385_v56  ;;  %v4181_v45 = vsel %vm3779_vm3, %v4180_v23, %v4176_v29  ;;  %v4260_v28 = vsel %vm3779_vm3, %v4259_v10, %v4255_v54  ;;  %v4324_v55 = vsel %vm3758_vm9, %v4323_v38, %v4319_v48 }
 0x37b   : > { %v3335_v41 = vpop.xlane.xlu1 %3334  ;;  %v4329_v33 = vsel %vm3765_vm1, %v4328_v44, %v4324_v55 }
 0x37c   : > { %v3422_v26 = vpop.xlane.xlu0 %3421  ;;  %v3529_v35 = vmul.f32 0.020408163, %v3335_v41  ;;  %v4186_v49 = vsel %vm3786_vm4, %v4185_v61, %v4181_v45 }
 0x37d   : > { %v3558_v5 = vmul.f32 0.020408163, %v3422_v26 }
 0x37e   : > { %v4190_v41 = vrot.slane %v3529_v35, %v8410_v6 }
 0x37f   : > { %v3425_v15 = vpop.xlane.xlu1 %3424  ;;  %v4333_v7 = vrot.slane %v3558_v5, %v8376_v17 }
 0x380   : > { %v3559_v16 = vmul.f32 0.020408163, %v3425_v15  ;;  %v4191_v24 = vsel %vm3793_vm5, %v4190_v41, %v4186_v49 }
 0x381   : > { %v3380_v43 = vpop.xlane.xlu0 %3379 }
 0x382   : > { %v3544_v12 = vmul.f32 0.020408163, %v3380_v43  ;;  %v4338_v37 = vrot.slane %v3559_v16, %v8392_v57 }
 0x383   : > { %v3383_v19 = vpop.xlane.xlu1 %3382 }
 0x384   : > { %v3545_v46 = vmul.f32 0.020408163, %v3383_v19  ;;  %v4264_v62 = vrot.slane %v3544_v12, %v8385_v56 }
 0x386   : > { %v4269_v34 = vrot.slane %v3545_v46, %v8410_v6  ;;  %v4265_v26 = vsel %vm3786_vm4, %v4264_v62, %v4260_v28 }
 0x388   : > { %v3338_v51 = vpop.xlane.xlu0 %3337  ;;  %v4270_v21 = vsel %vm3793_vm5, %v4269_v34, %v4265_v26 }
 0x389   : > { %v3530_v59 = vmul.f32 0.020408163, %v3338_v51  ;;  %v3386_v52 = vpop.xlane.xlu1 %3385 }
 0x38a   : > { %v3546_v31 = vmul.f32 0.020408163, %v3386_v52 }
 0x38b   : > { %v4195_v0 = vrot.slane %v3530_v59, %v8407_v4 }
 0x38c   : > { %v3428_v36 = vpop.xlane.xlu0 %3427  ;;  %v4274_v47 = vrot.slane %v3546_v31, %v8407_v4 }
 0x38d   : > { %v4196_v14 = vsel %vm3800_vm6, %v4195_v0, %v4191_v24  ;;  %v3560_v15 = vmul.f32 0.020408163, %v3428_v36 }
 0x38e   : > { %v4364_v42 = vsel %vm4363_vm10, %v4196_v14, %v8781_v60  ;;  %v4275_v58 = vsel %vm3800_vm6, %v4274_v47, %v4270_v21  ;;  %v4334_v60 = vsel %vm3772_vm2, %v4333_v7, %v4329_v33 }
 0x38f   : > { %v4366_v27 = vsel %vm4365_vm12, %v4275_v58, %v4364_v42  ;;  %v4343_v43 = vrot.slane %v3560_v15, %v8385_v56  ;;  %v4339_v57 = vsel %vm3779_vm3, %v4338_v37, %v4334_v60 }
 0x390   : > { %v3431_v17 = vpop.xlane.xlu0 %3430 }
 0x391   : > { %v3561_v11 = vmul.f32 0.020408163, %v3431_v17  ;;  %v3434_v25 = vpop.xlane.xlu1 %3433  ;;  %v4344_v32 = vsel %vm3786_vm4, %v4343_v43, %v4339_v57 }
 0x392   : > { %v3562_v63 = vmul.f32 0.020408163, %v3434_v25  ;;  %2018 = sbr.rel (!%p2016_p2) target bundleno = 436 (0x1b4), region = 89 }
 0x393   : > { %v4348_v13 = vrot.slane %v3561_v11, %v8410_v6 }
 0x394   : > { %v4353_v40 = vrot.slane %v3562_v63, %v8407_v4 }
 0x395   : > { %v4349_v56 = vsel %vm3793_vm5, %v4348_v13, %v4344_v32 }
 0x396   : > { %v4354_v35 = vsel %vm3800_vm6, %v4353_v40, %v4349_v56 }
 0x397   : > { %v4368_v19 = vsel %vm4367_vm14, %v4354_v35, %v4366_v27 }
 0x398   : > { %4374 = vst [vmem:[%s4373_s22] sm:$0xff] %v4368_v19 }
 0x399 PF:  { %v4423_v6 = vstv %s9465_s3  ;;  %v4622_v4 = vld [vmem:[%s9463_s1] sm:$0xff] }
 0x39a   :  { %7219 = vrcp.f32 %v4423_v6  ;;  %v4630_v2 = vld [vmem:[%s9463_s1 + $0x40] sm:$0xff] }
 0x39b   :  { %v5869_v20 = vcombine.high %v4622_v4, %v4630_v2  ;;  %v4626_v8 = vld [vmem:[%s9463_s1 + $0x20] sm:$0xff]  ;;  %v5868_v39 = vcombine.low %v4622_v4, %v4630_v2 }
 0x39c   :  { %v4634_v12 = vld [vmem:[%s9463_s1 + $0x60] sm:$0xff] }
 0x39d   :  { %v4638_v23 = vld [vmem:[%s9463_s1 + $0x80] sm:$0xff]  ;;  %v5877_v3 = vcombine.high %v4626_v8, %v4634_v12  ;;  %v5876_v46 = vcombine.low %v4626_v8, %v4634_v12  ;;  %5446 = vmatprep.subr.bf16.mxu1 %v5869_v20 }
 0x39e   :  { %v4646_v30 = vld [vmem:[%s9463_s1 + $0xc0] sm:$0xff]  ;;  %5447 = vmatpush1.bf16.xpose.msra.mxu1 %v5868_v39 }
 0x39f   :  { %v4642_v50 = vld [vmem:[%s9463_s1 + $0xa0] sm:$0xff]  ;;  %v5885_v61 = vcombine.high %v4638_v23, %v4646_v30  ;;  %5606 = vmatprep.subr.bf16.mxu0 %v5877_v3  ;;  %v5884_v29 = vcombine.low %v4638_v23, %v4646_v30  ;;  %v4376_v27 = vld [vmem:[#allocation2 + $0x8] sm:$0xff]  ;;  %v4377_v43 = vld [vmem:[#allocation2 + $0x10] sm:$0xff] }
 0x3a0   :  { %v4650_v1 = vld [vmem:[%s9463_s1 + $0xe0] sm:$0xff]  ;;  %5607 = vmatpush1.bf16.xpose.msra.mxu0 %v5876_v46  ;;  %v4378_v17 = vld [vmem:[#allocation2 + $0x18] sm:$0xff]  ;;  %v4380_v11 = vld [vmem:[#allocation2 + $0x28] sm:$0xff] }
 0x3a1   :  { %v5893_v18 = vcombine.high %v4642_v50, %v4650_v1  ;;  %5448 = vmatprep.subr.bf16.mxu1 %v5885_v61  ;;  %v4654_v10 = vld [vmem:[%s9463_s1 + $0x100] sm:$0xff]  ;;  %v5892_v62 = vcombine.low %v4642_v50, %v4650_v1  ;;  %v4381_v60 = vld [vmem:[#allocation2 + $0x30] sm:$0xff]  ;;  %v4382_v57 = vld [vmem:[#allocation2 + $0x38] sm:$0xff] }
 0x3a2   :  { %v4662_v41 = vld [vmem:[%s9463_s1 + $0x140] sm:$0xff]  ;;  %v4384_v32 = vld [vmem:[#allocation2 + $0x48] sm:$0xff]  ;;  %v4385_v40 = vld [vmem:[#allocation2 + $0x50] sm:$0xff] }
 0x3a3   :  { %5608 = vmatprep.subr.bf16.mxu0 %v5893_v18  ;;  %v4658_v51 = vld [vmem:[%s9463_s1 + $0x120] sm:$0xff]  ;;  %v5901_v59 = vcombine.high %v4654_v10, %v4662_v41  ;;  %v5900_v49 = vcombine.low %v4654_v10, %v4662_v41  ;;  %v4386_v56 = vld [vmem:[#allocation2 + $0x58] sm:$0xff]  ;;  %v4388_v4 = vld [vmem:[#allocation2 + $0x68] sm:$0xff] }
 0x3a4   :  { %v7220_v22 = vpop.eup %7219  ;;  %v4666_v9 = vld [vmem:[%s9463_s1 + $0x160] sm:$0xff]  ;;  %v4389_v20 = vld [vmem:[#allocation2 + $0x70] sm:$0xff]  ;;  %v4390_v12 = vld [vmem:[#allocation2 + $0x78] sm:$0xff] }
 0x3a5   :  { %6686 = vpush %v7220_v22  ;;  %v5909_v45 = vcombine.high %v4658_v51, %v4666_v9  ;;  %v4670_v54 = vld [vmem:[%s9463_s1 + $0x180] sm:$0xff]  ;;  %v5908_v16 = vcombine.low %v4658_v51, %v4666_v9 }
 0x3a6   :  { %5449 = vmatpush1.bf16.xpose.msra.mxu1 %v5884_v29  ;;  %v4678_v5 = vld [vmem:[%s9463_s1 + $0x1c0] sm:$0xff] }
 0x3a7   :  { %5450 = vmatprep.subr.bf16.mxu1 %v5901_v59  ;;  %v4674_v34 = vld [vmem:[%s9463_s1 + $0x1a0] sm:$0xff]  ;;  %v5917_v0 = vcombine.high %v4670_v54, %v4678_v5  ;;  %v5916_v36 = vcombine.low %v4670_v54, %v4678_v5 }
 0x3a8   :  { %5609 = vmatpush1.bf16.xpose.msra.mxu0 %v5892_v62  ;;  %v4682_v52 = vld [vmem:[%s9463_s1 + $0x1e0] sm:$0xff] }
 0x3a9   :  { %5610 = vmatprep.subr.bf16.mxu0 %v5909_v45  ;;  %v5925_v31 = vcombine.high %v4674_v34, %v4682_v52  ;;  %v4686_v38 = vld [vmem:[%s9463_s1 + $0x200] sm:$0xff]  ;;  %v5924_v26 = vcombine.low %v4674_v34, %v4682_v52 }
 0x3aa   :  { %v4694_v44 = vld [vmem:[%s9463_s1 + $0x240] sm:$0xff] }
 0x3ab   :  { %v4690_v28 = vld [vmem:[%s9463_s1 + $0x220] sm:$0xff]  ;;  %v5933_v14 = vcombine.high %v4686_v38, %v4694_v44  ;;  %v5932_v42 = vcombine.low %v4686_v38, %v4694_v44 }
 0x3ac   :  { %v4698_v24 = vld [vmem:[%s9463_s1 + $0x260] sm:$0xff] }
 0x3ad   :  { %v5941_v47 = vcombine.high %v4690_v28, %v4698_v24  ;;  %v4702_v15 = vld [vmem:[%s9463_s1 + $0x280] sm:$0xff]  ;;  %v5940_v48 = vcombine.low %v4690_v28, %v4698_v24 }
 0x3ae   :  { %5451 = vmatpush1.bf16.xpose.msra.mxu1 %v5900_v49  ;;  %v4710_v53 = vld [vmem:[%s9463_s1 + $0x2c0] sm:$0xff] }
 0x3af   :  { %5452 = vmatprep.subr.bf16.mxu1 %v5917_v0  ;;  %v4706_v7 = vld [vmem:[%s9463_s1 + $0x2a0] sm:$0xff]  ;;  %v5949_v37 = vcombine.high %v4702_v15, %v4710_v53  ;;  %v5948_v25 = vcombine.low %v4702_v15, %v4710_v53 }
 0x3b0   :  { %5611 = vmatpush1.bf16.xpose.msra.mxu0 %v5908_v16  ;;  %v4714_v21 = vld [vmem:[%s9463_s1 + $0x2e0] sm:$0xff] }
 0x3b1   :  { %5612 = vmatprep.subr.bf16.mxu0 %v5925_v31  ;;  %v5957_v58 = vcombine.high %v4706_v7, %v4714_v21  ;;  %v4375_v55 = vld [vmem:[#allocation2] sm:$0xff]  ;;  %v5956_v63 = vcombine.low %v4706_v7, %v4714_v21 }
 0x3b2   :  { %7221 = vlog2.f32 %v4375_v55  ;;  %v4379_v33 = vld [vmem:[#allocation2 + $0x20] sm:$0xff] }
 0x3b3   :  { %7223 = vlog2.f32 %v4376_v27  ;;  %v4383_v13 = vld [vmem:[#allocation2 + $0x40] sm:$0xff] }
 0x3b4   :  { %7225 = vlog2.f32 %v4377_v43  ;;  %v4387_v19 = vld [vmem:[#allocation2 + $0x60] sm:$0xff] }
 0x3b5   :  { %7227 = vlog2.f32 %v4378_v17 }
 0x3b6   :  { %5453 = vmatpush1.bf16.xpose.msra.mxu1 %v5916_v36  ;;  %7229 = vlog2.f32 %v4379_v33 }
 0x3b7   :  { %5454 = vmatprep.subr.bf16.mxu1 %v5933_v14  ;;  %7231 = vlog2.f32 %v4380_v11 }
 0x3b8   :  { %5613 = vmatpush1.bf16.xpose.msra.mxu0 %v5924_v26  ;;  %7233 = vlog2.f32 %v4381_v60 }
 0x3b9   :  { %5614 = vmatprep.subr.bf16.mxu0 %v5941_v47  ;;  %7235 = vlog2.f32 %v4382_v57 }
 0x3ba   :  { %7237 = vlog2.f32 %v4383_v13 }
 0x3bb   :  { %7239 = vlog2.f32 %v4384_v32 }
 0x3bc   :  { %v7222_v35 = vpop.eup %7221  ;;  %7241 = vlog2.f32 %v4385_v40 }
 0x3bd   :  { %v7224_v6 = vpop.eup %7223  ;;  %7243 = vlog2.f32 %v4386_v56  ;;  %v4392_v46 = vmul.f32 0.6931472, %v7222_v35 }
 0x3be   :  { %5455 = vmatpush1.bf16.xpose.msra.mxu1 %v5932_v42  ;;  %v7226_v2 = vpop.eup %7225  ;;  %7245 = vlog2.f32 %v4387_v19  ;;  %v4394_v30 = vmul.f32 0.6931472, %v7224_v6 }
 0x3bf   :  { %5456 = vmatprep.subr.bf16.mxu1 %v5949_v37  ;;  %v7228_v8 = vpop.eup %7227  ;;  %7247 = vlog2.f32 %v4388_v4  ;;  %v4396_v50 = vmul.f32 0.6931472, %v7226_v2 }
 0x3c0   :  { %5615 = vmatpush1.bf16.xpose.msra.mxu0 %v5940_v48  ;;  %v7230_v39 = vpop.eup %7229  ;;  %7249 = vlog2.f32 %v4389_v20  ;;  %v4398_v61 = vmul.f32 0.6931472, %v7228_v8 }
 0x3c1   :  { %5616 = vmatprep.subr.bf16.mxu0 %v5957_v58  ;;  %v7232_v23 = vpop.eup %7231  ;;  %7251 = vlog2.f32 %v4390_v12  ;;  %v4400_v22 = vmul.f32 0.6931472, %v7230_v39 }
 0x3c2   :  { %v7234_v3 = vpop.eup %7233  ;;  %v4402_v51 = vmul.f32 0.6931472, %v7232_v23 }
 0x3c3   :  { %v7236_v1 = vpop.eup %7235  ;;  %v4404_v29 = vmul.f32 0.6931472, %v7234_v3 }
 0x3c4   :  { %v7238_v18 = vpop.eup %7237  ;;  %v4406_v54 = vmul.f32 0.6931472, %v7236_v1 }
 0x3c5   :  { %v7240_v10 = vpop.eup %7239  ;;  %v4408_v52 = vmul.f32 0.6931472, %v7238_v18 }
 0x3c6   :  { %5457 = vmatpush1.bf16.xpose.msra.mxu1 %v5948_v25  ;;  %v7242_v9 = vpop.eup %7241  ;;  %v4410_v0 = vmul.f32 0.6931472, %v7240_v10 }
 0x3c7   :  { %v7244_v34 = vpop.eup %7243  ;;  %v4412_v31 = vmul.f32 0.6931472, %v7242_v9 }
 0x3c8   :  { %5617 = vmatpush1.bf16.xpose.msra.mxu0 %v5956_v63  ;;  %v7246_v16 = vpop.eup %7245  ;;  %v4414_v47 = vmul.f32 0.6931472, %v7244_v34 }
 0x3c9   :  { %v7248_v44 = vpop.eup %7247  ;;  %v4416_v21 = vmul.f32 0.6931472, %v7246_v16 }
 0x3ca   :  { %v7250_v14 = vpop.eup %7249  ;;  %v4418_v37 = vmul.f32 0.6931472, %v7248_v44 }
 0x3cb   :  { %v7252_v7 = vpop.eup %7251  ;;  %v4420_v27 = vmul.f32 0.6931472, %v7250_v14 }
 0x3cc   :  { %v4422_v33 = vmul.f32 0.6931472, %v7252_v7 }
 0x3d6   :  { %s6687_s21 = spop %6686 }
 0x3d7   :  { %v4426_v41 = vstv %s6687_s21 }
 0x3d8   :  { %v4427_v62 = vmul.f32 %v4426_v41, %v4392_v46  ;;  %v4428_v59 = vmul.f32 %v4426_v41, %v4394_v30  ;;  %v4429_v45 = vmul.f32 %v4426_v41, %v4396_v50  ;;  %v4430_v5 = vmul.f32 %v4426_v41, %v4398_v61 }
 0x3d9   :  { %v4431_v49 = vmul.f32 %v4426_v41, %v4400_v22  ;;  %v4432_v38 = vmul.f32 %v4426_v41, %v4402_v51  ;;  %v4433_v28 = vmul.f32 %v4426_v41, %v4404_v29  ;;  %v4434_v15 = vmul.f32 %v4426_v41, %v4406_v54 }
 0x3da   :  { %v4443_v24 = vmul.f32 1.442695, %v4427_v62  ;;  %v4445_v36 = vmul.f32 1.442695, %v4428_v59  ;;  %v4447_v26 = vmul.f32 1.442695, %v4429_v45  ;;  %v4435_v42 = vmul.f32 %v4426_v41, %v4408_v52 }
 0x3db   :  { %v4449_v53 = vmul.f32 1.442695, %v4430_v5  ;;  %v4451_v48 = vmul.f32 1.442695, %v4431_v49  ;;  %v4436_v58 = vmul.f32 %v4426_v41, %v4410_v0  ;;  %v4453_v55 = vmul.f32 1.442695, %v4432_v38 }
 0x3dc   :  { %7253 = vpow2.f32 %v4443_v24  ;;  %v4437_v43 = vmul.f32 %v4426_v41, %v4412_v31  ;;  %v4455_v17 = vmul.f32 1.442695, %v4433_v28  ;;  %v4438_v11 = vmul.f32 %v4426_v41, %v4414_v47 }
 0x3dd   :  { %7255 = vpow2.f32 %v4445_v36  ;;  %v4457_v25 = vmul.f32 1.442695, %v4434_v15  ;;  %v4439_v60 = vmul.f32 %v4426_v41, %v4416_v21  ;;  %v4459_v63 = vmul.f32 1.442695, %v4435_v42 }
 0x3de   :  { %7257 = vpow2.f32 %v4447_v26  ;;  %v4440_v57 = vmul.f32 %v4426_v41, %v4418_v37  ;;  %v4461_v13 = vmul.f32 1.442695, %v4436_v58  ;;  %v4441_v32 = vmul.f32 %v4426_v41, %v4420_v27 }
 0x3df   :  { %7259 = vpow2.f32 %v4449_v53  ;;  %v4463_v40 = vmul.f32 1.442695, %v4437_v43  ;;  %v4442_v56 = vmul.f32 %v4426_v41, %v4422_v33  ;;  %v4465_v35 = vmul.f32 1.442695, %v4438_v11  ;;  %v4718_v43 = vld [vmem:[%s9463_s1 + $0x300] sm:$0xff] }
 0x3e0   :  { %7261 = vpow2.f32 %v4451_v48  ;;  %v4467_v19 = vmul.f32 1.442695, %v4439_v60  ;;  %v4469_v6 = vmul.f32 1.442695, %v4440_v57  ;;  %v4471_v2 = vmul.f32 1.442695, %v4441_v32 }
 0x3e1   :  { %7263 = vpow2.f32 %v4453_v55  ;;  %v4473_v8 = vmul.f32 1.442695, %v4442_v56  ;;  %v4722_v33 = vld [vmem:[%s9463_s1 + $0x320] sm:$0xff] }
 0x3e2   :  { %7265 = vpow2.f32 %v4455_v17  ;;  %v4726_v17 = vld [vmem:[%s9463_s1 + $0x340] sm:$0xff] }
 0x3e3   :  { %7267 = vpow2.f32 %v4457_v25  ;;  %v5965_v11 = vcombine.high %v4718_v43, %v4726_v17  ;;  %v4730_v25 = vld [vmem:[%s9463_s1 + $0x360] sm:$0xff]  ;;  %v5964_v60 = vcombine.low %v4718_v43, %v4726_v17  ;;  %v4679_v43 = vld [vmem:[%s9463_s1 + $0x1c8] sm:$0xff] }
 0x3e4   :  { %7269 = vpow2.f32 %v4459_v63  ;;  %v4734_v63 = vld [vmem:[%s9463_s1 + $0x380] sm:$0xff]  ;;  %v5972_v32 = vcombine.low %v4722_v33, %v4730_v25  ;;  %v4675_v17 = vld [vmem:[%s9463_s1 + $0x1a8] sm:$0xff] }
 0x3e5   :  { %7271 = vpow2.f32 %v4461_v13  ;;  %v4742_v57 = vld [vmem:[%s9463_s1 + $0x3c0] sm:$0xff]  ;;  %v5973_v13 = vcombine.high %v4722_v33, %v4730_v25  ;;  %5458 = vmatprep.subr.bf16.mxu1 %v5965_v11  ;;  %v4683_v33 = vld [vmem:[%s9463_s1 + $0x1e8] sm:$0xff] }
 0x3e6   :  { %v8979_v4 = vpop.eup %7253  ;;  %7273 = vpow2.f32 %v4463_v40  ;;  %v5981_v40 = vcombine.high %v4734_v63, %v4742_v57  ;;  %v4738_v56 = vld [vmem:[%s9463_s1 + $0x3a0] sm:$0xff]  ;;  %5459 = vmatpush1.bf16.xpose.msra.mxu1 %v5964_v60 }
 0x3e7   :  { %v8981_v20 = vpop.eup %7255  ;;  %7275 = vpow2.f32 %v4465_v35  ;;  %v4491_v12 = vmul.f32 %v8979_v4, %v8979_v4  ;;  %4475 = vst [vmem:[%s9467_s5] sm:$0xff] %v8979_v4  ;;  %v4746_v35 = vld [vmem:[%s9463_s1 + $0x3e0] sm:$0xff]  ;;  %5618 = vmatprep.subr.bf16.mxu0 %v5973_v13  ;;  %v4695_v13 = vld [vmem:[%s9463_s1 + $0x248] sm:$0xff] }
 0x3e8   :  { %v8989_v39 = vpop.eup %7257  ;;  %7277 = vpow2.f32 %v4467_v19  ;;  %4476 = vst [vmem:[%s9467_s5 + $0x8] sm:$0xff] %v8981_v20  ;;  %v4492_v23 = vmul.f32 %v8981_v20, %v8981_v20  ;;  %v5989_v19 = vcombine.high %v4738_v56, %v4746_v35  ;;  %5619 = vmatpush1.bf16.xpose.msra.mxu0 %v5972_v32  ;;  %5460 = vmatprep.subr.bf16.mxu1 %v5981_v40  ;;  %v4691_v32 = vld [vmem:[%s9463_s1 + $0x228] sm:$0xff] }
 0x3e9   :  { %v8997_v3 = vpop.eup %7259  ;;  %7279 = vpow2.f32 %v4469_v6  ;;  %4477 = vst [vmem:[%s9467_s5 + $0x10] sm:$0xff] %v8989_v39  ;;  %v4493_v30 = vmul.f32 %v8989_v39, %v8989_v39  ;;  %v5980_v6 = vcombine.low %v4734_v63, %v4742_v57  ;;  %v5927_v63 = vcombine.high %v4675_v17, %v4683_v33  ;;  %v4687_v57 = vld [vmem:[%s9463_s1 + $0x208] sm:$0xff] }
 0x3ea   :  { %v9003_v46 = vpop.eup %7261  ;;  %7281 = vpow2.f32 %v4471_v2  ;;  %4478 = vst [vmem:[%s9467_s5 + $0x18] sm:$0xff] %v8997_v3  ;;  %v4507_v50 = vadd.f32 %v4492_v23, %v4491_v12  ;;  %v4494_v18 = vmul.f32 %v8997_v3, %v8997_v3  ;;  %5620 = vmatprep.subr.bf16.mxu0 %v5989_v19  ;;  %v5988_v2 = vcombine.low %v4738_v56, %v4746_v35  ;;  %v4631_v12 = vld [vmem:[%s9463_s1 + $0x48] sm:$0xff] }
 0x3eb   :  { %v9011_v1 = vpop.eup %7263  ;;  %7283 = vpow2.f32 %v4473_v8  ;;  %4479 = vst [vmem:[%s9467_s5 + $0x20] sm:$0xff] %v9003_v46  ;;  %v4495_v51 = vmul.f32 %v9003_v46, %v9003_v46  ;;  %v4623_v8 = vld [vmem:[%s9463_s1 + $0x8] sm:$0xff]  ;;  %v5926_v35 = vcombine.low %v4675_v17, %v4683_v33  ;;  %v5935_v19 = vcombine.high %v4687_v57, %v4695_v13 }
 0x3ec   :  { %v9017_v61 = vpop.eup %7265  ;;  %4480 = vst [vmem:[%s9467_s5 + $0x28] sm:$0xff] %v9011_v1  ;;  %v4508_v22 = vadd.f32 %v4507_v50, %v4493_v30  ;;  %v4496_v59 = vmul.f32 %v9011_v1, %v9011_v1  ;;  %v4627_v23 = vld [vmem:[%s9463_s1 + $0x28] sm:$0xff]  ;;  %v5870_v30 = vcombine.low %v4623_v8, %v4631_v12  ;;  %v5871_v50 = vcombine.high %v4623_v8, %v4631_v12 }
 0x3ed   :  { %v9025_v10 = vpop.eup %7267  ;;  %4481 = vst [vmem:[%s9467_s5 + $0x30] sm:$0xff] %v9017_v61  ;;  %v4497_v34 = vmul.f32 %v9017_v61, %v9017_v61  ;;  %v4699_v40 = vld [vmem:[%s9463_s1 + $0x268] sm:$0xff] }
 0x3ee   :  { %v9031_v41 = vpop.eup %7269  ;;  %4482 = vst [vmem:[%s9467_s5 + $0x38] sm:$0xff] %v9025_v10  ;;  %v4509_v9 = vadd.f32 %v4508_v22, %v4494_v18  ;;  %v4498_v0 = vmul.f32 %v9025_v10, %v9025_v10  ;;  %5461 = vmatpush1.bf16.xpose.msra.mxu1 %v5980_v6  ;;  %v4635_v18 = vld [vmem:[%s9463_s1 + $0x68] sm:$0xff]  ;;  %v5943_v6 = vcombine.high %v4691_v32, %v4699_v40 }
 0x3ef   :  { %v9039_v29 = vpop.eup %7271  ;;  %4483 = vst [vmem:[%s9467_s5 + $0x40] sm:$0xff] %v9031_v41  ;;  %v4499_v44 = vmul.f32 %v9031_v41, %v9031_v41  ;;  %v5878_v22 = vcombine.low %v4627_v23, %v4635_v18  ;;  %5486 = vmatprep.subr.bf16.mxu1 %v5871_v50  ;;  %v4711_v8 = vld [vmem:[%s9463_s1 + $0x2c8] sm:$0xff]  ;;  %v5942_v50 = vcombine.low %v4691_v32, %v4699_v40  ;;  %v4660_v32 = vld [vmem:[%s9463_s1 + $0x130] sm:$0xff] }
 0x3f0   :  { %v9045_v62 = vpop.eup %7273  ;;  %4484 = vst [vmem:[%s9467_s5 + $0x48] sm:$0xff] %v9039_v29  ;;  %v4510_v45 = vadd.f32 %v4509_v9, %v4495_v51  ;;  %v4500_v24 = vmul.f32 %v9039_v29, %v9039_v29  ;;  %5621 = vmatpush1.bf16.xpose.msra.mxu0 %v5988_v2  ;;  %v5879_v51 = vcombine.high %v4627_v23, %v4635_v18  ;;  %v4703_v2 = vld [vmem:[%s9463_s1 + $0x288] sm:$0xff]  ;;  %v4668_v40 = vld [vmem:[%s9463_s1 + $0x170] sm:$0xff] }
 0x3f1   :  { %v9053_v54 = vpop.eup %7275  ;;  %4485 = vst [vmem:[%s9467_s5 + $0x50] sm:$0xff] %v9045_v62  ;;  %v4501_v26 = vmul.f32 %v9045_v62, %v9045_v62  ;;  %v4707_v12 = vld [vmem:[%s9463_s1 + $0x2a8] sm:$0xff]  ;;  %v5951_v18 = vcombine.high %v4703_v2, %v4711_v8 }
 0x3f2   :  { %v9059_v5 = vpop.eup %7277  ;;  %4486 = vst [vmem:[%s9467_s5 + $0x58] sm:$0xff] %v9053_v54  ;;  %v4511_v52 = vadd.f32 %v4510_v45, %v4496_v59  ;;  %v4502_v47 = vmul.f32 %v9053_v54, %v9053_v54  ;;  %5646 = vmatprep.subr.bf16.mxu0 %v5879_v51  ;;  %v4715_v23 = vld [vmem:[%s9463_s1 + $0x2e8] sm:$0xff] }
 0x3f3   :  { %v9067_v49 = vpop.eup %7279  ;;  %4487 = vst [vmem:[%s9467_s5 + $0x60] sm:$0xff] %v9059_v5  ;;  %v4503_v53 = vmul.f32 %v9059_v5, %v9059_v5  ;;  %v4719_v51 = vld [vmem:[%s9463_s1 + $0x308] sm:$0xff] }
 0x3f4   :  { %v9073_v16 = vpop.eup %7281  ;;  %4488 = vst [vmem:[%s9467_s5 + $0x68] sm:$0xff] %v9067_v49  ;;  %v4512_v31 = vadd.f32 %v4511_v52, %v4497_v34  ;;  %v4504_v21 = vmul.f32 %v9067_v49, %v9067_v49 }
 0x3f5   :  { %v9081_v38 = vpop.eup %7283  ;;  %4489 = vst [vmem:[%s9467_s5 + $0x70] sm:$0xff] %v9073_v16  ;;  %v4505_v48 = vmul.f32 %v9073_v16, %v9073_v16 }
 0x3f6   :  { %4490 = vst [vmem:[%s9467_s5 + $0x78] sm:$0xff] %v9081_v38  ;;  %v4513_v28 = vadd.f32 %v4512_v31, %v4498_v0  ;;  %v4506_v58 = vmul.f32 %v9081_v38, %v9081_v38 }
 0x3f8   :  { %v4514_v36 = vadd.f32 %v4513_v28, %v4499_v44  ;;  %v4639_v44 = vld [vmem:[%s9463_s1 + $0x88] sm:$0xff] }
 0x3fa   :  { %v4515_v14 = vadd.f32 %v4514_v36, %v4500_v24 }
 0x3fc   :  { %v4516_v15 = vadd.f32 %v4515_v14, %v4501_v26 }
 0x3fe   :  { %v4517_v7 = vadd.f32 %v4516_v15, %v4502_v47 }
 0x400   :  { %v4518_v42 = vadd.f32 %v4517_v7, %v4503_v53  ;;  %v4655_v53 = vld [vmem:[%s9463_s1 + $0x108] sm:$0xff] }
 0x401   :  { %v4663_v7 = vld [vmem:[%s9463_s1 + $0x148] sm:$0xff] }
 0x402   :  { %v4519_v37 = vadd.f32 %v4518_v42, %v4504_v21  ;;  %v4659_v21 = vld [vmem:[%s9463_s1 + $0x128] sm:$0xff]  ;;  %v5902_v11 = vcombine.low %v4655_v53, %v4663_v7 }
 0x403   :  { %v4667_v42 = vld [vmem:[%s9463_s1 + $0x168] sm:$0xff] }
 0x404   :  { %v4520_v55 = vadd.f32 %v4519_v37, %v4505_v48  ;;  %v5910_v25 = vcombine.low %v4659_v21, %v4667_v42 }
 0x406   :  { %v4521_v27 = vadd.f32 %v4520_v55, %v4506_v58  ;;  %v5903_v58 = vcombine.high %v4655_v53, %v4663_v7  ;;  %v5911_v55 = vcombine.high %v4659_v21, %v4667_v42 }
 0x408   :  { %4522 = vadd.xlane.f32.xlu0 %v4521_v27  ;;  %v4671_v27 = vld [vmem:[%s9463_s1 + $0x188] sm:$0xff] }
 0x409   :  { %v5919_v60 = vcombine.high %v4671_v27, %v4679_v43  ;;  %v5918_v56 = vcombine.low %v4671_v27, %v4679_v43  ;;  %v4648_v27 = vld [vmem:[%s9463_s1 + $0xd0] sm:$0xff] }
 0x495   :  { %v4523_v9 = vpop.xlane.xlu0 %4522 }
 0x496   :  { %v4524_v59 = vmax.f32 %v4523_v9, 1e-24  ;;  %v4727_v9 = vld [vmem:[%s9463_s1 + $0x348] sm:$0xff] }
 0x498   :  { %7285 = vrsqrt.f32 %v4524_v59  ;;  %v4723_v59 = vld [vmem:[%s9463_s1 + $0x328] sm:$0xff] }
 0x4a2   :  { %v9143_v45 = vpop.eup %7285 }
 0x4a3   :  { %v4527_v34 = vmul.f32 %v9143_v45, %v8981_v20  ;;  %v4535_v52 = vmul.f32 %v9143_v45, %v9039_v29  ;;  %v4526_v0 = vmul.f32 %v9143_v45, %v8979_v4  ;;  %v4534_v31 = vmul.f32 %v9143_v45, %v9031_v41  ;;  %v4647_v20 = vld [vmem:[%s9463_s1 + $0xc8] sm:$0xff] }
 0x4a4   :  { %v4529_v28 = vmul.f32 %v9143_v45, %v8997_v3  ;;  %v4537_v24 = vmul.f32 %v9143_v45, %v9053_v54  ;;  %v4643_v4 = vld [vmem:[%s9463_s1 + $0xa8] sm:$0xff]  ;;  %v5887_v3 = vcombine.high %v4639_v44, %v4647_v20  ;;  %v5886_v48 = vcombine.low %v4639_v44, %v4647_v20 }
 0x4a5   :  { %v4651_v41 = vld [vmem:[%s9463_s1 + $0xe8] sm:$0xff]  ;;  %v6646_v29 = vpack.c.bf16 %v4527_v34, %v4527_v34  ;;  %v6654_v36 = vpack.c.bf16 %v4535_v52, %v4535_v52  ;;  %v6645_v26 = vpack.c.bf16 %v4526_v0, %v4526_v0  ;;  %v6653_v14 = vpack.c.bf16 %v4534_v31, %v4534_v31 }
 0x4a6   :  { %v5895_v54 = vcombine.high %v4643_v4, %v4651_v41  ;;  %v6648_v47 = vpack.c.bf16 %v4529_v28, %v4529_v28  ;;  %v6656_v15 = vpack.c.bf16 %v4537_v24, %v4537_v24  ;;  %v5894_v37 = vcombine.low %v4643_v4, %v4651_v41  ;;  %v4731_v34 = vld [vmem:[%s9463_s1 + $0x368] sm:$0xff] }
 0x4a7   :  { %5478 = vmatprep.mubr.bf16.mxu1 %v6646_v29  ;;  %5638 = vmatprep.mubr.bf16.mxu0 %v6654_v36  ;;  %v5950_v52 = vcombine.low %v4703_v2, %v4711_v8  ;;  %v5958_v0 = vcombine.low %v4707_v12, %v4715_v23  ;;  %v5967_v31 = vcombine.high %v4719_v51, %v4727_v9  ;;  %v4735_v28 = vld [vmem:[%s9463_s1 + $0x388] sm:$0xff]  ;;  %v4672_v8 = vld [vmem:[%s9463_s1 + $0x190] sm:$0xff] }
 0x4a8   :  { %5479 = vmatmul.mubr.bf16.vlgmr.msra.gmra.mrb[0].mxu1 %v6645_v26  ;;  %5639 = vmatmul.mubr.bf16.vlgmr.msra.gmra.mrb[0].mxu0 %v6653_v14  ;;  %v5975_v44 = vcombine.high %v4723_v59, %v4731_v34  ;;  %v4743_v24 = vld [vmem:[%s9463_s1 + $0x3c8] sm:$0xff]  ;;  %v5966_v41 = vcombine.low %v4719_v51, %v4727_v9  ;;  %v5974_v29 = vcombine.low %v4723_v59, %v4731_v34  ;;  %v4624_v14 = vld [vmem:[%s9463_s1 + $0x10] sm:$0xff] }
 0x4a9   :  { %5487 = vmatpush1.bf16.xpose.msra.mxu1 %v5870_v30  ;;  %5647 = vmatpush1.bf16.xpose.msra.mxu0 %v5878_v22  ;;  %v5934_v30 = vcombine.low %v4687_v57, %v4695_v13  ;;  %v5959_v22 = vcombine.high %v4707_v12, %v4715_v23  ;;  %v4739_v20 = vld [vmem:[%s9463_s1 + $0x3a8] sm:$0xff]  ;;  %v5983_v36 = vcombine.high %v4735_v28, %v4743_v24  ;;  %v4656_v57 = vld [vmem:[%s9463_s1 + $0x110] sm:$0xff] }
 0x4aa   :  { %5518 = vmatprep.mubr.bf16.mxu1 %v6648_v47  ;;  %5678 = vmatprep.mubr.bf16.mxu0 %v6656_v15  ;;  %v4747_v4 = vld [vmem:[%s9463_s1 + $0x3e8] sm:$0xff]  ;;  %v4636_v47 = vld [vmem:[%s9463_s1 + $0x70] sm:$0xff]  ;;  %v5982_v15 = vcombine.low %v4735_v28, %v4743_v24  ;;  %v4528_v42 = vmul.f32 %v9143_v45, %v8989_v39  ;;  %v5913_v2 = vcombine.high %v4660_v32, %v4668_v40 }
 0x4ab   :  { %5488 = vmatprep.subr.bf16.mxu1 %v5887_v3  ;;  %5648 = vmatprep.subr.bf16.mxu0 %v5895_v54  ;;  %v5991_v26 = vcombine.high %v4739_v20, %v4747_v4  ;;  %v4632_v3 = vld [vmem:[%s9463_s1 + $0x50] sm:$0xff]  ;;  %v5990_v53 = vcombine.low %v4739_v20, %v4747_v4 }
 0x4ac   :  { %v4628_v54 = vld [vmem:[%s9463_s1 + $0x30] sm:$0xff]  ;;  %v5873_v7 = vcombine.high %v4624_v14, %v4632_v3  ;;  %v6647_v43 = vpack.c.bf16 %v4528_v42, %v4528_v42 }
 0x4ad   :  { %v5881_v21 = vcombine.high %v4628_v54, %v4636_v47  ;;  %v4644_v39 = vld [vmem:[%s9463_s1 + $0xb0] sm:$0xff]  ;;  %v5880_v33 = vcombine.low %v4628_v54, %v4636_v47 }
 0x4ae   :  { %v4664_v13 = vld [vmem:[%s9463_s1 + $0x150] sm:$0xff] }
 0x4af   :  { %v4680_v12 = vld [vmem:[%s9463_s1 + $0x1d0] sm:$0xff] }
 0x4b0   :  { %v4676_v23 = vld [vmem:[%s9463_s1 + $0x1b0] sm:$0xff] }
 0x4b1   :  { %5489 = vmatpush1.bf16.xpose.msra.mxu1 %v5886_v48  ;;  %5649 = vmatpush1.bf16.xpose.msra.mxu0 %v5894_v37  ;;  %v4536_v48 = vmul.f32 %v9143_v45, %v9045_v62  ;;  %v4531_v37 = vmul.f32 %v9143_v45, %v9011_v1  ;;  %v4652_v62 = vld [vmem:[%s9463_s1 + $0xf0] sm:$0xff]  ;;  %v5872_v1 = vcombine.low %v4624_v14, %v4632_v3 }
 0x4b2   :  { %5490 = vmatprep.subr.bf16.mxu1 %v5903_v58  ;;  %5650 = vmatprep.subr.bf16.mxu0 %v5911_v55  ;;  %v4640_v58 = vld [vmem:[%s9463_s1 + $0x90] sm:$0xff]  ;;  %v4539_v55 = vmul.f32 %v9143_v45, %v9067_v49 }
 0x4b3   :  { %v6655_v17 = vpack.c.bf16 %v4536_v48, %v4536_v48  ;;  %v4688_v9 = vld [vmem:[%s9463_s1 + $0x210] sm:$0xff] }
 0x4b4   :  { %v6658_v49 = vpack.c.bf16 %v4539_v55, %v4539_v55  ;;  %v4696_v59 = vld [vmem:[%s9463_s1 + $0x250] sm:$0xff] }
 0x4b5   :  { %v4692_v34 = vld [vmem:[%s9463_s1 + $0x230] sm:$0xff] }
 0x4b6   :  { %v4704_v24 = vld [vmem:[%s9463_s1 + $0x290] sm:$0xff] }
 0x4b7   :  { %v4712_v20 = vld [vmem:[%s9463_s1 + $0x2d0] sm:$0xff] }
 0x4b8   :  { %v4708_v4 = vld [vmem:[%s9463_s1 + $0x2b0] sm:$0xff] }
 0x4b9   :  { %5491 = vmatpush1.bf16.xpose.msra.mxu1 %v5902_v11  ;;  %5651 = vmatpush1.bf16.xpose.msra.mxu0 %v5910_v25  ;;  %v6650_v11 = vpack.c.bf16 %v4531_v37, %v4531_v37  ;;  %v5889_v25 = vcombine.high %v4640_v58, %v4648_v27  ;;  %v4720_v3 = vld [vmem:[%s9463_s1 + $0x310] sm:$0xff] }
 0x4ba   :  { %5492 = vmatprep.subr.bf16.mxu1 %v5919_v60  ;;  %5652 = vmatprep.subr.bf16.mxu0 %v5927_v63  ;;  %v5897_v60 = vcombine.high %v4644_v39, %v4652_v62  ;;  %v5779_v63 = vld [vmem:[%s9466_s4] sm:$0xff]  ;;  %v4728_v54 = vld [vmem:[%s9463_s1 + $0x350] sm:$0xff] }
 0x4bb   :  { %v4724_v47 = vld [vmem:[%s9463_s1 + $0x330] sm:$0xff] }
 0x4bc   :  { %v4736_v48 = vld [vmem:[%s9463_s1 + $0x390] sm:$0xff] }
 0x4bd   :  { %v4744_v37 = vld [vmem:[%s9463_s1 + $0x3d0] sm:$0xff] }
 0x4be   :  { %v4748_v55 = vld [vmem:[%s9463_s1 + $0x3f0] sm:$0xff] }
 0x4c1   :  { %5493 = vmatpush1.bf16.xpose.msra.mxu1 %v5918_v56  ;;  %5653 = vmatpush1.bf16.xpose.msra.mxu0 %v5926_v35  ;;  %v7305_v56 = vmov 0   ;;  %v5888_v35 = vcombine.low %v4640_v58, %v4648_v27  ;;  %v4740_v58 = vld [vmem:[%s9463_s1 + $0x3b0] sm:$0xff]  ;;  %v5968_v27 = vcombine.low %v4720_v3, %v4728_v54 }
 0x4c2   :  { %5494 = vmatprep.subr.bf16.mxu1 %v5935_v19  ;;  %5654 = vmatprep.subr.bf16.mxu0 %v5943_v6  ;;  %v5896_v19 = vcombine.low %v4644_v39, %v4652_v62  ;;  %v5905_v6 = vcombine.high %v4656_v57, %v4664_v13  ;;  %v5985_v62 = vcombine.high %v4736_v48, %v4744_v37 }
 0x4c3   :  { %7218 = vset.pattern.permute.xlu0 %v7305_v56  ;;  %v4649_v56 = vld [vmem:[%s9463_s1 + $0xd8] sm:$0xff] }
 0x4c4   :  { %5781 = vperm.xlu0 %7218, %v5779_v63  }
 0x4c9   :  { %5495 = vmatpush1.bf16.xpose.msra.mxu1 %v5934_v30  ;;  %5655 = vmatpush1.bf16.xpose.msra.mxu0 %v5942_v50  ;;  %v4684_v30 = vld [vmem:[%s9463_s1 + $0x1f0] sm:$0xff]  ;;  %v5904_v50 = vcombine.low %v4656_v57, %v4664_v13  ;;  %v4530_v57 = vmul.f32 %v9143_v45, %v9003_v46  ;;  %v4538_v13 = vmul.f32 %v9143_v45, %v9059_v5  ;;  %v4645_v5 = vld [vmem:[%s9463_s1 + $0xb8] sm:$0xff] }
 0x4ca   :  { %5496 = vmatprep.subr.bf16.mxu1 %v5951_v18  ;;  %5656 = vmatprep.subr.bf16.mxu0 %v5959_v22  ;;  %v5912_v18 = vcombine.low %v4660_v32, %v4668_v40  ;;  %v5921_v22 = vcombine.high %v4672_v8, %v4680_v12  ;;  %v5929_v51 = vcombine.high %v4676_v23, %v4684_v30  ;;  %v4641_v40 = vld [vmem:[%s9463_s1 + $0x98] sm:$0xff] }
 0x4cb   :  { %v4533_v32 = vmul.f32 %v9143_v45, %v9025_v10  ;;  %v4541_v46 = vmul.f32 %v9143_v45, %v9081_v38  ;;  %v4653_v10 = vld [vmem:[%s9463_s1 + $0xf8] sm:$0xff] }
 0x4cc   :  { %v4657_v38 = vld [vmem:[%s9463_s1 + $0x118] sm:$0xff] }
 0x4d1   :  { %5497 = vmatpush1.bf16.xpose.msra.mxu1 %v5950_v52  ;;  %5657 = vmatpush1.bf16.xpose.msra.mxu0 %v5958_v0  ;;  %v4700_v52 = vld [vmem:[%s9463_s1 + $0x270] sm:$0xff]  ;;  %v5920_v0 = vcombine.low %v4672_v8, %v4680_v12  ;;  %v5891_v8 = vcombine.high %v4641_v40, %v4649_v56  ;;  %v6652_v12 = vpack.c.bf16 %v4533_v32, %v4533_v32 }
 0x4d2   :  { %5498 = vmatprep.subr.bf16.mxu1 %v5967_v31  ;;  %5658 = vmatprep.subr.bf16.mxu0 %v5975_v44  ;;  %v5928_v31 = vcombine.low %v4676_v23, %v4684_v30  ;;  %v5937_v44 = vcombine.high %v4688_v9, %v4696_v59  ;;  %v5945_v28 = vcombine.high %v4692_v34, %v4700_v52 }
 0x4d3   :  { %v5899_v23 = vcombine.high %v4645_v5, %v4653_v10  ;;  %v6660_v30 = vpack.c.bf16 %v4541_v46, %v4541_v46  ;;  %v4540_v46 = vmul.f32 %v9143_v45, %v9073_v16 }
 0x4d9   :  { %5499 = vmatpush1.bf16.xpose.msra.mxu1 %v5966_v41  ;;  %5659 = vmatpush1.bf16.xpose.msra.mxu0 %v5974_v29  ;;  %v4716_v41 = vld [vmem:[%s9463_s1 + $0x2f0] sm:$0xff]  ;;  %v5936_v29 = vcombine.low %v4688_v9, %v4696_v59  ;;  %v5898_v9 = vcombine.low %v4645_v5, %v4653_v10  ;;  %v6659_v10 = vpack.c.bf16 %v4540_v46, %v4540_v46 }
 0x4da   :  { %5500 = vmatprep.subr.bf16.mxu1 %v5983_v36  ;;  %5660 = vmatprep.subr.bf16.mxu0 %v5991_v26  ;;  %v5944_v36 = vcombine.low %v4692_v34, %v4700_v52  ;;  %v5953_v26 = vcombine.high %v4704_v24, %v4712_v20  ;;  %v5961_v14 = vcombine.high %v4708_v4, %v4716_v41  ;;  %v4673_v52 = vld [vmem:[%s9463_s1 + $0x198] sm:$0xff] }
 0x4e1   :  { %5501 = vmatpush1.bf16.xpose.msra.mxu1 %v5982_v15  ;;  %5661 = vmatpush1.bf16.xpose.msra.mxu0 %v5990_v53  ;;  %v4732_v15 = vld [vmem:[%s9463_s1 + $0x370] sm:$0xff]  ;;  %v5952_v53 = vcombine.low %v4704_v24, %v4712_v20 }
 0x4e2   :  { %5526 = vmatprep.subr.bf16.mxu1 %v5873_v7  ;;  %5686 = vmatprep.subr.bf16.mxu0 %v5881_v21  ;;  %v5960_v7 = vcombine.low %v4708_v4, %v4716_v41  ;;  %v5969_v21 = vcombine.high %v4720_v3, %v4728_v54  ;;  %v5977_v42 = vcombine.high %v4724_v47, %v4732_v15  ;;  %v4689_v41 = vld [vmem:[%s9463_s1 + $0x218] sm:$0xff] }
 0x4e3   :  { %v5976_v39 = vcombine.low %v4724_v47, %v4732_v15  ;;  %v4705_v15 = vld [vmem:[%s9463_s1 + $0x298] sm:$0xff] }
 0x4e8   :  { %5519 = vmatmul.mubr.bf16.vlgmr.msra.gmra.mrb[0].mxu1 %v6647_v43  ;;  %5679 = vmatmul.mubr.bf16.vlgmr.msra.gmra.mrb[0].mxu0 %v6655_v17  ;;  %v4625_v43 = vld [vmem:[%s9463_s1 + $0x18] sm:$0xff] }
 0x4e9   :  { %5527 = vmatpush1.bf16.xpose.msra.mxu1 %v5872_v1  ;;  %5558 = vmatprep.mubr.bf16.mxu1 %v6650_v11  ;;  %v5993_v1 = vcombine.high %v4740_v58, %v4748_v55  ;;  %v4633_v17 = vld [vmem:[%s9463_s1 + $0x58] sm:$0xff] }
 0x4ea   :  { %5687 = vmatpush1.bf16.xpose.msra.mxu0 %v5880_v33  ;;  %5718 = vmatprep.mubr.bf16.mxu0 %v6658_v49  ;;  %v4629_v33 = vld [vmem:[%s9463_s1 + $0x38] sm:$0xff]  ;;  %v5875_v49 = vcombine.high %v4625_v43, %v4633_v17 }
 0x4eb   :  { %5528 = vmatprep.subr.bf16.mxu1 %v5889_v25  ;;  %5688 = vmatprep.subr.bf16.mxu0 %v5897_v60  ;;  %v4637_v11 = vld [vmem:[%s9463_s1 + $0x78] sm:$0xff]  ;;  %v5984_v25 = vcombine.low %v4736_v48, %v4744_v37  ;;  %v5992_v60 = vcombine.low %v4740_v58, %v4748_v55 }
 0x4ec   :  { %v5883_v63 = vcombine.high %v4629_v33, %v4637_v11  ;;  %v4721_v55 = vld [vmem:[%s9463_s1 + $0x318] sm:$0xff] }
 0x4f1   :  { %5529 = vmatpush1.bf16.xpose.msra.mxu1 %v5888_v35  ;;  %v5874_v35 = vcombine.low %v4625_v43, %v4633_v17 }
 0x4f2   :  { %5689 = vmatpush1.bf16.xpose.msra.mxu0 %v5896_v19  ;;  %5530 = vmatprep.subr.bf16.mxu1 %v5905_v6  ;;  %v6649_v19 = vpack.c.bf16 %v4530_v57, %v4530_v57  ;;  %v5882_v6 = vcombine.low %v4629_v33, %v4637_v11  ;;  %v4737_v11 = vld [vmem:[%s9463_s1 + $0x398] sm:$0xff] }
 0x4f3   :  { %5690 = vmatprep.subr.bf16.mxu0 %v5913_v2  ;;  %v6657_v2 = vpack.c.bf16 %v4538_v13, %v4538_v13 }
 0x4f9   :  { %5531 = vmatpush1.bf16.xpose.msra.mxu1 %v5904_v50  ;;  %v4665_v50 = vld [vmem:[%s9463_s1 + $0x158] sm:$0xff] }
 0x4fa   :  { %5691 = vmatpush1.bf16.xpose.msra.mxu0 %v5912_v18  ;;  %5532 = vmatprep.subr.bf16.mxu1 %v5921_v22  ;;  %v4661_v18 = vld [vmem:[%s9463_s1 + $0x138] sm:$0xff]  ;;  %v5907_v59 = vcombine.high %v4657_v38, %v4665_v50 }
 0x4fb   :  { %5692 = vmatprep.subr.bf16.mxu0 %v5929_v51  ;;  %v4669_v22 = vld [vmem:[%s9463_s1 + $0x178] sm:$0xff]  ;;  %v5890_v51 = vcombine.low %v4641_v40, %v4649_v56 }
 0x4fc   :  { %v5915_v34 = vcombine.high %v4661_v18, %v4669_v22  ;;  %v5914_v24 = vcombine.low %v4661_v18, %v4669_v22 }
 0x501   :  { %5533 = vmatpush1.bf16.xpose.msra.mxu1 %v5920_v0  ;;  %v4681_v0 = vld [vmem:[%s9463_s1 + $0x1d8] sm:$0xff] }
 0x502   :  { %5693 = vmatpush1.bf16.xpose.msra.mxu0 %v5928_v31  ;;  %5534 = vmatprep.subr.bf16.mxu1 %v5937_v44  ;;  %v4677_v31 = vld [vmem:[%s9463_s1 + $0x1b8] sm:$0xff]  ;;  %v5923_v20 = vcombine.high %v4673_v52, %v4681_v0 }
 0x503   :  { %5694 = vmatprep.subr.bf16.mxu0 %v5945_v28  ;;  %v4685_v44 = vld [vmem:[%s9463_s1 + $0x1f8] sm:$0xff]  ;;  %v5906_v28 = vcombine.low %v4657_v38, %v4665_v50 }
 0x504   :  { %v5931_v4 = vcombine.high %v4677_v31, %v4685_v44  ;;  %v5930_v3 = vcombine.low %v4677_v31, %v4685_v44 }
 0x509   :  { %5535 = vmatpush1.bf16.xpose.msra.mxu1 %v5936_v29  ;;  %v4697_v29 = vld [vmem:[%s9463_s1 + $0x258] sm:$0xff] }
 0x50a   :  { %5695 = vmatpush1.bf16.xpose.msra.mxu0 %v5944_v36  ;;  %5536 = vmatprep.subr.bf16.mxu1 %v5953_v26  ;;  %v4693_v36 = vld [vmem:[%s9463_s1 + $0x238] sm:$0xff]  ;;  %v5939_v54 = vcombine.high %v4689_v41, %v4697_v29 }
 0x50b   :  { %5696 = vmatprep.subr.bf16.mxu0 %v5961_v14  ;;  %v4701_v26 = vld [vmem:[%s9463_s1 + $0x278] sm:$0xff]  ;;  %v5922_v14 = vcombine.low %v4673_v52, %v4681_v0 }
 0x50c   :  { %v5947_v47 = vcombine.high %v4693_v36, %v4701_v26  ;;  %v5946_v48 = vcombine.low %v4693_v36, %v4701_v26 }
 0x511   :  { %5537 = vmatpush1.bf16.xpose.msra.mxu1 %v5952_v53  ;;  %v4713_v53 = vld [vmem:[%s9463_s1 + $0x2d8] sm:$0xff] }
 0x512   :  { %5697 = vmatpush1.bf16.xpose.msra.mxu0 %v5960_v7  ;;  %5538 = vmatprep.subr.bf16.mxu1 %v5969_v21  ;;  %v4709_v7 = vld [vmem:[%s9463_s1 + $0x2b8] sm:$0xff]  ;;  %v5955_v37 = vcombine.high %v4705_v15, %v4713_v53 }
 0x513   :  { %5698 = vmatprep.subr.bf16.mxu0 %v5977_v42  ;;  %v4717_v21 = vld [vmem:[%s9463_s1 + $0x2f8] sm:$0xff]  ;;  %v5938_v42 = vcombine.low %v4689_v41, %v4697_v29 }
 0x514   :  { %v5963_v58 = vcombine.high %v4709_v7, %v4717_v21  ;;  %v5962_v43 = vcombine.low %v4709_v7, %v4717_v21 }
 0x519   :  { %5539 = vmatpush1.bf16.xpose.msra.mxu1 %v5968_v27  ;;  %v4729_v27 = vld [vmem:[%s9463_s1 + $0x358] sm:$0xff] }
 0x51a   :  { %5699 = vmatpush1.bf16.xpose.msra.mxu0 %v5976_v39  ;;  %5540 = vmatprep.subr.bf16.mxu1 %v5985_v62  ;;  %v4725_v39 = vld [vmem:[%s9463_s1 + $0x338] sm:$0xff]  ;;  %v5971_v17 = vcombine.high %v4721_v55, %v4729_v27 }
 0x51b   :  { %5700 = vmatprep.subr.bf16.mxu0 %v5993_v1  ;;  %v4733_v62 = vld [vmem:[%s9463_s1 + $0x378] sm:$0xff]  ;;  %v5954_v1 = vcombine.low %v4705_v15, %v4713_v53 }
 0x51c   :  { %v5979_v33 = vcombine.high %v4725_v39, %v4733_v62  ;;  %v5978_v57 = vcombine.low %v4725_v39, %v4733_v62 }
 0x521   :  { %5541 = vmatpush1.bf16.xpose.msra.mxu1 %v5984_v25  ;;  %v4745_v25 = vld [vmem:[%s9463_s1 + $0x3d8] sm:$0xff] }
 0x522   :  { %5701 = vmatpush1.bf16.xpose.msra.mxu0 %v5992_v60  ;;  %5566 = vmatprep.subr.bf16.mxu1 %v5875_v49  ;;  %v4741_v60 = vld [vmem:[%s9463_s1 + $0x3b8] sm:$0xff]  ;;  %v5987_v13 = vcombine.high %v4737_v11, %v4745_v25  ;;  %v5986_v40 = vcombine.low %v4737_v11, %v4745_v25 }
 0x523   :  { %5726 = vmatprep.subr.bf16.mxu0 %v5883_v63  ;;  %v4749_v49 = vld [vmem:[%s9463_s1 + $0x3f8] sm:$0xff]  ;;  %v5970_v63 = vcombine.low %v4721_v55, %v4729_v27 }
 0x524   :  { %v5995_v32 = vcombine.high %v4741_v60, %v4749_v49  ;;  %v5994_v56 = vcombine.low %v4741_v60, %v4749_v49 }
 0x528   :  { %5559 = vmatmul.mubr.bf16.vlgmr.msra.gmra.mrb[0].mxu1 %v6649_v19  ;;  %v5775_v19 = vlaneseq }
 0x529   :  { %5719 = vmatmul.mubr.bf16.vlgmr.msra.gmra.mrb[0].mxu0 %v6657_v2  ;;  %5567 = vmatpush1.bf16.xpose.msra.mxu1 %v5874_v35  ;;  %v4532_v35 = vmul.f32 %v9143_v45, %v9017_v61  ;;  %v7306_v45 = vmov 0.0  }
 0x52a   :  { %5598 = vmatprep.mubr.bf16.mxu1 %v6652_v12  ;;  %5727 = vmatpush1.bf16.xpose.msra.mxu0 %v5882_v6  ;;  %v5776_v6 = vand.u32 127, %v5775_v19 }
 0x52b   :  { %5758 = vmatprep.mubr.bf16.mxu0 %v6660_v30  ;;  %5568 = vmatprep.subr.bf16.mxu1 %v5891_v8  ;;  %v6651_v5 = vpack.c.bf16 %v4532_v35, %v4532_v35  ;;  %v5996_v30 = vld [vmem:[%s9464_s2] ss:$0 sm:$0xff] }
 0x52c   :  { %5728 = vmatprep.subr.bf16.mxu0 %v5899_v23 }
 0x531   :  { %5569 = vmatpush1.bf16.xpose.msra.mxu1 %v5890_v51 }
 0x532   :  { %5729 = vmatpush1.bf16.xpose.msra.mxu0 %v5898_v9  ;;  %5570 = vmatprep.subr.bf16.mxu1 %v5907_v59 }
 0x533   :  { %5730 = vmatprep.subr.bf16.mxu0 %v5915_v34 }
 0x539   :  { %5571 = vmatpush1.bf16.xpose.msra.mxu1 %v5906_v28 }
 0x53a   :  { %5731 = vmatpush1.bf16.xpose.msra.mxu0 %v5914_v24  ;;  %5572 = vmatprep.subr.bf16.mxu1 %v5923_v20 }
 0x53b   :  { %5732 = vmatprep.subr.bf16.mxu0 %v5931_v4 }
 0x541   :  { %5573 = vmatpush1.bf16.xpose.msra.mxu1 %v5922_v14 }
 0x542   :  { %5733 = vmatpush1.bf16.xpose.msra.mxu0 %v5930_v3  ;;  %5574 = vmatprep.subr.bf16.mxu1 %v5939_v54 }
 0x543   :  { %5734 = vmatprep.subr.bf16.mxu0 %v5947_v47  ;;  %v5782_v2 = vpop.permute.xlu0 %5781 }
 0x544   :  { %vm5783_vm15 = vcmp.eq.s32.totalorder %v5776_v6, %v5782_v2 }
 0x545   :  { %v5997_v22 = vsel %vm5783_vm15, 1.0, %v7306_v45 }
 0x549   :  { %5575 = vmatpush1.bf16.xpose.msra.mxu1 %v5938_v42 }
 0x54a   :  { %5735 = vmatpush1.bf16.xpose.msra.mxu0 %v5946_v48  ;;  %5576 = vmatprep.subr.bf16.mxu1 %v5955_v37 }
 0x54b   :  { %5736 = vmatprep.subr.bf16.mxu0 %v5963_v58 }
 0x551   :  { %5577 = vmatpush1.bf16.xpose.msra.mxu1 %v5954_v1 }
 0x552   :  { %5737 = vmatpush1.bf16.xpose.msra.mxu0 %v5962_v43  ;;  %5578 = vmatprep.subr.bf16.mxu1 %v5971_v17 }
 0x553   :  { %5738 = vmatprep.subr.bf16.mxu0 %v5979_v33 }
 0x559   :  { %5579 = vmatpush1.bf16.xpose.msra.mxu1 %v5970_v63 }
 0x55a   :  { %5739 = vmatpush1.bf16.xpose.msra.mxu0 %v5978_v57  ;;  %5580 = vmatprep.subr.bf16.mxu1 %v5987_v13 }
 0x55b   :  { %5740 = vmatprep.subr.bf16.mxu0 %v5995_v32 }
 0x561   :  { %5581 = vmatpush1.bf16.xpose.msra.mxu1 %v5986_v40 }
 0x562   :  { %5741 = vmatpush1.bf16.xpose.msra.mxu0 %v5994_v56 }
 0x568   :  { %5599 = vmatmul.mubr.bf16.vlgmr.msra.gmra.mrb[0].mxu1 %v6651_v5 }
 0x569   :  { %5759 = vmatmul.mubr.bf16.vlgmr.msra.gmra.mrb[0].mxu0 %v6659_v10 }
 0x63b   :  { %v5600_v8 = vpop.f32.mrb[0].mxu1 }
 0x63c   :  { %v5760_v12 = vpop.f32.mrb[0].mxu0  ;;  %v5602_v23 = vpop.f32.mrb[1].mxu1 }
 0x63d   :  { %v6661_v38 = vadd.f32 %v5760_v12, %v5600_v8  ;;  %v5762_v61 = vpop.f32.mrb[1].mxu0  ;;  %v5603_v50 = vpop.f32.mrb[2].mxu1 }
 0x63e   :  { %v5763_v18 = vpop.f32.mrb[2].mxu0  ;;  %v5604_v16 = vpop.f32.mrb[3].mxu1 }
 0x63f   :  { %v5764_v51 = vpop.f32.mrb[3].mxu0  ;;  %v5773_v9 = vmul.f32 %v6661_v38, %v5996_v30 }
 0x641   :  { %v5786_v59 = vmul.f32 %v5997_v22, %v5773_v9 }
 0x643   :  { %5787 = vadd.xlane.f32.xlu1 %v5786_v59 }
 0x6d0   :  { %v5788_v34 = vpop.xlane.xlu1 %5787 }
 0x6d1   :  { %v5789_v52 = vmul.f32 0.033333335, %v5788_v34 }
 0x6d3   :  { %v5790_v0 = vmul.f32 %v5789_v52, %v5789_v52  ;;  %v5800_v29 = vmul.f32 0.9887711, %v5789_v52  ;;  %v5998_v14 = vadd.f32 -0.02241572, %v5789_v52  ;;  %vm5803_vm2 = vcmp.gt.f32.partialorder %v5789_v52, -0.9887711 }
 0x6d5   :  { %v5791_v31 = vsub.f32 1.0, %v5790_v0 }
 0x6d7   :  { %v5792_v44 = vmax.f32 %v5791_v31, 0.0 }
 0x6d9   :  { %7287 = vrsqrt.f32 %v5792_v44  ;;  %vm5795_vm9 = vcmp.eq.f32.partialorder %v5792_v44, inf  ;;  %v5798_v20 = vand.u32 2147483648, %v5792_v44  ;;  %vm5797_vm1 = vcmp.eq.f32.partialorder %v5792_v44, 0.0 }
 0x6e3   :  { %v7288_v28 = vpop.eup %7287 }
 0x6e4   :  { %v5794_v24 = vmul.f32 %v7288_v28, %v5792_v44 }
 0x6e6   :  { %v5796_v4 = vsel %vm5795_vm9, %v5792_v44, %v5794_v24 }
 0x6e7   :  { %v5799_v41 = vsel %vm5797_vm1, %v5798_v20, %v5796_v4 }
 0x6e8   :  { %v5801_v36 = vmul.f32 0.14943813, %v5799_v41 }
 0x6ea   :  { %v5802_v26 = vsub.f32 %v5800_v29, %v5801_v36 }
 0x6ec   :  { %v5805_v3 = vsel %vm5803_vm2, %v5802_v26, %v5998_v14 }
 0x6ed   :  { %v5806_v54 = vsub.f32 %v5805_v3, %v5789_v52 }
 0x6ef   :  { %v5807_v47 = vmul.f32 30.0, %v5806_v54 }
 0x6f1   :  { %v5808_v15 = vmul.f32 %v5997_v22, %v5807_v47 }
 0x6f3   :  { %v5809_v53 = vadd.f32 %v5808_v15, %v5773_v9 }
 0x6f5   :  { %5810 = vst [vmem:[%s9468_s6] sm:$0xff] %v5809_v53 }

</bundles_post_ra>
